<compile_context>
chip_gen: v7x
topology: tpu7x:2x2x1
jax: 0.10.0
libtpu: 0.0.40
codegen_flags: <defaults>
</compile_context>

<pallas_src>
import functools

import jax
import jax.numpy as jnp
import numpy as np
from jax.experimental import pallas as pl
from jax.experimental.pallas import tpu as pltpu


# ---------------------------------------------------------------------------
# Pallas kernels
# ---------------------------------------------------------------------------
def _conv_tap_kernel(x_ref, w_ref, b_ref, o_ref, *, tap_starts, rows):
    """Conv as a static tap loop: acc += window(tap) @ W[tap]; bias+ReLU fused.

    x_ref : (1, flat_rows, K)   bf16  flattened (padded / s2d) feature map
    w_ref : (taps, K, Cout)     bf16  per-tap weight matrices
    b_ref : (1, Cout)           f32
    o_ref : (1, rows, Cout)     bf16
    """
    cout = o_ref.shape[-1]
    acc = jnp.zeros((rows, cout), jnp.float32)
    for t, start in enumerate(tap_starts):
        p = x_ref[0, start:start + rows, :]                     # (rows, K) bf16
        acc = acc + jnp.dot(p, w_ref[t], preferred_element_type=jnp.float32)
    acc = jnp.maximum(acc + b_ref[...], 0.0)
    o_ref[...] = acc[None].astype(o_ref.dtype)


def _pool_fc_kernel(x_ref, w_ref, b_ref, o_ref, *, inv_hw):
    """AdaptiveAvgPool2d(1) + 1x1 conv fused; bf16 MXU operands, f32 accum."""
    pooled = jnp.sum(x_ref[...].astype(jnp.float32), axis=1) * inv_hw   # (N, C)
    out = jnp.dot(pooled.astype(jnp.bfloat16), w_ref[...],
                  preferred_element_type=jnp.float32)
    o_ref[...] = out + b_ref[...]


# ---------------------------------------------------------------------------
# Pallas wrappers
# ---------------------------------------------------------------------------
def _conv_tap_call(x2, w_taps, b, tap_starts, rows):
    """x2: (N, flat, K) flattened feature map; one grid step per batch image."""
    n, flat, kdim = x2.shape
    taps, kdim2, cout = w_taps.shape
    assert kdim == kdim2 and max(tap_starts) + rows <= flat
    x2 = x2.astype(jnp.bfloat16)

    cost = pl.CostEstimate(
        flops=int(2 * n * taps * rows * kdim * cout),
        transcendentals=0,
        bytes_accessed=int(n * flat * kdim * 2 + taps * kdim * cout * 2
                           + n * rows * cout * 2 + cout * 4),
    )
    return pl.pallas_call(
        functools.partial(_conv_tap_kernel, tap_starts=tuple(tap_starts),
                          rows=rows),
        out_shape=jax.ShapeDtypeStruct((n, rows, cout), jnp.bfloat16),
        grid_spec=pltpu.PrefetchScalarGridSpec(
            num_scalar_prefetch=0,
            grid=(n,),
            in_specs=[
                pl.BlockSpec((1, flat, kdim), lambda bi: (bi, 0, 0)),
                pl.BlockSpec((taps, kdim, cout), lambda bi: (0, 0, 0)),
                pl.BlockSpec((1, cout), lambda bi: (0, 0)),
            ],
            out_specs=pl.BlockSpec((1, rows, cout), lambda bi: (bi, 0, 0)),
        ),
        compiler_params=pltpu.CompilerParams(
            dimension_semantics=("parallel",),
            vmem_limit_bytes=32 * 1024 * 1024,
        ),
        cost_estimate=cost,
    )(x2, w_taps, b)


def conv7_relu(x, w_taps, b):
    """ReflectionPad2d(3) + Conv2d(k=7, s=1) + ReLU."""
    n, h, w, cin = x.shape
    kh = w_taps.shape[0]
    kw = w_taps.shape[1] // cin
    pad = (kh - 1) // 2
    xp = jnp.pad(x, ((0, 0), (pad, pad), (pad, pad), (0, 0)), mode="reflect")
    hp = h + 2 * pad
    oh, ow = h, w
    # Fold the kw width-taps into the channel (lane) dim: cheap on the tiny
    # first layer and leaves only kh shifted row windows for the kernel.
    xcat = jnp.concatenate([xp[:, :, dj:dj + ow, :] for dj in range(kw)],
                           axis=-1)                          # (N, Hp, OW, kw*cin)
    x2 = xcat.reshape(n, hp * ow, kw * cin)
    rows = oh * ow
    tap_starts = tuple(di * ow for di in range(kh))
    out = _conv_tap_call(x2, w_taps, b, tap_starts, rows)    # (N, OH*OW, Cout)
    return out.reshape(n, oh, ow, -1)


def conv4s2_relu(x, w_taps, b):
    """ReflectionPad2d(1) + Conv2d(k=4, s=2) + ReLU via space-to-depth(2)."""
    n, h, w, c = x.shape
    assert h % 2 == 0 and w % 2 == 0
    xp = jnp.pad(x, ((0, 0), (1, 1), (1, 1), (0, 0)), mode="reflect")
    hp, wp = h + 2, w + 2
    hs, ws = hp // 2, wp // 2                                # = OH+1, OW+1
    xs = xp.reshape(n, hs, 2, ws, 2, c)
    xs = jnp.transpose(xs, (0, 1, 3, 2, 4, 5)).reshape(n, hs * ws, 4 * c)
    oh, ow = h // 2, w // 2
    rows = oh * ws - 1            # accumulate a padded-width (OW+1) row pitch;
    #                               the trailing junk column is sliced off below
    tap_starts = tuple(mh * ws + mw for mh in range(2) for mw in range(2))
    out = _conv_tap_call(xs, w_taps, b, tap_starts, rows)    # (N, rows, Cout)
    out = jnp.pad(out, ((0, 0), (0, 1), (0, 0)))             # (N, OH*(OW+1), C)
    return out.reshape(n, oh, ws, -1)[:, :, :ow, :]          # (N, OH, OW, Cout)


def global_avgpool_fc(x_nhwc, w_mat, b_vec):
    """AdaptiveAvgPool2d(1) + 1x1 conv fused in one pallas_call."""
    n, h, w, c = x_nhwc.shape
    hw = h * w
    cout = w_mat.shape[1]
    x3 = x_nhwc.reshape(n, hw, c).astype(jnp.bfloat16)
    # TODO(synk): tile over HW with an accumulator for large feature maps.
    return pl.pallas_call(
        functools.partial(_pool_fc_kernel, inv_hw=1.0 / hw),
        out_shape=jax.ShapeDtypeStruct((n, cout), jnp.float32),
        grid_spec=pltpu.PrefetchScalarGridSpec(
            num_scalar_prefetch=0,
            grid=(1,),
            in_specs=[
                pl.BlockSpec((n, hw, c), lambda i: (0, 0, 0)),
                pl.BlockSpec((c, cout), lambda i: (0, 0)),
                pl.BlockSpec((1, cout), lambda i: (0, 0)),
            ],
            out_specs=pl.BlockSpec((n, cout), lambda i: (0, 0)),
        ),
        compiler_params=pltpu.CompilerParams(
            dimension_semantics=("arbitrary",),
            vmem_limit_bytes=32 * 1024 * 1024,
        ),
    )(x3, w_mat, b_vec)


# ---------------------------------------------------------------------------
# Parameters
# ---------------------------------------------------------------------------
def init_encoder_params(key, input_nc, output_nc, nef, n_downsample):
    def conv_init(k, c_out, c_in, ksz):
        kw_, kb_ = jax.random.split(k)
        fan_in = c_in * ksz * ksz
        w = jax.random.normal(kw_, (c_out, c_in, ksz, ksz), jnp.float32) \
            * jnp.sqrt(2.0 / fan_in)
        b = jax.random.normal(kb_, (c_out,), jnp.float32) * 0.01
        return w, b

    keys = jax.random.split(key, n_downsample + 2)
    params = [conv_init(keys[0], nef, input_nc, 7)]
    c = nef
    idx = 1
    for _ in range(n_downsample - 2):
        params.append(conv_init(keys[idx], c * 2, c, 4))
        c *= 2
        idx += 1
    for _ in range(2):
        params.append(conv_init(keys[idx], c, c, 4))
        idx += 1
    params.append(conv_init(keys[idx], output_nc, c, 1))
    return params


def prepare_encoder_params(params):
    """Rearrange weights once into per-tap matmul form (no channel padding)."""
    prepared = []
    # Layer 0: 7x7 stride-1 -> kh row taps, each (kw*cin, cout) with dj-major
    # channel order matching the width-fold in conv7_relu.
    w0, b0 = params[0]
    cout, cin, kh, kw = w0.shape
    wt = jnp.transpose(w0, (2, 3, 1, 0))                     # (kh, kw, cin, cout)
    prepared.append(("conv7",
                     wt.reshape(kh, kw * cin, cout).astype(jnp.bfloat16),
                     b0.reshape(1, cout).astype(jnp.float32)))
    # 4x4 stride-2 layers: 4 space-to-depth taps (mh, mw), each (4*cin, cout)
    # with channel order ((di%2)*2 + dj%2, cin) matching the s2d transform.
    for (w, b) in params[1:-1]:
        cout, cin, kh, kw = w.shape                          # kh = kw = 4
        wt = jnp.transpose(w, (2, 3, 1, 0)).reshape(2, 2, 2, 2, cin, cout)
        wt = jnp.transpose(wt, (0, 2, 1, 3, 4, 5)).reshape(4, 4 * cin, cout)
        prepared.append(("conv4s2", wt.astype(jnp.bfloat16),
                         b.reshape(1, cout).astype(jnp.float32)))
    # Final 1x1 conv as an FC matrix.
    w_fc, b_fc = params[-1]
    cout, cin = w_fc.shape[0], w_fc.shape[1]
    w_mat = jnp.transpose(w_fc.reshape(cout, cin)).astype(jnp.bfloat16)
    prepared.append(("fc", w_mat, b_fc.reshape(1, cout).astype(jnp.float32)))
    return prepared


# ---------------------------------------------------------------------------
# Forward pass (matches the PyTorch Encoder semantics)
# ---------------------------------------------------------------------------
def encoder_forward(x_nchw, prepared, output_nc):
    x = jnp.transpose(x_nchw, (0, 2, 3, 1)).astype(jnp.bfloat16)  # NCHW -> NHWC
    _, w0, b0 = prepared[0]
    x = conv7_relu(x, w0, b0)
    for (_, w, b) in prepared[1:-1]:
        x = conv4s2_relu(x, w, b)
    _, w_fc, b_fc = prepared[-1]
    out = global_avgpool_fc(x, w_fc, b_fc)                   # (N, output_nc) f32
    return out


# ---------------------------------------------------------------------------
# Pure-JAX reference (for correctness check only)
# ---------------------------------------------------------------------------
def encoder_reference(x_nchw, params, output_nc):
    def conv(x, w, b, stride, pad):
        if pad > 0:
            x = jnp.pad(x, ((0, 0), (0, 0), (pad, pad), (pad, pad)),
                        mode="reflect")
        y = jax.lax.conv_general_dilated(
            x, w, window_strides=(stride, stride), padding="VALID",
            dimension_numbers=("NCHW", "OIHW", "NCHW"),
            precision=jax.lax.Precision.HIGHEST)
        return y + b.reshape(1, -1, 1, 1)

    x = x_nchw.astype(jnp.float32)
    w0, b0 = params[0]
    x = jax.nn.relu(conv(x, w0, b0, 1, 3))
    for w, b in params[1:-1]:
        x = jax.nn.relu(conv(x, w, b, 2, 1))
    x = jnp.mean(x, axis=(2, 3), keepdims=True)
    w_fc, b_fc = params[-1]
    x = conv(x, w_fc, b_fc, 1, 0)
    return x.reshape(-1, output_nc)


if __name__ == "__main__":
    input_nc, output_nc, nef, n_downsample = 4, 8, 8, 4
    key = jax.random.PRNGKey(0)
    kx, kp = jax.random.split(key)
    x = jax.random.normal(kx, (2, input_nc, 16, 16), jnp.float32)
    params = init_encoder_params(kp, input_nc, output_nc, nef, n_downsample)
    prepared = prepare_encoder_params(params)

    fwd = jax.jit(lambda xx: encoder_forward(xx, prepared, output_nc))
    out = jax.block_until_ready(fwd(x))
    ref = jax.block_until_ready(encoder_reference(x, params, output_nc))

    assert out.shape == (2, output_nc), out.shape
    # bf16 operands (f32 accumulation) -> relaxed-but-meaningful tolerance.
    np.testing.assert_allclose(np.asarray(out), np.asarray(ref),
                               rtol=5e-2, atol=4e-2)
    print("KERNEL_OK")
</pallas_src>

<mosaic_0001>
module attributes {stable_mosaic.version = 11 : i64} {
  func.func @_conv_tap_kernel(%arg0: i32, %arg1: memref<1x352x28xbf16, #tpu.memory_space<vmem>>, %arg2: memref<7x28x8xbf16, #tpu.memory_space<vmem>>, %arg3: memref<1x8xf32, #tpu.memory_space<vmem>>, %arg4: memref<1x256x8xbf16, #tpu.memory_space<vmem>>) attributes {dimension_semantics = [#tpu.dimension_semantics<parallel>], iteration_bounds = array<i64: 2>, scalar_prefetch = 0 : i64, scratch_operands = 0 : i64, tpu.core_type = #tpu.core_type<tc>, window_params = [{transform_indices = @transform_0, window_bounds = array<i64: 1, 352, 28>}, {pipeline_mode = #tpu.pipeline_mode<synchronous>, transform_indices = @transform_1, window_bounds = array<i64: 7, 28, 8>}, {pipeline_mode = #tpu.pipeline_mode<synchronous>, transform_indices = @transform_2, window_bounds = array<i64: 1, 8>}, {transform_indices = @transform_3, window_bounds = array<i64: 1, 256, 8>}]} {
    %cst = arith.constant 0.000000e+00 : f32
    %0 = vector.broadcast %cst : f32 to vector<256x8xf32>
    %c0 = arith.constant 0 : index
    %c0_0 = arith.constant 0 : index
    %c0_1 = arith.constant 0 : index
    %1 = vector.load %arg1[%c0, %c0_0, %c0_1] : memref<1x352x28xbf16, #tpu.memory_space<vmem>>, vector<1x256x28xbf16>
    %2 = vector.shape_cast %1 : vector<1x256x28xbf16> to vector<256x28xbf16>
    %c0_2 = arith.constant 0 : index
    %c0_3 = arith.constant 0 : index
    %c0_4 = arith.constant 0 : index
    %3 = vector.load %arg2[%c0_2, %c0_3, %c0_4] : memref<7x28x8xbf16, #tpu.memory_space<vmem>>, vector<1x28x8xbf16>
    %4 = vector.shape_cast %3 : vector<1x28x8xbf16> to vector<28x8xbf16>
    %cst_5 = arith.constant dense<0.000000e+00> : vector<256x8xf32>
    %5 = tpu.matmul %2, %4, %cst_5 {dimension_numbers = #tpu.dot_dimension_numbers<[1], [0], [0], [1], [0, 0, 1, 1], [], []>} : vector<256x28xbf16>, vector<28x8xbf16>, vector<256x8xf32> -> vector<256x8xf32>
    %6 = arith.addf %0, %5 : vector<256x8xf32>
    %c0_6 = arith.constant 0 : index
    %c16 = arith.constant 16 : index
    %c0_7 = arith.constant 0 : index
    %7 = vector.load %arg1[%c0_6, %c16, %c0_7] : memref<1x352x28xbf16, #tpu.memory_space<vmem>>, vector<1x256x28xbf16>
    %8 = vector.shape_cast %7 : vector<1x256x28xbf16> to vector<256x28xbf16>
    %c1 = arith.constant 1 : index
    %c0_8 = arith.constant 0 : index
    %c0_9 = arith.constant 0 : index
    %9 = vector.load %arg2[%c1, %c0_8, %c0_9] : memref<7x28x8xbf16, #tpu.memory_space<vmem>>, vector<1x28x8xbf16>
    %10 = vector.shape_cast %9 : vector<1x28x8xbf16> to vector<28x8xbf16>
    %cst_10 = arith.constant dense<0.000000e+00> : vector<256x8xf32>
    %11 = tpu.matmul %8, %10, %cst_10 {dimension_numbers = #tpu.dot_dimension_numbers<[1], [0], [0], [1], [0, 0, 1, 1], [], []>} : vector<256x28xbf16>, vector<28x8xbf16>, vector<256x8xf32> -> vector<256x8xf32>
    %12 = arith.addf %6, %11 : vector<256x8xf32>
    %c0_11 = arith.constant 0 : index
    %c32 = arith.constant 32 : index
    %c0_12 = arith.constant 0 : index
    %13 = vector.load %arg1[%c0_11, %c32, %c0_12] : memref<1x352x28xbf16, #tpu.memory_space<vmem>>, vector<1x256x28xbf16>
    %14 = vector.shape_cast %13 : vector<1x256x28xbf16> to vector<256x28xbf16>
    %c2 = arith.constant 2 : index
    %c0_13 = arith.constant 0 : index
    %c0_14 = arith.constant 0 : index
    %15 = vector.load %arg2[%c2, %c0_13, %c0_14] : memref<7x28x8xbf16, #tpu.memory_space<vmem>>, vector<1x28x8xbf16>
    %16 = vector.shape_cast %15 : vector<1x28x8xbf16> to vector<28x8xbf16>
    %cst_15 = arith.constant dense<0.000000e+00> : vector<256x8xf32>
    %17 = tpu.matmul %14, %16, %cst_15 {dimension_numbers = #tpu.dot_dimension_numbers<[1], [0], [0], [1], [0, 0, 1, 1], [], []>} : vector<256x28xbf16>, vector<28x8xbf16>, vector<256x8xf32> -> vector<256x8xf32>
    %18 = arith.addf %12, %17 : vector<256x8xf32>
    %c0_16 = arith.constant 0 : index
    %c48 = arith.constant 48 : index
    %c0_17 = arith.constant 0 : index
    %19 = vector.load %arg1[%c0_16, %c48, %c0_17] : memref<1x352x28xbf16, #tpu.memory_space<vmem>>, vector<1x256x28xbf16>
    %20 = vector.shape_cast %19 : vector<1x256x28xbf16> to vector<256x28xbf16>
    %c3 = arith.constant 3 : index
    %c0_18 = arith.constant 0 : index
    %c0_19 = arith.constant 0 : index
    %21 = vector.load %arg2[%c3, %c0_18, %c0_19] : memref<7x28x8xbf16, #tpu.memory_space<vmem>>, vector<1x28x8xbf16>
    %22 = vector.shape_cast %21 : vector<1x28x8xbf16> to vector<28x8xbf16>
    %cst_20 = arith.constant dense<0.000000e+00> : vector<256x8xf32>
    %23 = tpu.matmul %20, %22, %cst_20 {dimension_numbers = #tpu.dot_dimension_numbers<[1], [0], [0], [1], [0, 0, 1, 1], [], []>} : vector<256x28xbf16>, vector<28x8xbf16>, vector<256x8xf32> -> vector<256x8xf32>
    %24 = arith.addf %18, %23 : vector<256x8xf32>
    %c0_21 = arith.constant 0 : index
    %c64 = arith.constant 64 : index
    %c0_22 = arith.constant 0 : index
    %25 = vector.load %arg1[%c0_21, %c64, %c0_22] : memref<1x352x28xbf16, #tpu.memory_space<vmem>>, vector<1x256x28xbf16>
    %26 = vector.shape_cast %25 : vector<1x256x28xbf16> to vector<256x28xbf16>
    %c4 = arith.constant 4 : index
    %c0_23 = arith.constant 0 : index
    %c0_24 = arith.constant 0 : index
    %27 = vector.load %arg2[%c4, %c0_23, %c0_24] : memref<7x28x8xbf16, #tpu.memory_space<vmem>>, vector<1x28x8xbf16>
    %28 = vector.shape_cast %27 : vector<1x28x8xbf16> to vector<28x8xbf16>
    %cst_25 = arith.constant dense<0.000000e+00> : vector<256x8xf32>
    %29 = tpu.matmul %26, %28, %cst_25 {dimension_numbers = #tpu.dot_dimension_numbers<[1], [0], [0], [1], [0, 0, 1, 1], [], []>} : vector<256x28xbf16>, vector<28x8xbf16>, vector<256x8xf32> -> vector<256x8xf32>
    %30 = arith.addf %24, %29 : vector<256x8xf32>
    %c0_26 = arith.constant 0 : index
    %c80 = arith.constant 80 : index
    %c0_27 = arith.constant 0 : index
    %31 = vector.load %arg1[%c0_26, %c80, %c0_27] : memref<1x352x28xbf16, #tpu.memory_space<vmem>>, vector<1x256x28xbf16>
    %32 = vector.shape_cast %31 : vector<1x256x28xbf16> to vector<256x28xbf16>
    %c5 = arith.constant 5 : index
    %c0_28 = arith.constant 0 : index
    %c0_29 = arith.constant 0 : index
    %33 = vector.load %arg2[%c5, %c0_28, %c0_29] : memref<7x28x8xbf16, #tpu.memory_space<vmem>>, vector<1x28x8xbf16>
    %34 = vector.shape_cast %33 : vector<1x28x8xbf16> to vector<28x8xbf16>
    %cst_30 = arith.constant dense<0.000000e+00> : vector<256x8xf32>
    %35 = tpu.matmul %32, %34, %cst_30 {dimension_numbers = #tpu.dot_dimension_numbers<[1], [0], [0], [1], [0, 0, 1, 1], [], []>} : vector<256x28xbf16>, vector<28x8xbf16>, vector<256x8xf32> -> vector<256x8xf32>
    %36 = arith.addf %30, %35 : vector<256x8xf32>
    %c0_31 = arith.constant 0 : index
    %c96 = arith.constant 96 : index
    %c0_32 = arith.constant 0 : index
    %37 = vector.load %arg1[%c0_31, %c96, %c0_32] : memref<1x352x28xbf16, #tpu.memory_space<vmem>>, vector<1x256x28xbf16>
    %38 = vector.shape_cast %37 : vector<1x256x28xbf16> to vector<256x28xbf16>
    %c6 = arith.constant 6 : index
    %c0_33 = arith.constant 0 : index
    %c0_34 = arith.constant 0 : index
    %39 = vector.load %arg2[%c6, %c0_33, %c0_34] : memref<7x28x8xbf16, #tpu.memory_space<vmem>>, vector<1x28x8xbf16>
    %40 = vector.shape_cast %39 : vector<1x28x8xbf16> to vector<28x8xbf16>
    %cst_35 = arith.constant dense<0.000000e+00> : vector<256x8xf32>
    %41 = tpu.matmul %38, %40, %cst_35 {dimension_numbers = #tpu.dot_dimension_numbers<[1], [0], [0], [1], [0, 0, 1, 1], [], []>} : vector<256x28xbf16>, vector<28x8xbf16>, vector<256x8xf32> -> vector<256x8xf32>
    %42 = arith.addf %36, %41 : vector<256x8xf32>
    %c0_36 = arith.constant 0 : index
    %c0_37 = arith.constant 0 : index
    %43 = vector.load %arg3[%c0_36, %c0_37] : memref<1x8xf32, #tpu.memory_space<vmem>>, vector<1x8xf32>
    %44 = vector.broadcast %43 : vector<1x8xf32> to vector<256x8xf32>
    %45 = arith.addf %42, %44 : vector<256x8xf32>
    %cst_38 = arith.constant 0.000000e+00 : f32
    %46 = vector.broadcast %cst_38 : f32 to vector<256x8xf32>
    %47 = arith.maximumf %45, %46 : vector<256x8xf32>
    %48 = vector.shape_cast %47 : vector<256x8xf32> to vector<1x256x8xf32>
    %49 = arith.truncf %48 : vector<1x256x8xf32> to vector<1x256x8xbf16>
    %c0_39 = arith.constant 0 : index
    %c0_40 = arith.constant 0 : index
    %c0_41 = arith.constant 0 : index
    %50 = vector.load %arg4[%c0_39, %c0_40, %c0_41] : memref<1x256x8xbf16, #tpu.memory_space<vmem>>, vector<1x256x8xbf16>
    tpu.vector_store %arg4[%c0_39, %c0_40, %c0_41], %49 {strides = array<i32>} : memref<1x256x8xbf16, #tpu.memory_space<vmem>>, vector<1x256x8xbf16>,
    return
  }
  func.func @transform_0(%arg0: i32) -> (i32, i32, i32) {
    %c0_i32 = arith.constant 0 : i32
    %c0_i32_0 = arith.constant 0 : i32
    %c0_i32_1 = arith.constant 0 : i32
    return %arg0, %c0_i32, %c0_i32_0 : i32, i32, i32
  }
  func.func @transform_1(%arg0: i32) -> (i32, i32, i32) {
    %c0_i32 = arith.constant 0 : i32
    %c0_i32_0 = arith.constant 0 : i32
    %c0_i32_1 = arith.constant 0 : i32
    %c0_i32_2 = arith.constant 0 : i32
    return %c0_i32, %c0_i32_0, %c0_i32_1 : i32, i32, i32
  }
  func.func @transform_2(%arg0: i32) -> (i32, i32) {
    %c0_i32 = arith.constant 0 : i32
    %c0_i32_0 = arith.constant 0 : i32
    %c0_i32_1 = arith.constant 0 : i32
    return %c0_i32, %c0_i32_0 : i32, i32
  }
  func.func @transform_3(%arg0: i32) -> (i32, i32, i32) {
    %c0_i32 = arith.constant 0 : i32
    %c0_i32_0 = arith.constant 0 : i32
    %c0_i32_1 = arith.constant 0 : i32
    return %arg0, %c0_i32, %c0_i32_0 : i32, i32, i32
  }
}

module attributes {stable_mosaic.version = 11 : i64} {
  func.func @_conv_tap_kernel(%arg0: i32, %arg1: memref<1x81x32xbf16, #tpu.memory_space<vmem>>, %arg2: memref<4x32x16xbf16, #tpu.memory_space<vmem>>, %arg3: memref<1x16xf32, #tpu.memory_space<vmem>>, %arg4: memref<1x71x16xbf16, #tpu.memory_space<vmem>>) attributes {dimension_semantics = [#tpu.dimension_semantics<parallel>], iteration_bounds = array<i64: 2>, scalar_prefetch = 0 : i64, scratch_operands = 0 : i64, tpu.core_type = #tpu.core_type<tc>, window_params = [{transform_indices = @transform_0, window_bounds = array<i64: 1, 81, 32>}, {pipeline_mode = #tpu.pipeline_mode<synchronous>, transform_indices = @transform_1, window_bounds = array<i64: 4, 32, 16>}, {pipeline_mode = #tpu.pipeline_mode<synchronous>, transform_indices = @transform_2, window_bounds = array<i64: 1, 16>}, {transform_indices = @transform_3, window_bounds = array<i64: 1, 71, 16>}]} {
    %cst = arith.constant 0.000000e+00 : f32
    %0 = vector.broadcast %cst : f32 to vector<71x16xf32>
    %c0 = arith.constant 0 : index
    %c0_0 = arith.constant 0 : index
    %c0_1 = arith.constant 0 : index
    %1 = vector.load %arg1[%c0, %c0_0, %c0_1] : memref<1x81x32xbf16, #tpu.memory_space<vmem>>, vector<1x71x32xbf16>
    %2 = vector.shape_cast %1 : vector<1x71x32xbf16> to vector<71x32xbf16>
    %c0_2 = arith.constant 0 : index
    %c0_3 = arith.constant 0 : index
    %c0_4 = arith.constant 0 : index
    %3 = vector.load %arg2[%c0_2, %c0_3, %c0_4] : memref<4x32x16xbf16, #tpu.memory_space<vmem>>, vector<1x32x16xbf16>
    %4 = vector.shape_cast %3 : vector<1x32x16xbf16> to vector<32x16xbf16>
    %cst_5 = arith.constant dense<0.000000e+00> : vector<71x16xf32>
    %5 = tpu.matmul %2, %4, %cst_5 {dimension_numbers = #tpu.dot_dimension_numbers<[1], [0], [0], [1], [0, 0, 1, 1], [], []>} : vector<71x32xbf16>, vector<32x16xbf16>, vector<71x16xf32> -> vector<71x16xf32>
    %6 = arith.addf %0, %5 : vector<71x16xf32>
    %c0_6 = arith.constant 0 : index
    %c1 = arith.constant 1 : index
    %c0_7 = arith.constant 0 : index
    %7 = vector.load %arg1[%c0_6, %c1, %c0_7] : memref<1x81x32xbf16, #tpu.memory_space<vmem>>, vector<1x71x32xbf16>
    %8 = vector.shape_cast %7 : vector<1x71x32xbf16> to vector<71x32xbf16>
    %c1_8 = arith.constant 1 : index
    %c0_9 = arith.constant 0 : index
    %c0_10 = arith.constant 0 : index
    %9 = vector.load %arg2[%c1_8, %c0_9, %c0_10] : memref<4x32x16xbf16, #tpu.memory_space<vmem>>, vector<1x32x16xbf16>
    %10 = vector.shape_cast %9 : vector<1x32x16xbf16> to vector<32x16xbf16>
    %cst_11 = arith.constant dense<0.000000e+00> : vector<71x16xf32>
    %11 = tpu.matmul %8, %10, %cst_11 {dimension_numbers = #tpu.dot_dimension_numbers<[1], [0], [0], [1], [0, 0, 1, 1], [], []>} : vector<71x32xbf16>, vector<32x16xbf16>, vector<71x16xf32> -> vector<71x16xf32>
    %12 = arith.addf %6, %11 : vector<71x16xf32>
    %c0_12 = arith.constant 0 : index
    %c9 = arith.constant 9 : index
    %c0_13 = arith.constant 0 : index
    %13 = vector.load %arg1[%c0_12, %c9, %c0_13] : memref<1x81x32xbf16, #tpu.memory_space<vmem>>, vector<1x71x32xbf16>
    %14 = vector.shape_cast %13 : vector<1x71x32xbf16> to vector<71x32xbf16>
    %c2 = arith.constant 2 : index
    %c0_14 = arith.constant 0 : index
    %c0_15 = arith.constant 0 : index
    %15 = vector.load %arg2[%c2, %c0_14, %c0_15] : memref<4x32x16xbf16, #tpu.memory_space<vmem>>, vector<1x32x16xbf16>
    %16 = vector.shape_cast %15 : vector<1x32x16xbf16> to vector<32x16xbf16>
    %cst_16 = arith.constant dense<0.000000e+00> : vector<71x16xf32>
    %17 = tpu.matmul %14, %16, %cst_16 {dimension_numbers = #tpu.dot_dimension_numbers<[1], [0], [0], [1], [0, 0, 1, 1], [], []>} : vector<71x32xbf16>, vector<32x16xbf16>, vector<71x16xf32> -> vector<71x16xf32>
    %18 = arith.addf %12, %17 : vector<71x16xf32>
    %c0_17 = arith.constant 0 : index
    %c10 = arith.constant 10 : index
    %c0_18 = arith.constant 0 : index
    %19 = vector.load %arg1[%c0_17, %c10, %c0_18] : memref<1x81x32xbf16, #tpu.memory_space<vmem>>, vector<1x71x32xbf16>
    %20 = vector.shape_cast %19 : vector<1x71x32xbf16> to vector<71x32xbf16>
    %c3 = arith.constant 3 : index
    %c0_19 = arith.constant 0 : index
    %c0_20 = arith.constant 0 : index
    %21 = vector.load %arg2[%c3, %c0_19, %c0_20] : memref<4x32x16xbf16, #tpu.memory_space<vmem>>, vector<1x32x16xbf16>
    %22 = vector.shape_cast %21 : vector<1x32x16xbf16> to vector<32x16xbf16>
    %cst_21 = arith.constant dense<0.000000e+00> : vector<71x16xf32>
    %23 = tpu.matmul %20, %22, %cst_21 {dimension_numbers = #tpu.dot_dimension_numbers<[1], [0], [0], [1], [0, 0, 1, 1], [], []>} : vector<71x32xbf16>, vector<32x16xbf16>, vector<71x16xf32> -> vector<71x16xf32>
    %24 = arith.addf %18, %23 : vector<71x16xf32>
    %c0_22 = arith.constant 0 : index
    %c0_23 = arith.constant 0 : index
    %25 = vector.load %arg3[%c0_22, %c0_23] : memref<1x16xf32, #tpu.memory_space<vmem>>, vector<1x16xf32>
    %26 = vector.broadcast %25 : vector<1x16xf32> to vector<71x16xf32>
    %27 = arith.addf %24, %26 : vector<71x16xf32>
    %cst_24 = arith.constant 0.000000e+00 : f32
    %28 = vector.broadcast %cst_24 : f32 to vector<71x16xf32>
    %29 = arith.maximumf %27, %28 : vector<71x16xf32>
    %30 = vector.shape_cast %29 : vector<71x16xf32> to vector<1x71x16xf32>
    %31 = arith.truncf %30 : vector<1x71x16xf32> to vector<1x71x16xbf16>
    %c0_25 = arith.constant 0 : index
    %c0_26 = arith.constant 0 : index
    %c0_27 = arith.constant 0 : index
    %32 = vector.load %arg4[%c0_25, %c0_26, %c0_27] : memref<1x71x16xbf16, #tpu.memory_space<vmem>>, vector<1x71x16xbf16>
    tpu.vector_store %arg4[%c0_25, %c0_26, %c0_27], %31 {strides = array<i32>} : memref<1x71x16xbf16, #tpu.memory_space<vmem>>, vector<1x71x16xbf16>,
    return
  }
  func.func @transform_0(%arg0: i32) -> (i32, i32, i32) {
    %c0_i32 = arith.constant 0 : i32
    %c0_i32_0 = arith.constant 0 : i32
    %c0_i32_1 = arith.constant 0 : i32
    return %arg0, %c0_i32, %c0_i32_0 : i32, i32, i32
  }
  func.func @transform_1(%arg0: i32) -> (i32, i32, i32) {
    %c0_i32 = arith.constant 0 : i32
    %c0_i32_0 = arith.constant 0 : i32
    %c0_i32_1 = arith.constant 0 : i32
    %c0_i32_2 = arith.constant 0 : i32
    return %c0_i32, %c0_i32_0, %c0_i32_1 : i32, i32, i32
  }
  func.func @transform_2(%arg0: i32) -> (i32, i32) {
    %c0_i32 = arith.constant 0 : i32
    %c0_i32_0 = arith.constant 0 : i32
    %c0_i32_1 = arith.constant 0 : i32
    return %c0_i32, %c0_i32_0 : i32, i32
  }
  func.func @transform_3(%arg0: i32) -> (i32, i32, i32) {
    %c0_i32 = arith.constant 0 : i32
    %c0_i32_0 = arith.constant 0 : i32
    %c0_i32_1 = arith.constant 0 : i32
    return %arg0, %c0_i32, %c0_i32_0 : i32, i32, i32
  }
}

module attributes {stable_mosaic.version = 11 : i64} {
  func.func @_conv_tap_kernel(%arg0: i32, %arg1: memref<1x25x64xbf16, #tpu.memory_space<vmem>>, %arg2: memref<4x64x32xbf16, #tpu.memory_space<vmem>>, %arg3: memref<1x32xf32, #tpu.memory_space<vmem>>, %arg4: memref<1x19x32xbf16, #tpu.memory_space<vmem>>) attributes {dimension_semantics = [#tpu.dimension_semantics<parallel>], iteration_bounds = array<i64: 2>, scalar_prefetch = 0 : i64, scratch_operands = 0 : i64, tpu.core_type = #tpu.core_type<tc>, window_params = [{transform_indices = @transform_0, window_bounds = array<i64: 1, 25, 64>}, {pipeline_mode = #tpu.pipeline_mode<synchronous>, transform_indices = @transform_1, window_bounds = array<i64: 4, 64, 32>}, {pipeline_mode = #tpu.pipeline_mode<synchronous>, transform_indices = @transform_2, window_bounds = array<i64: 1, 32>}, {transform_indices = @transform_3, window_bounds = array<i64: 1, 19, 32>}]} {
    %cst = arith.constant 0.000000e+00 : f32
    %0 = vector.broadcast %cst : f32 to vector<19x32xf32>
    %c0 = arith.constant 0 : index
    %c0_0 = arith.constant 0 : index
    %c0_1 = arith.constant 0 : index
    %1 = vector.load %arg1[%c0, %c0_0, %c0_1] : memref<1x25x64xbf16, #tpu.memory_space<vmem>>, vector<1x19x64xbf16>
    %2 = vector.shape_cast %1 : vector<1x19x64xbf16> to vector<19x64xbf16>
    %c0_2 = arith.constant 0 : index
    %c0_3 = arith.constant 0 : index
    %c0_4 = arith.constant 0 : index
    %3 = vector.load %arg2[%c0_2, %c0_3, %c0_4] : memref<4x64x32xbf16, #tpu.memory_space<vmem>>, vector<1x64x32xbf16>
    %4 = vector.shape_cast %3 : vector<1x64x32xbf16> to vector<64x32xbf16>
    %cst_5 = arith.constant dense<0.000000e+00> : vector<19x32xf32>
    %5 = tpu.matmul %2, %4, %cst_5 {dimension_numbers = #tpu.dot_dimension_numbers<[1], [0], [0], [1], [0, 0, 1, 1], [], []>} : vector<19x64xbf16>, vector<64x32xbf16>, vector<19x32xf32> -> vector<19x32xf32>
    %6 = arith.addf %0, %5 : vector<19x32xf32>
    %c0_6 = arith.constant 0 : index
    %c1 = arith.constant 1 : index
    %c0_7 = arith.constant 0 : index
    %7 = vector.load %arg1[%c0_6, %c1, %c0_7] : memref<1x25x64xbf16, #tpu.memory_space<vmem>>, vector<1x19x64xbf16>
    %8 = vector.shape_cast %7 : vector<1x19x64xbf16> to vector<19x64xbf16>
    %c1_8 = arith.constant 1 : index
    %c0_9 = arith.constant 0 : index
    %c0_10 = arith.constant 0 : index
    %9 = vector.load %arg2[%c1_8, %c0_9, %c0_10] : memref<4x64x32xbf16, #tpu.memory_space<vmem>>, vector<1x64x32xbf16>
    %10 = vector.shape_cast %9 : vector<1x64x32xbf16> to vector<64x32xbf16>
    %cst_11 = arith.constant dense<0.000000e+00> : vector<19x32xf32>
    %11 = tpu.matmul %8, %10, %cst_11 {dimension_numbers = #tpu.dot_dimension_numbers<[1], [0], [0], [1], [0, 0, 1, 1], [], []>} : vector<19x64xbf16>, vector<64x32xbf16>, vector<19x32xf32> -> vector<19x32xf32>
    %12 = arith.addf %6, %11 : vector<19x32xf32>
    %c0_12 = arith.constant 0 : index
    %c5 = arith.constant 5 : index
    %c0_13 = arith.constant 0 : index
    %13 = vector.load %arg1[%c0_12, %c5, %c0_13] : memref<1x25x64xbf16, #tpu.memory_space<vmem>>, vector<1x19x64xbf16>
    %14 = vector.shape_cast %13 : vector<1x19x64xbf16> to vector<19x64xbf16>
    %c2 = arith.constant 2 : index
    %c0_14 = arith.constant 0 : index
    %c0_15 = arith.constant 0 : index
    %15 = vector.load %arg2[%c2, %c0_14, %c0_15] : memref<4x64x32xbf16, #tpu.memory_space<vmem>>, vector<1x64x32xbf16>
    %16 = vector.shape_cast %15 : vector<1x64x32xbf16> to vector<64x32xbf16>
    %cst_16 = arith.constant dense<0.000000e+00> : vector<19x32xf32>
    %17 = tpu.matmul %14, %16, %cst_16 {dimension_numbers = #tpu.dot_dimension_numbers<[1], [0], [0], [1], [0, 0, 1, 1], [], []>} : vector<19x64xbf16>, vector<64x32xbf16>, vector<19x32xf32> -> vector<19x32xf32>
    %18 = arith.addf %12, %17 : vector<19x32xf32>
    %c0_17 = arith.constant 0 : index
    %c6 = arith.constant 6 : index
    %c0_18 = arith.constant 0 : index
    %19 = vector.load %arg1[%c0_17, %c6, %c0_18] : memref<1x25x64xbf16, #tpu.memory_space<vmem>>, vector<1x19x64xbf16>
    %20 = vector.shape_cast %19 : vector<1x19x64xbf16> to vector<19x64xbf16>
    %c3 = arith.constant 3 : index
    %c0_19 = arith.constant 0 : index
    %c0_20 = arith.constant 0 : index
    %21 = vector.load %arg2[%c3, %c0_19, %c0_20] : memref<4x64x32xbf16, #tpu.memory_space<vmem>>, vector<1x64x32xbf16>
    %22 = vector.shape_cast %21 : vector<1x64x32xbf16> to vector<64x32xbf16>
    %cst_21 = arith.constant dense<0.000000e+00> : vector<19x32xf32>
    %23 = tpu.matmul %20, %22, %cst_21 {dimension_numbers = #tpu.dot_dimension_numbers<[1], [0], [0], [1], [0, 0, 1, 1], [], []>} : vector<19x64xbf16>, vector<64x32xbf16>, vector<19x32xf32> -> vector<19x32xf32>
    %24 = arith.addf %18, %23 : vector<19x32xf32>
    %c0_22 = arith.constant 0 : index
    %c0_23 = arith.constant 0 : index
    %25 = vector.load %arg3[%c0_22, %c0_23] : memref<1x32xf32, #tpu.memory_space<vmem>>, vector<1x32xf32>
    %26 = vector.broadcast %25 : vector<1x32xf32> to vector<19x32xf32>
    %27 = arith.addf %24, %26 : vector<19x32xf32>
    %cst_24 = arith.constant 0.000000e+00 : f32
    %28 = vector.broadcast %cst_24 : f32 to vector<19x32xf32>
    %29 = arith.maximumf %27, %28 : vector<19x32xf32>
    %30 = vector.shape_cast %29 : vector<19x32xf32> to vector<1x19x32xf32>
    %31 = arith.truncf %30 : vector<1x19x32xf32> to vector<1x19x32xbf16>
    %c0_25 = arith.constant 0 : index
    %c0_26 = arith.constant 0 : index
    %c0_27 = arith.constant 0 : index
    %32 = vector.load %arg4[%c0_25, %c0_26, %c0_27] : memref<1x19x32xbf16, #tpu.memory_space<vmem>>, vector<1x19x32xbf16>
    tpu.vector_store %arg4[%c0_25, %c0_26, %c0_27], %31 {strides = array<i32>} : memref<1x19x32xbf16, #tpu.memory_space<vmem>>, vector<1x19x32xbf16>,
    return
  }
  func.func @transform_0(%arg0: i32) -> (i32, i32, i32) {
    %c0_i32 = arith.constant 0 : i32
    %c0_i32_0 = arith.constant 0 : i32
    %c0_i32_1 = arith.constant 0 : i32
    return %arg0, %c0_i32, %c0_i32_0 : i32, i32, i32
  }
  func.func @transform_1(%arg0: i32) -> (i32, i32, i32) {
    %c0_i32 = arith.constant 0 : i32
    %c0_i32_0 = arith.constant 0 : i32
    %c0_i32_1 = arith.constant 0 : i32
    %c0_i32_2 = arith.constant 0 : i32
    return %c0_i32, %c0_i32_0, %c0_i32_1 : i32, i32, i32
  }
  func.func @transform_2(%arg0: i32) -> (i32, i32) {
    %c0_i32 = arith.constant 0 : i32
    %c0_i32_0 = arith.constant 0 : i32
    %c0_i32_1 = arith.constant 0 : i32
    return %c0_i32, %c0_i32_0 : i32, i32
  }
  func.func @transform_3(%arg0: i32) -> (i32, i32, i32) {
    %c0_i32 = arith.constant 0 : i32
    %c0_i32_0 = arith.constant 0 : i32
    %c0_i32_1 = arith.constant 0 : i32
    return %arg0, %c0_i32, %c0_i32_0 : i32, i32, i32
  }
}

module attributes {stable_mosaic.version = 11 : i64} {
  func.func @_conv_tap_kernel(%arg0: i32, %arg1: memref<1x9x128xbf16, #tpu.memory_space<vmem>>, %arg2: memref<4x128x32xbf16, #tpu.memory_space<vmem>>, %arg3: memref<1x32xf32, #tpu.memory_space<vmem>>, %arg4: memref<1x5x32xbf16, #tpu.memory_space<vmem>>) attributes {dimension_semantics = [#tpu.dimension_semantics<parallel>], iteration_bounds = array<i64: 2>, scalar_prefetch = 0 : i64, scratch_operands = 0 : i64, tpu.core_type = #tpu.core_type<tc>, window_params = [{transform_indices = @transform_0, window_bounds = array<i64: 1, 9, 128>}, {pipeline_mode = #tpu.pipeline_mode<synchronous>, transform_indices = @transform_1, window_bounds = array<i64: 4, 128, 32>}, {pipeline_mode = #tpu.pipeline_mode<synchronous>, transform_indices = @transform_2, window_bounds = array<i64: 1, 32>}, {transform_indices = @transform_3, window_bounds = array<i64: 1, 5, 32>}]} {
    %cst = arith.constant 0.000000e+00 : f32
    %0 = vector.broadcast %cst : f32 to vector<5x32xf32>
    %c0 = arith.constant 0 : index
    %c0_0 = arith.constant 0 : index
    %c0_1 = arith.constant 0 : index
    %1 = vector.load %arg1[%c0, %c0_0, %c0_1] : memref<1x9x128xbf16, #tpu.memory_space<vmem>>, vector<1x5x128xbf16>
    %2 = vector.shape_cast %1 : vector<1x5x128xbf16> to vector<5x128xbf16>
    %c0_2 = arith.constant 0 : index
    %c0_3 = arith.constant 0 : index
    %c0_4 = arith.constant 0 : index
    %3 = vector.load %arg2[%c0_2, %c0_3, %c0_4] : memref<4x128x32xbf16, #tpu.memory_space<vmem>>, vector<1x128x32xbf16>
    %4 = vector.shape_cast %3 : vector<1x128x32xbf16> to vector<128x32xbf16>
    %cst_5 = arith.constant dense<0.000000e+00> : vector<5x32xf32>
    %5 = tpu.matmul %2, %4, %cst_5 {dimension_numbers = #tpu.dot_dimension_numbers<[1], [0], [0], [1], [0, 0, 1, 1], [], []>} : vector<5x128xbf16>, vector<128x32xbf16>, vector<5x32xf32> -> vector<5x32xf32>
    %6 = arith.addf %0, %5 : vector<5x32xf32>
    %c0_6 = arith.constant 0 : index
    %c1 = arith.constant 1 : index
    %c0_7 = arith.constant 0 : index
    %7 = vector.load %arg1[%c0_6, %c1, %c0_7] : memref<1x9x128xbf16, #tpu.memory_space<vmem>>, vector<1x5x128xbf16>
    %8 = vector.shape_cast %7 : vector<1x5x128xbf16> to vector<5x128xbf16>
    %c1_8 = arith.constant 1 : index
    %c0_9 = arith.constant 0 : index
    %c0_10 = arith.constant 0 : index
    %9 = vector.load %arg2[%c1_8, %c0_9, %c0_10] : memref<4x128x32xbf16, #tpu.memory_space<vmem>>, vector<1x128x32xbf16>
    %10 = vector.shape_cast %9 : vector<1x128x32xbf16> to vector<128x32xbf16>
    %cst_11 = arith.constant dense<0.000000e+00> : vector<5x32xf32>
    %11 = tpu.matmul %8, %10, %cst_11 {dimension_numbers = #tpu.dot_dimension_numbers<[1], [0], [0], [1], [0, 0, 1, 1], [], []>} : vector<5x128xbf16>, vector<128x32xbf16>, vector<5x32xf32> -> vector<5x32xf32>
    %12 = arith.addf %6, %11 : vector<5x32xf32>
    %c0_12 = arith.constant 0 : index
    %c3 = arith.constant 3 : index
    %c0_13 = arith.constant 0 : index
    %13 = vector.load %arg1[%c0_12, %c3, %c0_13] : memref<1x9x128xbf16, #tpu.memory_space<vmem>>, vector<1x5x128xbf16>
    %14 = vector.shape_cast %13 : vector<1x5x128xbf16> to vector<5x128xbf16>
    %c2 = arith.constant 2 : index
    %c0_14 = arith.constant 0 : index
    %c0_15 = arith.constant 0 : index
    %15 = vector.load %arg2[%c2, %c0_14, %c0_15] : memref<4x128x32xbf16, #tpu.memory_space<vmem>>, vector<1x128x32xbf16>
    %16 = vector.shape_cast %15 : vector<1x128x32xbf16> to vector<128x32xbf16>
    %cst_16 = arith.constant dense<0.000000e+00> : vector<5x32xf32>
    %17 = tpu.matmul %14, %16, %cst_16 {dimension_numbers = #tpu.dot_dimension_numbers<[1], [0], [0], [1], [0, 0, 1, 1], [], []>} : vector<5x128xbf16>, vector<128x32xbf16>, vector<5x32xf32> -> vector<5x32xf32>
    %18 = arith.addf %12, %17 : vector<5x32xf32>
    %c0_17 = arith.constant 0 : index
    %c4 = arith.constant 4 : index
    %c0_18 = arith.constant 0 : index
    %19 = vector.load %arg1[%c0_17, %c4, %c0_18] : memref<1x9x128xbf16, #tpu.memory_space<vmem>>, vector<1x5x128xbf16>
    %20 = vector.shape_cast %19 : vector<1x5x128xbf16> to vector<5x128xbf16>
    %c3_19 = arith.constant 3 : index
    %c0_20 = arith.constant 0 : index
    %c0_21 = arith.constant 0 : index
    %21 = vector.load %arg2[%c3_19, %c0_20, %c0_21] : memref<4x128x32xbf16, #tpu.memory_space<vmem>>, vector<1x128x32xbf16>
    %22 = vector.shape_cast %21 : vector<1x128x32xbf16> to vector<128x32xbf16>
    %cst_22 = arith.constant dense<0.000000e+00> : vector<5x32xf32>
    %23 = tpu.matmul %20, %22, %cst_22 {dimension_numbers = #tpu.dot_dimension_numbers<[1], [0], [0], [1], [0, 0, 1, 1], [], []>} : vector<5x128xbf16>, vector<128x32xbf16>, vector<5x32xf32> -> vector<5x32xf32>
    %24 = arith.addf %18, %23 : vector<5x32xf32>
    %c0_23 = arith.constant 0 : index
    %c0_24 = arith.constant 0 : index
    %25 = vector.load %arg3[%c0_23, %c0_24] : memref<1x32xf32, #tpu.memory_space<vmem>>, vector<1x32xf32>
    %26 = vector.broadcast %25 : vector<1x32xf32> to vector<5x32xf32>
    %27 = arith.addf %24, %26 : vector<5x32xf32>
    %cst_25 = arith.constant 0.000000e+00 : f32
    %28 = vector.broadcast %cst_25 : f32 to vector<5x32xf32>
    %29 = arith.maximumf %27, %28 : vector<5x32xf32>
    %30 = vector.shape_cast %29 : vector<5x32xf32> to vector<1x5x32xf32>
    %31 = arith.truncf %30 : vector<1x5x32xf32> to vector<1x5x32xbf16>
    %c0_26 = arith.constant 0 : index
    %c0_27 = arith.constant 0 : index
    %c0_28 = arith.constant 0 : index
    %32 = vector.load %arg4[%c0_26, %c0_27, %c0_28] : memref<1x5x32xbf16, #tpu.memory_space<vmem>>, vector<1x5x32xbf16>
    tpu.vector_store %arg4[%c0_26, %c0_27, %c0_28], %31 {strides = array<i32>} : memref<1x5x32xbf16, #tpu.memory_space<vmem>>, vector<1x5x32xbf16>,
    return
  }
  func.func @transform_0(%arg0: i32) -> (i32, i32, i32) {
    %c0_i32 = arith.constant 0 : i32
    %c0_i32_0 = arith.constant 0 : i32
    %c0_i32_1 = arith.constant 0 : i32
    return %arg0, %c0_i32, %c0_i32_0 : i32, i32, i32
  }
  func.func @transform_1(%arg0: i32) -> (i32, i32, i32) {
    %c0_i32 = arith.constant 0 : i32
    %c0_i32_0 = arith.constant 0 : i32
    %c0_i32_1 = arith.constant 0 : i32
    %c0_i32_2 = arith.constant 0 : i32
    return %c0_i32, %c0_i32_0, %c0_i32_1 : i32, i32, i32
  }
  func.func @transform_2(%arg0: i32) -> (i32, i32) {
    %c0_i32 = arith.constant 0 : i32
    %c0_i32_0 = arith.constant 0 : i32
    %c0_i32_1 = arith.constant 0 : i32
    return %c0_i32, %c0_i32_0 : i32, i32
  }
  func.func @transform_3(%arg0: i32) -> (i32, i32, i32) {
    %c0_i32 = arith.constant 0 : i32
    %c0_i32_0 = arith.constant 0 : i32
    %c0_i32_1 = arith.constant 0 : i32
    return %arg0, %c0_i32, %c0_i32_0 : i32, i32, i32
  }
}

module attributes {stable_mosaic.version = 11 : i64} {
  func.func @_conv_tap_kernel(%arg0: i32, %arg1: memref<1x4x128xbf16, #tpu.memory_space<vmem>>, %arg2: memref<4x128x32xbf16, #tpu.memory_space<vmem>>, %arg3: memref<1x32xf32, #tpu.memory_space<vmem>>, %arg4: memref<1x1x32xbf16, #tpu.memory_space<vmem>>) attributes {dimension_semantics = [#tpu.dimension_semantics<parallel>], iteration_bounds = array<i64: 2>, scalar_prefetch = 0 : i64, scratch_operands = 0 : i64, tpu.core_type = #tpu.core_type<tc>, window_params = [{transform_indices = @transform_0, window_bounds = array<i64: 1, 4, 128>}, {pipeline_mode = #tpu.pipeline_mode<synchronous>, transform_indices = @transform_1, window_bounds = array<i64: 4, 128, 32>}, {pipeline_mode = #tpu.pipeline_mode<synchronous>, transform_indices = @transform_2, window_bounds = array<i64: 1, 32>}, {transform_indices = @transform_3, window_bounds = array<i64: 1, 1, 32>}]} {
    %cst = arith.constant 0.000000e+00 : f32
    %0 = vector.broadcast %cst : f32 to vector<1x32xf32>
    %c0 = arith.constant 0 : index
    %c0_0 = arith.constant 0 : index
    %c0_1 = arith.constant 0 : index
    %1 = vector.load %arg1[%c0, %c0_0, %c0_1] : memref<1x4x128xbf16, #tpu.memory_space<vmem>>, vector<1x1x128xbf16>
    %2 = vector.shape_cast %1 : vector<1x1x128xbf16> to vector<1x128xbf16>
    %c0_2 = arith.constant 0 : index
    %c0_3 = arith.constant 0 : index
    %c0_4 = arith.constant 0 : index
    %3 = vector.load %arg2[%c0_2, %c0_3, %c0_4] : memref<4x128x32xbf16, #tpu.memory_space<vmem>>, vector<1x128x32xbf16>
    %4 = vector.shape_cast %3 : vector<1x128x32xbf16> to vector<128x32xbf16>
    %cst_5 = arith.constant dense<0.000000e+00> : vector<1x32xf32>
    %5 = tpu.matmul %2, %4, %cst_5 {dimension_numbers = #tpu.dot_dimension_numbers<[1], [0], [0], [1], [0, 0, 1, 1], [], []>} : vector<1x128xbf16>, vector<128x32xbf16>, vector<1x32xf32> -> vector<1x32xf32>
    %6 = arith.addf %0, %5 : vector<1x32xf32>
    %c0_6 = arith.constant 0 : index
    %c1 = arith.constant 1 : index
    %c0_7 = arith.constant 0 : index
    %7 = vector.load %arg1[%c0_6, %c1, %c0_7] : memref<1x4x128xbf16, #tpu.memory_space<vmem>>, vector<1x1x128xbf16>
    %8 = vector.shape_cast %7 : vector<1x1x128xbf16> to vector<1x128xbf16>
    %c1_8 = arith.constant 1 : index
    %c0_9 = arith.constant 0 : index
    %c0_10 = arith.constant 0 : index
    %9 = vector.load %arg2[%c1_8, %c0_9, %c0_10] : memref<4x128x32xbf16, #tpu.memory_space<vmem>>, vector<1x128x32xbf16>
    %10 = vector.shape_cast %9 : vector<1x128x32xbf16> to vector<128x32xbf16>
    %cst_11 = arith.constant dense<0.000000e+00> : vector<1x32xf32>
    %11 = tpu.matmul %8, %10, %cst_11 {dimension_numbers = #tpu.dot_dimension_numbers<[1], [0], [0], [1], [0, 0, 1, 1], [], []>} : vector<1x128xbf16>, vector<128x32xbf16>, vector<1x32xf32> -> vector<1x32xf32>
    %12 = arith.addf %6, %11 : vector<1x32xf32>
    %c0_12 = arith.constant 0 : index
    %c2 = arith.constant 2 : index
    %c0_13 = arith.constant 0 : index
    %13 = vector.load %arg1[%c0_12, %c2, %c0_13] : memref<1x4x128xbf16, #tpu.memory_space<vmem>>, vector<1x1x128xbf16>
    %14 = vector.shape_cast %13 : vector<1x1x128xbf16> to vector<1x128xbf16>
    %c2_14 = arith.constant 2 : index
    %c0_15 = arith.constant 0 : index
    %c0_16 = arith.constant 0 : index
    %15 = vector.load %arg2[%c2_14, %c0_15, %c0_16] : memref<4x128x32xbf16, #tpu.memory_space<vmem>>, vector<1x128x32xbf16>
    %16 = vector.shape_cast %15 : vector<1x128x32xbf16> to vector<128x32xbf16>
    %cst_17 = arith.constant dense<0.000000e+00> : vector<1x32xf32>
    %17 = tpu.matmul %14, %16, %cst_17 {dimension_numbers = #tpu.dot_dimension_numbers<[1], [0], [0], [1], [0, 0, 1, 1], [], []>} : vector<1x128xbf16>, vector<128x32xbf16>, vector<1x32xf32> -> vector<1x32xf32>
    %18 = arith.addf %12, %17 : vector<1x32xf32>
    %c0_18 = arith.constant 0 : index
    %c3 = arith.constant 3 : index
    %c0_19 = arith.constant 0 : index
    %19 = vector.load %arg1[%c0_18, %c3, %c0_19] : memref<1x4x128xbf16, #tpu.memory_space<vmem>>, vector<1x1x128xbf16>
    %20 = vector.shape_cast %19 : vector<1x1x128xbf16> to vector<1x128xbf16>
    %c3_20 = arith.constant 3 : index
    %c0_21 = arith.constant 0 : index
    %c0_22 = arith.constant 0 : index
    %21 = vector.load %arg2[%c3_20, %c0_21, %c0_22] : memref<4x128x32xbf16, #tpu.memory_space<vmem>>, vector<1x128x32xbf16>
    %22 = vector.shape_cast %21 : vector<1x128x32xbf16> to vector<128x32xbf16>
    %cst_23 = arith.constant dense<0.000000e+00> : vector<1x32xf32>
    %23 = tpu.matmul %20, %22, %cst_23 {dimension_numbers = #tpu.dot_dimension_numbers<[1], [0], [0], [1], [0, 0, 1, 1], [], []>} : vector<1x128xbf16>, vector<128x32xbf16>, vector<1x32xf32> -> vector<1x32xf32>
    %24 = arith.addf %18, %23 : vector<1x32xf32>
    %c0_24 = arith.constant 0 : index
    %c0_25 = arith.constant 0 : index
    %25 = vector.load %arg3[%c0_24, %c0_25] : memref<1x32xf32, #tpu.memory_space<vmem>>, vector<1x32xf32>
    %26 = arith.addf %24, %25 : vector<1x32xf32>
    %cst_26 = arith.constant 0.000000e+00 : f32
    %27 = vector.broadcast %cst_26 : f32 to vector<1x32xf32>
    %28 = arith.maximumf %26, %27 : vector<1x32xf32>
    %29 = vector.shape_cast %28 : vector<1x32xf32> to vector<1x1x32xf32>
    %30 = arith.truncf %29 : vector<1x1x32xf32> to vector<1x1x32xbf16>
    %c0_27 = arith.constant 0 : index
    %c0_28 = arith.constant 0 : index
    %c0_29 = arith.constant 0 : index
    %31 = vector.load %arg4[%c0_27, %c0_28, %c0_29] : memref<1x1x32xbf16, #tpu.memory_space<vmem>>, vector<1x1x32xbf16>
    tpu.vector_store %arg4[%c0_27, %c0_28, %c0_29], %30 {strides = array<i32>} : memref<1x1x32xbf16, #tpu.memory_space<vmem>>, vector<1x1x32xbf16>,
    return
  }
  func.func @transform_0(%arg0: i32) -> (i32, i32, i32) {
    %c0_i32 = arith.constant 0 : i32
    %c0_i32_0 = arith.constant 0 : i32
    %c0_i32_1 = arith.constant 0 : i32
    return %arg0, %c0_i32, %c0_i32_0 : i32, i32, i32
  }
  func.func @transform_1(%arg0: i32) -> (i32, i32, i32) {
    %c0_i32 = arith.constant 0 : i32
    %c0_i32_0 = arith.constant 0 : i32
    %c0_i32_1 = arith.constant 0 : i32
    %c0_i32_2 = arith.constant 0 : i32
    return %c0_i32, %c0_i32_0, %c0_i32_1 : i32, i32, i32
  }
  func.func @transform_2(%arg0: i32) -> (i32, i32) {
    %c0_i32 = arith.constant 0 : i32
    %c0_i32_0 = arith.constant 0 : i32
    %c0_i32_1 = arith.constant 0 : i32
    return %c0_i32, %c0_i32_0 : i32, i32
  }
  func.func @transform_3(%arg0: i32) -> (i32, i32, i32) {
    %c0_i32 = arith.constant 0 : i32
    %c0_i32_0 = arith.constant 0 : i32
    %c0_i32_1 = arith.constant 0 : i32
    return %arg0, %c0_i32, %c0_i32_0 : i32, i32, i32
  }
}

module attributes {stable_mosaic.version = 11 : i64} {
  func.func @_pool_fc_kernel(%arg0: i32, %arg1: memref<2x1x32xbf16, #tpu.memory_space<vmem>>, %arg2: memref<32x8xbf16, #tpu.memory_space<vmem>>, %arg3: memref<1x8xf32, #tpu.memory_space<vmem>>, %arg4: memref<2x8xf32, #tpu.memory_space<vmem>>) attributes {dimension_semantics = [#tpu.dimension_semantics<arbitrary>], iteration_bounds = array<i64: 1>, scalar_prefetch = 0 : i64, scratch_operands = 0 : i64, tpu.core_type = #tpu.core_type<tc>, window_params = [{pipeline_mode = #tpu.pipeline_mode<synchronous>, transform_indices = @transform_0, window_bounds = array<i64: 2, 1, 32>}, {pipeline_mode = #tpu.pipeline_mode<synchronous>, transform_indices = @transform_1, window_bounds = array<i64: 32, 8>}, {pipeline_mode = #tpu.pipeline_mode<synchronous>, transform_indices = @transform_2, window_bounds = array<i64: 1, 8>}, {pipeline_mode = #tpu.pipeline_mode<synchronous>, transform_indices = @transform_3, window_bounds = array<i64: 2, 8>}]} {
    %c0 = arith.constant 0 : index
    %c0_0 = arith.constant 0 : index
    %c0_1 = arith.constant 0 : index
    %0 = vector.load %arg1[%c0, %c0_0, %c0_1] : memref<2x1x32xbf16, #tpu.memory_space<vmem>>, vector<2x1x32xbf16>
    %1 = arith.extf %0 : vector<2x1x32xbf16> to vector<2x1x32xf32>
    %cst = arith.constant dense<0.000000e+00> : vector<2x32xf32>
    %2 = vector.multi_reduction <add>, %1, %cst [1] : vector<2x1x32xf32> to vector<2x32xf32>
    %cst_2 = arith.constant 1.000000e+00 : f32
    %3 = vector.broadcast %cst_2 : f32 to vector<2x32xf32>
    %4 = arith.mulf %2, %3 : vector<2x32xf32>
    %5 = arith.truncf %4 : vector<2x32xf32> to vector<2x32xbf16>
    %c0_3 = arith.constant 0 : index
    %c0_4 = arith.constant 0 : index
    %6 = vector.load %arg2[%c0_3, %c0_4] : memref<32x8xbf16, #tpu.memory_space<vmem>>, vector<32x8xbf16>
    %cst_5 = arith.constant dense<0.000000e+00> : vector<2x8xf32>
    %7 = tpu.matmul %5, %6, %cst_5 {dimension_numbers = #tpu.dot_dimension_numbers<[1], [0], [0], [1], [0, 0, 1, 1], [], []>} : vector<2x32xbf16>, vector<32x8xbf16>, vector<2x8xf32> -> vector<2x8xf32>
    %c0_6 = arith.constant 0 : index
    %c0_7 = arith.constant 0 : index
    %8 = vector.load %arg3[%c0_6, %c0_7] : memref<1x8xf32, #tpu.memory_space<vmem>>, vector<1x8xf32>
    %9 = vector.broadcast %8 : vector<1x8xf32> to vector<2x8xf32>
    %10 = arith.addf %7, %9 : vector<2x8xf32>
    %c0_8 = arith.constant 0 : index
    %c0_9 = arith.constant 0 : index
    %11 = vector.load %arg4[%c0_8, %c0_9] : memref<2x8xf32, #tpu.memory_space<vmem>>, vector<2x8xf32>
    tpu.vector_store %arg4[%c0_8, %c0_9], %10 {strides = array<i32>} : memref<2x8xf32, #tpu.memory_space<vmem>>, vector<2x8xf32>,
    return
  }
  func.func @transform_0(%arg0: i32) -> (i32, i32, i32) {
    %c0_i32 = arith.constant 0 : i32
    %c0_i32_0 = arith.constant 0 : i32
    %c0_i32_1 = arith.constant 0 : i32
    %c0_i32_2 = arith.constant 0 : i32
    return %c0_i32, %c0_i32_0, %c0_i32_1 : i32, i32, i32
  }
  func.func @transform_1(%arg0: i32) -> (i32, i32) {
    %c0_i32 = arith.constant 0 : i32
    %c0_i32_0 = arith.constant 0 : i32
    %c0_i32_1 = arith.constant 0 : i32
    return %c0_i32, %c0_i32_0 : i32, i32
  }
  func.func @transform_2(%arg0: i32) -> (i32, i32) {
    %c0_i32 = arith.constant 0 : i32
    %c0_i32_0 = arith.constant 0 : i32
    %c0_i32_1 = arith.constant 0 : i32
    return %c0_i32, %c0_i32_0 : i32, i32
  }
  func.func @transform_3(%arg0: i32) -> (i32, i32) {
    %c0_i32 = arith.constant 0 : i32
    %c0_i32_0 = arith.constant 0 : i32
    %c0_i32_1 = arith.constant 0 : i32
    return %c0_i32, %c0_i32_0 : i32, i32
  }
}

</mosaic_0001>

<bundles_post_ra>
// kernel: _lambda_.6
= control target key start
LH: loop header
LB: loop body
LE: loop exit
PB: predicated region body
PF: predicated region fallthrough
CT: control target
= control target key end

     0   :  { %s3903_s12 = smov 0   ;;  %s4388_s0 = inlined_call_operand.vmem [shape: bf16[2,352,28], index: 0, kind: input, shape index: {}]   ;;  %s4389_s1 = inlined_call_operand.vmem [shape: bf16[7,28,8], index: 1, kind: input, shape index: {}]   ;;  %s4390_s2 = inlined_call_operand.vmem [shape: f32[1,8], index: 2, kind: input, shape index: {}]   ;;  %s4391_s3 = inlined_call_operand.vmem [shape: bf16[2,256,8], index: 3, kind: output, shape index: {}]  }
   0x1 LB: > { %s2850_s13 = sadd.s32 4294967295, %s3881_s12   ;;  %p2854_p0 = scmp.ge.s32.totalorder %s3881_s12, 1  ;;  %s3881_s12 = sphi %s3903_s12, %s13_s12  }
   0x2   : > { %p137_p1 = scmp.lt.s32.totalorder %s3881_s12, 3 }
   0x4   : > { %p138_p2 = pnand %p2854_p0, %p137_p1 }
   0x5   : > { %v3764_v0 = vld [vmem:[%s4389_s1 + $0x10] sm:$0xff] (!%p138_p2)   ;;  %vm355_vm0 = vcmask (!%p138_p2), 1045504   ;;  %p161_p3 = scmp.lt.s32.totalorder (!%p138_p2), %s2850_s13, 1  ;;  %v3766_v2 = vld [vmem:[%s4389_s1 + $0x18] sm:$0x3f] (!%p138_p2)   ;;  %v3771_v5 = vld [vmem:[%s4389_s1] sm:$0xff] (!%p138_p2)  }
   0x6   : > { %141 = sbr.rel (%p138_p2) target bundleno = 459 (0x1cb), region = 32  ;;  %v3917_v1 = vld [vmem:[%s4389_s1 + $0x30] sm:$0xff] (!%p138_p2)   ;;  %3299 = vmatprep.subr.bf16.mxu1 (!%p138_p2), %v3764_v0  ;;  %v3926_v3 = vld [vmem:[%s4389_s1 + $0x38] sm:$0x3f] (!%p138_p2)   ;;  %v357_v4 = vsel (!%p138_p2), %vm355_vm0, %v3766_v2, 0  ;;  %v3773_v7 = vld [vmem:[%s4389_s1 + $0x40] sm:$0xff] (!%p138_p2)  }
   0x7   : > { %3407 = vmatprep.subr.bf16.mxu0 (!%p138_p2), %v3917_v1  ;;  %3300 = vmatpush3.bf16.msra.mxu1 (!%p138_p2), %v3764_v0  ;;  %v3940_v6 = vsel (!%p138_p2), %vm355_vm0, %v3926_v3, 0  ;;  %vm306_vm1 = vcmask (!%p138_p2), 228352   ;;  %v3790_v9 = vld [vmem:[%s4389_s1 + $0x8] sm:$0x3f] (!%p138_p2)   ;;  %v3792_v16 = vld [vmem:[%s4389_s1 + $0x50] sm:$0xff] (!%p138_p2)   ;;  %v3807_v35 = vld [vmem:[%s4389_s1 + $0x20] sm:$0xff] (!%p138_p2)  }
   0x8   : > { %3408 = vmatpush3.bf16.msra.mxu0 (!%p138_p2), %v3917_v1  ;;  %3747 = vmatprep.subr.msk.bf16.mxu1 (!%p138_p2), %vm355_vm0, %v3766_v2  ;;  %v3782_v11 = vld [vmem:[%s4389_s1 + $0x48] sm:$0x3f] (!%p138_p2)   ;;  %v540_v17 = vsel (!%p138_p2), %vm355_vm0, %v3790_v9, 0  ;;  %v3809_v36 = vld [vmem:[%s4389_s1 + $0x58] sm:$0x3f] (!%p138_p2)   ;;  %v3819_v43 = vld [vmem:[%s4389_s1 + $0x60] sm:$0xff] (!%p138_p2)  }
   0x9   : > { %3750 = vmatprep.subr.msk.bf16.mxu0 (!%p138_p2), %vm355_vm0, %v3926_v3  ;;  %v1624_v19 = vsel (!%p138_p2), %vm355_vm0, %v3782_v11, 0  ;;  %v1996_v38 = vsel (!%p138_p2), %vm355_vm0, %v3809_v36, 0  ;;  %v3817_v53 = vld [vmem:[%s4389_s1 + $0x28] sm:$0x3f] (!%p138_p2)   ;;  %vm2762_vm2 = vcmask (!%p138_p2), 60416  }
   0xa   : > { %v880_v54 = vsel (!%p138_p2), %vm355_vm0, %v3817_v53, 0  ;;  %v3830_v63 = vld [vmem:[%s4389_s1 + $0x68] sm:$0x3f] (!%p138_p2)  }
   0xb   : > { %3302 = vmatpush3.bf16.msra.mxu1 (!%p138_p2), %v357_v4  ;;  %v2368_v0 = vsel (!%p138_p2), %vm355_vm0, %v3830_v63, 0 }
   0xc   : > { %3410 = vmatpush3.bf16.msra.mxu0 (!%p138_p2), %v3940_v6  ;;  %3335 = vmatprep.subr.bf16.mxu1 (!%p138_p2), %v3771_v5 }
   0xd   : > { %s4393_s13 = smov (!%p161_p3, %s2850_s13), 1  ;;  %3443 = vmatprep.subr.bf16.mxu0 %v3773_v7 }
   0xe   : > { %s3755_s26 = smul.u32 176, %s4393_s13  ;;  %s3140_s23 = sshll.u32 %s4393_s13, 7 }
  0x10   : > { %s3950_s29 = scalar_lea.vmem %s4388_s0, %s3755_s26  ;;  %s4284_s26 = scalar_lea.vmem %s4391_s3, %s3140_s23 }
  0x11   : > { %v3953_v8 = vld [vmem:[%s3950_s29 + $0x8] sm:$0xff]   ;;  %v3769_v10 = vld [vmem:[%s3950_s29 + $0x18] sm:$0xff]   ;;  %v3965_v12 = vld [vmem:[%s3950_s29 + $0x10] sm:$0xff]  }
  0x12   : > { %3303 = vmatprep.mubr.msk.bf16.mxu1 %vm306_vm1, %v3953_v8  ;;  %3411 = vmatprep.mubr.msk.bf16.mxu0 %vm306_vm1, %v3769_v10  ;;  %v3772_v13 = vld [vmem:[%s3950_s29 + $0x20] sm:$0xff]   ;;  %v3972_v14 = vld [vmem:[%s3950_s29 + $0x18] sm:$0xff]   ;;  %v3775_v15 = vld [vmem:[%s3950_s29 + $0x28] sm:$0xff]  }
  0x13   : > { %3304 = vmatmul.mubr.msk.bf16.vlgmr.msra.gmra.mrb[0].mxu1 %vm306_vm1, %v3965_v12  ;;  %3412 = vmatmul.mubr.msk.bf16.vlgmr.msra.gmra.mrb[0].mxu0 %vm306_vm1, %v3772_v13  ;;  %v3984_v18 = vld [vmem:[%s3950_s29 + $0x20] sm:$0xff]   ;;  %v3777_v20 = vld [vmem:[%s3950_s29 + $0x30] sm:$0xff]   ;;  %v3991_v21 = vld [vmem:[%s3950_s29 + $0x28] sm:$0xff]  }
  0x14   : > { %3336 = vmatpush3.bf16.msra.mxu1 %v3771_v5  ;;  %3444 = vmatpush3.bf16.msra.mxu0 %v3773_v7  ;;  %v3779_v22 = vld [vmem:[%s3950_s29 + $0x38] sm:$0xff]   ;;  %v4001_v23 = vld [vmem:[%s3950_s29 + $0x30] sm:$0xff]   ;;  %v3781_v24 = vld [vmem:[%s3950_s29 + $0x40] sm:$0xff]  }
  0x15   : > { %3307 = vmatprep.mubr.msk.bf16.mxu1 %vm306_vm1, %v3972_v14  ;;  %3415 = vmatprep.mubr.msk.bf16.mxu0 %vm306_vm1, %v3775_v15  ;;  %v4005_v25 = vld [vmem:[%s3950_s29 + $0x38] sm:$0xff]   ;;  %v3784_v26 = vld [vmem:[%s3950_s29 + $0x48] sm:$0xff]   ;;  %v4015_v27 = vld [vmem:[%s3950_s29 + $0x40] sm:$0xff]  }
  0x16   : > { %3752 = vmatprep.subr.msk.bf16.mxu0 %vm355_vm0, %v3782_v11  ;;  %3748 = vmatprep.subr.msk.bf16.mxu1 %vm355_vm0, %v3790_v9  ;;  %v3786_v28 = vld [vmem:[%s3950_s29 + $0x50] sm:$0xff]   ;;  %v4019_v29 = vld [vmem:[%s3950_s29 + $0x48] sm:$0xff]   ;;  %v3788_v30 = vld [vmem:[%s3950_s29 + $0x20] sm:$0xff]  }
  0x17   : > { %v4029_v31 = vld [vmem:[%s3950_s29 + $0x50] sm:$0xff]   ;;  %v3791_v32 = vld [vmem:[%s3950_s29 + $0x28] sm:$0xff]   ;;  %v4033_v33 = vld [vmem:[%s3950_s29 + $0x58] sm:$0xff]  }
  0x18   : > { %3338 = vmatpush3.bf16.msra.mxu1 %v540_v17  ;;  %3446 = vmatpush3.bf16.msra.mxu0 %v1624_v19  ;;  %v3794_v34 = vld [vmem:[%s3950_s29 + $0x30] sm:$0xff]   ;;  %v4049_v37 = vld [vmem:[%s3950_s29 + $0x60] sm:$0xff]   ;;  %v3796_v39 = vld [vmem:[%s3950_s29 + $0x38] sm:$0xff]  }
  0x19   : > { %3479 = vmatprep.subr.bf16.mxu0 %v3792_v16  ;;  %3371 = vmatprep.subr.bf16.mxu1 %v3807_v35  ;;  %v4055_v40 = vld [vmem:[%s3950_s29 + $0x68] sm:$0xff]   ;;  %v3798_v41 = vld [vmem:[%s3950_s29 + $0x40] sm:$0xff]   ;;  %v4065_v42 = vld [vmem:[%s3950_s29 + $0x70] sm:$0xff]  }
  0x1a   : > { %v3800_v44 = vld [vmem:[%s3950_s29 + $0x48] sm:$0xff]   ;;  %v4072_v45 = vld [vmem:[%s3950_s29 + $0x78] sm:$0xff]   ;;  %v3802_v46 = vld [vmem:[%s3950_s29 + $0x50] sm:$0xff]  }
  0x1b   : > { %3308 = vmatmul.mubr.msk.bf16.gmra.mrb[4].mxu1 %vm306_vm1, %v3984_v18  ;;  %3416 = vmatmul.mubr.msk.bf16.gmra.mrb[4].mxu0 %vm306_vm1, %v3777_v20  ;;  %v3803_v47 = vld [vmem:[%s3950_s29 + $0x80] sm:$0xff]   ;;  %v3804_v48 = vld [vmem:[%s3950_s29 + $0x58] sm:$0xff]   ;;  %v3808_v51 = vld [vmem:[%s3950_s29 + $0x68] sm:$0xff]  }
  0x1c   : > { %3311 = vmatprep.mubr.msk.bf16.mxu1 %vm306_vm1, %v3991_v21  ;;  %3419 = vmatprep.mubr.msk.bf16.mxu0 %vm306_vm1, %v3779_v22  ;;  %v3805_v49 = vld [vmem:[%s3950_s29] sm:$0xff]   ;;  %v3810_v52 = vld [vmem:[%s3950_s29 + $0x70] sm:$0xff]   ;;  %v3811_v55 = vld [vmem:[%s3950_s29 + $0x78] sm:$0xff]  }
  0x1d   : > { %v3806_v50 = vld [vmem:[%s3950_s29 + $0x60] sm:$0xff]   ;;  %v3813_v57 = vld [vmem:[%s3950_s29 + $0x88] sm:$0xff]   ;;  %v3814_v58 = vld [vmem:[%s3950_s29 + $0x90] sm:$0xff]  }
  0x1e   : > { %v3812_v56 = vld [vmem:[%s3950_s29 + $0x80] sm:$0xff]   ;;  %v3815_v59 = vld [vmem:[%s3950_s29 + $0x98] sm:$0xff]   ;;  %v3816_v60 = vld [vmem:[%s3950_s29 + $0x28] sm:$0xff]  }
  0x1f   : > { %v3818_v61 = vld [vmem:[%s3950_s29 + $0x30] sm:$0xff]   ;;  %v3820_v62 = vld [vmem:[%s3950_s29 + $0x38] sm:$0xff]   ;;  %v3821_v2 = vld [vmem:[%s3950_s29 + $0x40] sm:$0xff]  }
  0x20   : > { %v3822_v4 = vld [vmem:[%s3950_s29 + $0x48] sm:$0xff]   ;;  %v3823_v5 = vld [vmem:[%s3950_s29 + $0x50] sm:$0xff]   ;;  %v3824_v7 = vld [vmem:[%s3950_s29 + $0x58] sm:$0xff]  }
  0x21   : > { %v3826_v9 = vld [vmem:[%s3950_s29 + $0x10] sm:$0xff]   ;;  %v3827_v10 = vld [vmem:[%s3950_s29 + $0x68] sm:$0xff]   ;;  %v3828_v11 = vld [vmem:[%s3950_s29 + $0x18] sm:$0xff]  }
  0x22   : > { %v3831_v13 = vld [vmem:[%s3950_s29 + $0x20] sm:$0xff]   ;;  %v3833_v15 = vld [vmem:[%s3950_s29 + $0x28] sm:$0xff]   ;;  %v3835_v17 = vld [vmem:[%s3950_s29 + $0x30] sm:$0xff]  }
  0x23   : > { %3312 = vmatmul.mubr.msk.bf16.gmra.mrb[8].mxu1 %vm306_vm1, %v4001_v23  ;;  %3420 = vmatmul.mubr.msk.bf16.gmra.mrb[8].mxu0 %vm306_vm1, %v3781_v24  ;;  %v3839_v19 = vld [vmem:[%s3950_s29 + $0x40] sm:$0xff]   ;;  %v3840_v20 = vld [vmem:[%s3950_s29 + $0x98] sm:$0xff]   ;;  %v3843_v22 = vld [vmem:[%s3950_s29 + $0x50] sm:$0xff]  }
  0x24   : > { %3315 = vmatprep.mubr.msk.bf16.mxu1 %vm306_vm1, %v4005_v25  ;;  %3423 = vmatprep.mubr.msk.bf16.mxu0 %vm306_vm1, %v3784_v26  ;;  %v3845_v24 = vld [vmem:[%s3950_s29 + $0x58] sm:$0xff]   ;;  %v3847_v26 = vld [vmem:[%s3950_s29 + $0x60] sm:$0xff]  }
  0x2b   : > { %3316 = vmatmul.mubr.msk.bf16.gmra.mrb[12].mxu1 %vm306_vm1, %v4015_v27  ;;  %3424 = vmatmul.mubr.msk.bf16.gmra.mrb[12].mxu0 %vm306_vm1, %v3786_v28  ;;  %v3849_v28 = vld [vmem:[%s3950_s29 + $0x68] sm:$0xff]  }
  0x2c   : > { %3319 = vmatprep.mubr.msk.bf16.mxu1 %vm306_vm1, %v4019_v29  ;;  %3447 = vmatprep.mubr.msk.bf16.mxu0 %vm306_vm1, %v3788_v30  ;;  %v3851_v30 = vld [vmem:[%s3950_s29 + $0x70] sm:$0xff]  }
  0x33   : > { %3320 = vmatmul.mubr.msk.bf16.gmra.mrb[16].mxu1 %vm306_vm1, %v4029_v31  ;;  %3448 = vmatmul.mubr.msk.bf16.vlgmr.msra.gmra.mrb[0].mxu0 %vm306_vm1, %v3791_v32  ;;  %v3853_v32 = vld [vmem:[%s3950_s29 + $0x78] sm:$0xff]  }
  0x34   : > { %3323 = vmatprep.mubr.msk.bf16.mxu1 %vm306_vm1, %v4033_v33  ;;  %3480 = vmatpush3.bf16.msra.mxu0 %v3792_v16  ;;  %v3834_v16 = vld [vmem:[%s3950_s29 + $0x80] sm:$0xff]  }
  0x35   : > { %3451 = vmatprep.mubr.msk.bf16.mxu0 %vm306_vm1, %v3794_v34  ;;  %3753 = vmatprep.subr.msk.bf16.mxu0 %vm355_vm0, %v3809_v36  ;;  %v3855_v34 = vld [vmem:[%s3950_s29 + $0x80] sm:$0xff]   ;;  %v3857_v36 = vld [vmem:[%s3950_s29 + $0x88] sm:$0xff]  }
  0x38   : > { %3482 = vmatpush3.bf16.msra.mxu0 %v1996_v38  ;;  %v3859_v38 = vld [vmem:[%s3950_s29 + $0x58] sm:$0xff]  }
  0x39   : > { %3515 = vmatprep.subr.bf16.mxu0 %v3819_v43 }
  0x3b   : > { %3324 = vmatmul.mubr.msk.bf16.gmra.mrb[20].mxu1 %vm306_vm1, %v4049_v37  ;;  %3452 = vmatmul.mubr.msk.bf16.gmra.mrb[4].mxu0 %vm306_vm1, %v3796_v39  ;;  %v3860_v39 = vld [vmem:[%s3950_s29 + $0x70] sm:$0xff]  }
  0x3c   : > { %3327 = vmatprep.mubr.msk.bf16.mxu1 %vm306_vm1, %v4055_v40  ;;  %3455 = vmatprep.mubr.msk.bf16.mxu0 %vm306_vm1, %v3798_v41  ;;  %v3862_v41 = vld [vmem:[%s3950_s29 + $0x78] sm:$0xff]  }
  0x43   : > { %3328 = vmatmul.mubr.msk.bf16.gmra.mrb[24].mxu1 %vm306_vm1, %v4065_v42  ;;  %3456 = vmatmul.mubr.msk.bf16.gmra.mrb[8].mxu0 %vm306_vm1, %v3800_v44  ;;  %v3865_v44 = vld [vmem:[%s3950_s29 + $0x70] sm:$0xff]  }
  0x44   : > { %3331 = vmatprep.mubr.msk.bf16.mxu1 %vm306_vm1, %v4072_v45  ;;  %3459 = vmatprep.mubr.msk.bf16.mxu0 %vm306_vm1, %v3802_v46  ;;  %v3867_v46 = vld [vmem:[%s3950_s29 + $0x78] sm:$0xff]  }
  0x4b   : > { %3332 = vmatmul.mubr.msk.bf16.gmra.mrb[28].mxu1 %vm306_vm1, %v3803_v47  ;;  %3460 = vmatmul.mubr.msk.bf16.gmra.mrb[12].mxu0 %vm306_vm1, %v3804_v48  ;;  %v3868_v47 = vld [vmem:[%s3950_s29 + $0x90] sm:$0xff]   ;;  %v3869_v48 = vld [vmem:[%s3950_s29 + $0x80] sm:$0xff]  }
  0x4c   : > { %3339 = vmatprep.mubr.msk.bf16.mxu1 %vm306_vm1, %v3805_v49  ;;  %3463 = vmatprep.mubr.msk.bf16.mxu0 %vm306_vm1, %v3806_v50  ;;  %v3870_v49 = vld [vmem:[%s3950_s29 + $0x98] sm:$0xff]   ;;  %v3871_v50 = vld [vmem:[%s3950_s29 + $0x88] sm:$0xff]  }
  0x53   : > { %3340 = vmatmul.mubr.msk.bf16.vlgmr.msra.gmra.mrb[0].mxu1 %vm306_vm1, %v3953_v8  ;;  %3464 = vmatmul.mubr.msk.bf16.gmra.mrb[16].mxu0 %vm306_vm1, %v3808_v51  ;;  %v3825_v8 = vld [vmem:[%s3950_s29 + $0x60] sm:$0xff]  }
  0x54   : > { %3372 = vmatpush3.bf16.msra.mxu1 %v3807_v35  ;;  %3343 = vmatprep.mubr.msk.bf16.mxu1 %vm306_vm1, %v3965_v12  ;;  %v3829_v12 = vld [vmem:[%s3950_s29 + $0x70] sm:$0xff]   ;;  %v3856_v35 = vld [vmem:[%s3950_s29 + $0x60] sm:$0xff]  }
  0x55   : > { %3467 = vmatprep.mubr.msk.bf16.mxu0 %vm306_vm1, %v3810_v52  ;;  %3749 = vmatprep.subr.msk.bf16.mxu1 %vm355_vm0, %v3817_v53  ;;  %v3872_v51 = vld [vmem:[%s3950_s29 + $0xa0] sm:$0xff]   ;;  %v3873_v52 = vld [vmem:[%s3950_s29 + $0x90] sm:$0xff]   ;;  %v3874_v53 = vld [vmem:[%s3950_s29 + $0xa8] sm:$0xff]  }
  0x58   : > { %3374 = vmatpush3.bf16.msra.mxu1 %v880_v54 }
  0x59   : > { %3551 = vmatprep.subr.bf16.mxu1 %v3917_v1 }
  0x5b   : > { %3344 = vmatmul.mubr.msk.bf16.gmra.mrb[4].mxu1 %vm306_vm1, %v3972_v14  ;;  %3468 = vmatmul.mubr.msk.bf16.gmra.mrb[20].mxu0 %vm306_vm1, %v3811_v55  ;;  %v3832_v14 = vld [vmem:[%s3950_s29 + $0x78] sm:$0xff]  }
  0x5c   : > { %3347 = vmatprep.mubr.msk.bf16.mxu1 %vm306_vm1, %v3984_v18  ;;  %3471 = vmatprep.mubr.msk.bf16.mxu0 %vm306_vm1, %v3812_v56  ;;  %v3836_v18 = vld [vmem:[%s3950_s29 + $0x88] sm:$0xff]  }
  0x63   : > { %3348 = vmatmul.mubr.msk.bf16.gmra.mrb[8].mxu1 %vm306_vm1, %v3991_v21  ;;  %3472 = vmatmul.mubr.msk.bf16.gmra.mrb[24].mxu0 %vm306_vm1, %v3813_v57  ;;  %v3842_v21 = vld [vmem:[%s3950_s29 + $0xa0] sm:$0xff]  }
  0x64   : > { %3351 = vmatprep.mubr.msk.bf16.mxu1 %vm306_vm1, %v4001_v23  ;;  %3475 = vmatprep.mubr.msk.bf16.mxu0 %vm306_vm1, %v3814_v58  ;;  %v3844_v23 = vld [vmem:[%s3950_s29 + $0x30] sm:$0xff]  }
  0x6b   : > { %3352 = vmatmul.mubr.msk.bf16.gmra.mrb[12].mxu1 %vm306_vm1, %v4005_v25  ;;  %3476 = vmatmul.mubr.msk.bf16.gmra.mrb[28].mxu0 %vm306_vm1, %v3815_v59  ;;  %v3846_v25 = vld [vmem:[%s3950_s29 + $0x38] sm:$0xff]  }
  0x6c   : > { %3355 = vmatprep.mubr.msk.bf16.mxu1 %vm306_vm1, %v4015_v27  ;;  %3483 = vmatprep.mubr.msk.bf16.mxu0 %vm306_vm1, %v3816_v60  ;;  %v3848_v27 = vld [vmem:[%s3950_s29 + $0x40] sm:$0xff]  }
  0x73   : > { %3356 = vmatmul.mubr.msk.bf16.gmra.mrb[16].mxu1 %vm306_vm1, %v4019_v29  ;;  %3484 = vmatmul.mubr.msk.bf16.vlgmr.msra.gmra.mrb[0].mxu0 %vm306_vm1, %v3818_v61  ;;  %v3850_v29 = vld [vmem:[%s3950_s29 + $0x48] sm:$0xff]  }
  0x74   : > { %3359 = vmatprep.mubr.msk.bf16.mxu1 %vm306_vm1, %v4029_v31  ;;  %3516 = vmatpush3.bf16.msra.mxu0 %v3819_v43  ;;  %v3852_v31 = vld [vmem:[%s3950_s29 + $0x50] sm:$0xff]   ;;  %v3864_v43 = vld [vmem:[%s3950_s29 + $0x80] sm:$0xff]  }
  0x75   : > { %3487 = vmatprep.mubr.msk.bf16.mxu0 %vm306_vm1, %v3820_v62  ;;  %3754 = vmatprep.subr.msk.bf16.mxu0 %vm355_vm0, %v3830_v63 }
  0x78   : > { %3518 = vmatpush3.bf16.msra.mxu0 %v2368_v0 }
  0x7b   : > { %3360 = vmatmul.mubr.msk.bf16.gmra.mrb[20].mxu1 %vm306_vm1, %v4033_v33  ;;  %3488 = vmatmul.mubr.msk.bf16.gmra.mrb[4].mxu0 %vm306_vm1, %v3821_v2  ;;  %v3854_v33 = vld [vmem:[%s3950_s29 + $0x58] sm:$0xff]  }
  0x7c   : > { %3363 = vmatprep.mubr.msk.bf16.mxu1 %vm306_vm1, %v4049_v37  ;;  %3491 = vmatprep.mubr.msk.bf16.mxu0 %vm306_vm1, %v3822_v4  ;;  %v3858_v37 = vld [vmem:[%s3950_s29 + $0x68] sm:$0xff]  }
  0x83   : > { %3364 = vmatmul.mubr.msk.bf16.gmra.mrb[24].mxu1 %vm306_vm1, %v4055_v40  ;;  %3492 = vmatmul.mubr.msk.bf16.gmra.mrb[8].mxu0 %vm306_vm1, %v3823_v5  ;;  %v3861_v40 = vld [vmem:[%s3950_s29 + $0x60] sm:$0xff]  }
  0x84   : > { %3367 = vmatprep.mubr.msk.bf16.mxu1 %vm306_vm1, %v4065_v42  ;;  %3495 = vmatprep.mubr.msk.bf16.mxu0 %vm306_vm1, %v3824_v7  ;;  %v3863_v42 = vld [vmem:[%s3950_s29 + $0x68] sm:$0xff]  }
  0x8b   : > { %3368 = vmatmul.mubr.msk.bf16.gmra.mrb[28].mxu1 %vm306_vm1, %v4072_v45  ;;  %3496 = vmatmul.mubr.msk.bf16.gmra.mrb[12].mxu0 %vm306_vm1, %v3825_v8  ;;  %v3866_v45 = vld [vmem:[%s3950_s29 + $0x88] sm:$0xff]  }
  0x8c   : > { %3375 = vmatprep.mubr.msk.bf16.mxu1 %vm306_vm1, %v3826_v9  ;;  %3499 = vmatprep.mubr.msk.bf16.mxu0 %vm306_vm1, %v3827_v10  ;;  %v4275_v10 = vld [vmem:[%s4390_s2] ss:$0 sm:$0xff] }
  0x93   : > { %3376 = vmatmul.mubr.msk.bf16.vlgmr.msra.gmra.mrb[0].mxu1 %vm306_vm1, %v3828_v11  ;;  %3500 = vmatmul.mubr.msk.bf16.gmra.mrb[16].mxu0 %vm306_vm1, %v3829_v12 }
  0x94   : > { %3553 = vmatpush3.bf16.msra.mxu1 %v3917_v1  ;;  %3379 = vmatprep.mubr.msk.bf16.mxu1 %vm306_vm1, %v3831_v13  ;;  %v3837_v1 = vld [vmem:[%s3950_s29 + $0x38] sm:$0xff]  }
  0x95   : > { %3503 = vmatprep.mubr.msk.bf16.mxu0 %vm306_vm1, %v3832_v14  ;;  %3751 = vmatprep.subr.msk.bf16.mxu1 %vm355_vm0, %v3926_v3  ;;  %v3838_v3 = vld [vmem:[%s3950_s29 + $0x90] sm:$0xff]  }
  0x98   : > { %3554 = vmatpush3.bf16.msra.mxu1 %v3940_v6  ;;  %v3841_v6 = vld [vmem:[%s3950_s29 + $0x48] sm:$0xff]  }
  0x9b   : > { %3380 = vmatmul.mubr.msk.bf16.gmra.mrb[4].mxu1 %vm306_vm1, %v3833_v15  ;;  %3504 = vmatmul.mubr.msk.bf16.gmra.mrb[20].mxu0 %vm306_vm1, %v3834_v16 }
  0x9c   : > { %3383 = vmatprep.mubr.msk.bf16.mxu1 %vm306_vm1, %v3835_v17  ;;  %3507 = vmatprep.mubr.msk.bf16.mxu0 %vm306_vm1, %v3836_v18 }
  0xa3   : > { %3384 = vmatmul.mubr.msk.bf16.gmra.mrb[8].mxu1 %vm306_vm1, %v3837_v1  ;;  %3508 = vmatmul.mubr.msk.bf16.gmra.mrb[24].mxu0 %vm306_vm1, %v3838_v3 }
  0xa4   : > { %3387 = vmatprep.mubr.msk.bf16.mxu1 %vm306_vm1, %v3839_v19  ;;  %3511 = vmatprep.mubr.msk.bf16.mxu0 %vm306_vm1, %v3840_v20 }
  0xab   : > { %3388 = vmatmul.mubr.msk.bf16.gmra.mrb[12].mxu1 %vm306_vm1, %v3841_v6  ;;  %3512 = vmatmul.mubr.msk.bf16.gmra.mrb[28].mxu0 %vm306_vm1, %v3842_v21 }
  0xac   : > { %3391 = vmatprep.mubr.msk.bf16.mxu1 %vm306_vm1, %v3843_v22  ;;  %3519 = vmatprep.mubr.msk.bf16.mxu0 %vm306_vm1, %v3844_v23 }
  0xb3   : > { %3392 = vmatmul.mubr.msk.bf16.gmra.mrb[16].mxu1 %vm306_vm1, %v3845_v24  ;;  %3520 = vmatmul.mubr.msk.bf16.vlgmr.msra.gmra.mrb[0].mxu0 %vm306_vm1, %v3846_v25 }
  0xb4   : > { %3395 = vmatprep.mubr.msk.bf16.mxu1 %vm306_vm1, %v3847_v26  ;;  %3523 = vmatprep.mubr.msk.bf16.mxu0 %vm306_vm1, %v3848_v27 }
  0xbb   : > { %3396 = vmatmul.mubr.msk.bf16.gmra.mrb[20].mxu1 %vm306_vm1, %v3849_v28  ;;  %3524 = vmatmul.mubr.msk.bf16.gmra.mrb[4].mxu0 %vm306_vm1, %v3850_v29 }
  0xbc   : > { %3399 = vmatprep.mubr.msk.bf16.mxu1 %vm306_vm1, %v3851_v30  ;;  %3527 = vmatprep.mubr.msk.bf16.mxu0 %vm306_vm1, %v3852_v31 }
  0xc3   : > { %3400 = vmatmul.mubr.msk.bf16.gmra.mrb[24].mxu1 %vm306_vm1, %v3853_v32  ;;  %3528 = vmatmul.mubr.msk.bf16.gmra.mrb[8].mxu0 %vm306_vm1, %v3854_v33 }
  0xc4   : > { %3403 = vmatprep.mubr.msk.bf16.mxu1 %vm306_vm1, %v3855_v34  ;;  %3531 = vmatprep.mubr.msk.bf16.mxu0 %vm306_vm1, %v3856_v35 }
  0xcb   : > { %3404 = vmatmul.mubr.msk.bf16.gmra.mrb[28].mxu1 %vm306_vm1, %v3857_v36  ;;  %3532 = vmatmul.mubr.msk.bf16.gmra.mrb[12].mxu0 %vm306_vm1, %v3858_v37 }
  0xcc   : > { %3427 = vmatprep.mubr.msk.bf16.mxu1 %vm306_vm1, %v3859_v38  ;;  %3535 = vmatprep.mubr.msk.bf16.mxu0 %vm306_vm1, %v3860_v39 }
  0xd3   : > { %3428 = vmatmul.mubr.msk.bf16.vlgmr.msra.gmra.mrb[16].mxu1 %vm306_vm1, %v3861_v40  ;;  %3536 = vmatmul.mubr.msk.bf16.gmra.mrb[16].mxu0 %vm306_vm1, %v3862_v41 }
  0xd4   : > { %3431 = vmatprep.mubr.msk.bf16.mxu1 %vm306_vm1, %v3863_v42  ;;  %3539 = vmatprep.mubr.msk.bf16.mxu0 %vm306_vm1, %v3864_v43 }
  0xdb   : > { %3432 = vmatmul.mubr.msk.bf16.gmra.mrb[20].mxu1 %vm306_vm1, %v3865_v44  ;;  %3540 = vmatmul.mubr.msk.bf16.gmra.mrb[20].mxu0 %vm306_vm1, %v3866_v45 }
  0xdc   : > { %3435 = vmatprep.mubr.msk.bf16.mxu1 %vm306_vm1, %v3867_v46  ;;  %3543 = vmatprep.mubr.msk.bf16.mxu0 %vm306_vm1, %v3868_v47 }
  0xe3   : > { %3436 = vmatmul.mubr.msk.bf16.gmra.mrb[24].mxu1 %vm306_vm1, %v3869_v48  ;;  %3544 = vmatmul.mubr.msk.bf16.gmra.mrb[24].mxu0 %vm306_vm1, %v3870_v49 }
  0xe4   : > { %3439 = vmatprep.mubr.msk.bf16.mxu1 %vm306_vm1, %v3871_v50  ;;  %3547 = vmatprep.mubr.msk.bf16.mxu0 %vm306_vm1, %v3872_v51 }
  0xeb   : > { %3440 = vmatmul.mubr.msk.bf16.gmra.mrb[28].mxu1 %vm306_vm1, %v3873_v52  ;;  %3548 = vmatmul.mubr.msk.bf16.gmra.mrb[28].mxu0 %vm306_vm1, %v3874_v53 }
 0x166   : > { %v3377_v54 = vpop.f32.mrb[0].mxu1 }
 0x167   : > { %v916_v55 = vpop.f32.mrb[1].mxu1 }
 0x168   : > { %v3378_v56 = vpop.f32.mrb[2].mxu1 }
 0x169   : > { %v919_v57 = vpop.f32.mrb[3].mxu1 }
 0x16e   : > { %v3381_v58 = vpop.f32.mrb[4].mxu1 }
 0x16f   : > { %v932_v59 = vpop.f32.mrb[5].mxu1 }
 0x170   : > { %v3382_v60 = vpop.f32.mrb[6].mxu1 }
 0x171   : > { %v935_v61 = vpop.f32.mrb[7].mxu1 }
 0x176   : > { %v3385_v62 = vpop.f32.mrb[8].mxu1 }
 0x177   : > { %v948_v63 = vpop.f32.mrb[9].mxu1 }
 0x178   : > { %v4260_v0 = vpop.f32.mrb[10].mxu1 }
 0x179   : > { %v4262_v2 = vpop.f32.mrb[11].mxu1 }
 0x17e   : > { %v4264_v4 = vpop.f32.mrb[12].mxu1 }
 0x17f   : > { %v4266_v5 = vpop.f32.mrb[13].mxu1 }
 0x180   : > { %v4268_v7 = vpop.f32.mrb[14].mxu1 }
 0x181   : > { %v4270_v8 = vpop.f32.mrb[15].mxu1 }
 0x186   : > { %v3521_v9 = vpop.f32.mrb[0].mxu0 }
 0x187   : > { %v3555_v11 = vadd.f32 %v3521_v9, %v3377_v54  ;;  %v2404_v12 = vpop.f32.mrb[1].mxu0 }
 0x188   : > { %v3556_v13 = vadd.f32 %v2404_v12, %v916_v55  ;;  %v3522_v14 = vpop.f32.mrb[2].mxu0 }
 0x189   : > { %v2572_v15 = vadd.f32 %v3555_v11, %v4275_v10  ;;  %v3557_v16 = vadd.f32 %v3522_v14, %v3378_v56  ;;  %v2407_v17 = vpop.f32.mrb[3].mxu0 }
 0x18a   : > { %v2570_v18 = vadd.f32 %v3556_v13, %v4275_v10  ;;  %v3558_v1 = vadd.f32 %v2407_v17, %v919_v57 }
 0x18b   : > { %v2604_v3 = vmax.f32 %v2572_v15, 0.0  ;;  %v2573_v19 = vadd.f32 %v3557_v16, %v4275_v10 }
 0x18c   : > { %v2602_v20 = vmax.f32 %v2570_v18, 0.0  ;;  %v2571_v6 = vadd.f32 %v3558_v1, %v4275_v10 }
 0x18d   : > { %v3143_v21 = vpack.c.bf16 %v2604_v3, %v2604_v3  ;;  %v2605_v22 = vmax.f32 %v2573_v19, 0.0 }
 0x18e   : > { %v3141_v23 = vpack.c.bf16 %v2602_v20, %v2602_v20  ;;  %v2603_v24 = vmax.f32 %v2571_v6, 0.0  ;;  %v3525_v25 = vpop.f32.mrb[4].mxu0 }
 0x18f   : > { %2765 = vst.msk [vmem:[%s4284_s26 + $0x8] sm:$0xf] %vm2762_vm2, %v3143_v21  ;;  %v3144_v26 = vpack.c.bf16 %v2605_v22, %v2605_v22  ;;  %v3559_v27 = vadd.f32 %v3525_v25, %v3381_v58  ;;  %v2420_v28 = vpop.f32.mrb[5].mxu0 }
 0x190   : > { %2763 = vst.msk [vmem:[%s4284_s26] sm:$0xf] %vm2762_vm2, %v3141_v23  ;;  %v3142_v29 = vpack.c.bf16 %v2603_v24, %v2603_v24  ;;  %v3560_v30 = vadd.f32 %v2420_v28, %v932_v59  ;;  %v3526_v31 = vpop.f32.mrb[6].mxu0 }
 0x191   : > { %2766 = vst.msk [vmem:[%s4284_s26 + $0xc] sm:$0xf] %vm2762_vm2, %v3144_v26  ;;  %v2576_v32 = vadd.f32 %v3559_v27, %v4275_v10  ;;  %v3561_v33 = vadd.f32 %v3526_v31, %v3382_v60  ;;  %v2423_v34 = vpop.f32.mrb[7].mxu0 }
 0x192   : > { %2764 = vst.msk [vmem:[%s4284_s26 + $0x4] sm:$0xf] %vm2762_vm2, %v3142_v29  ;;  %v2574_v35 = vadd.f32 %v3560_v30, %v4275_v10  ;;  %v3562_v36 = vadd.f32 %v2423_v34, %v935_v61 }
 0x193   : > { %v2608_v37 = vmax.f32 %v2576_v32, 0.0  ;;  %v2577_v38 = vadd.f32 %v3561_v33, %v4275_v10 }
 0x194   : > { %v2606_v39 = vmax.f32 %v2574_v35, 0.0  ;;  %v2575_v40 = vadd.f32 %v3562_v36, %v4275_v10 }
 0x195   : > { %v3147_v41 = vpack.c.bf16 %v2608_v37, %v2608_v37  ;;  %v2609_v42 = vmax.f32 %v2577_v38, 0.0 }
 0x196   : > { %v3145_v43 = vpack.c.bf16 %v2606_v39, %v2606_v39  ;;  %v2607_v44 = vmax.f32 %v2575_v40, 0.0  ;;  %v3529_v45 = vpop.f32.mrb[8].mxu0 }
 0x197   : > { %2769 = vst.msk [vmem:[%s4284_s26 + $0x18] sm:$0xf] %vm2762_vm2, %v3147_v41  ;;  %v3148_v46 = vpack.c.bf16 %v2609_v42, %v2609_v42  ;;  %v3563_v47 = vadd.f32 %v3529_v45, %v3385_v62  ;;  %v2436_v48 = vpop.f32.mrb[9].mxu0 }
 0x198   : > { %2767 = vst.msk [vmem:[%s4284_s26 + $0x10] sm:$0xf] %vm2762_vm2, %v3145_v43  ;;  %v3146_v49 = vpack.c.bf16 %v2607_v44, %v2607_v44  ;;  %v3564_v50 = vadd.f32 %v2436_v48, %v948_v63  ;;  %v3530_v51 = vpop.f32.mrb[10].mxu0 }
 0x199   : > { %2770 = vst.msk [vmem:[%s4284_s26 + $0x1c] sm:$0xf] %vm2762_vm2, %v3148_v46  ;;  %v2580_v52 = vadd.f32 %v3563_v47, %v4275_v10  ;;  %v3565_v53 = vadd.f32 %v3530_v51, %v4260_v0  ;;  %v2439_v54 = vpop.f32.mrb[11].mxu0 }
 0x19a   : > { %2768 = vst.msk [vmem:[%s4284_s26 + $0x14] sm:$0xf] %vm2762_vm2, %v3146_v49  ;;  %v2578_v55 = vadd.f32 %v3564_v50, %v4275_v10  ;;  %v3566_v56 = vadd.f32 %v2439_v54, %v4262_v2 }
 0x19b   : > { %v2612_v57 = vmax.f32 %v2580_v52, 0.0  ;;  %v2581_v58 = vadd.f32 %v3565_v53, %v4275_v10 }
 0x19c   : > { %v2610_v59 = vmax.f32 %v2578_v55, 0.0  ;;  %v2579_v60 = vadd.f32 %v3566_v56, %v4275_v10 }
 0x19d   : > { %v3151_v61 = vpack.c.bf16 %v2612_v57, %v2612_v57  ;;  %v2613_v62 = vmax.f32 %v2581_v58, 0.0 }
 0x19e   : > { %v3149_v63 = vpack.c.bf16 %v2610_v59, %v2610_v59  ;;  %v2611_v0 = vmax.f32 %v2579_v60, 0.0  ;;  %v3533_v9 = vpop.f32.mrb[12].mxu0 }
 0x19f   : > { %2773 = vst.msk [vmem:[%s4284_s26 + $0x28] sm:$0xf] %vm2762_vm2, %v3151_v61  ;;  %v3152_v11 = vpack.c.bf16 %v2613_v62, %v2613_v62  ;;  %v3567_v12 = vadd.f32 %v3533_v9, %v4264_v4  ;;  %v2452_v13 = vpop.f32.mrb[13].mxu0 }
 0x1a0   : > { %2771 = vst.msk [vmem:[%s4284_s26 + $0x20] sm:$0xf] %vm2762_vm2, %v3149_v63  ;;  %v3150_v2 = vpack.c.bf16 %v2611_v0, %v2611_v0  ;;  %v3568_v14 = vadd.f32 %v2452_v13, %v4266_v5  ;;  %v3534_v15 = vpop.f32.mrb[14].mxu0 }
 0x1a1   : > { %2774 = vst.msk [vmem:[%s4284_s26 + $0x2c] sm:$0xf] %vm2762_vm2, %v3152_v11  ;;  %v2584_v16 = vadd.f32 %v3567_v12, %v4275_v10  ;;  %v3569_v17 = vadd.f32 %v3534_v15, %v4268_v7  ;;  %v2455_v18 = vpop.f32.mrb[15].mxu0 }
 0x1a2   : > { %2772 = vst.msk [vmem:[%s4284_s26 + $0x24] sm:$0xf] %vm2762_vm2, %v3150_v2  ;;  %v2582_v1 = vadd.f32 %v3568_v14, %v4275_v10  ;;  %v3570_v4 = vadd.f32 %v2455_v18, %v4270_v8 }
 0x1a3   : > { %v2616_v3 = vmax.f32 %v2584_v16, 0.0  ;;  %v2585_v19 = vadd.f32 %v3569_v17, %v4275_v10 }
 0x1a4   : > { %v2614_v5 = vmax.f32 %v2582_v1, 0.0  ;;  %v2583_v20 = vadd.f32 %v3570_v4, %v4275_v10 }
 0x1a5   : > { %v3155_v6 = vpack.c.bf16 %v2616_v3, %v2616_v3  ;;  %v2617_v21 = vmax.f32 %v2585_v19, 0.0 }
 0x1a6   : > { %v3429_v22 = vpop.f32.mrb[16].mxu1  ;;  %v3153_v7 = vpack.c.bf16 %v2614_v5, %v2614_v5  ;;  %v2615_v23 = vmax.f32 %v2583_v20, 0.0  ;;  %v3537_v24 = vpop.f32.mrb[16].mxu0 }
 0x1a7   : > { %v1352_v25 = vpop.f32.mrb[17].mxu1  ;;  %2777 = vst.msk [vmem:[%s4284_s26 + $0x38] sm:$0xf] %vm2762_vm2, %v3155_v6  ;;  %v3156_v26 = vpack.c.bf16 %v2617_v21, %v2617_v21  ;;  %v3571_v8 = vadd.f32 %v3537_v24, %v3429_v22  ;;  %v2468_v27 = vpop.f32.mrb[17].mxu0 }
 0x1a8   : > { %v3430_v28 = vpop.f32.mrb[18].mxu1  ;;  %2775 = vst.msk [vmem:[%s4284_s26 + $0x30] sm:$0xf] %vm2762_vm2, %v3153_v7  ;;  %v3154_v29 = vpack.c.bf16 %v2615_v23, %v2615_v23  ;;  %v3572_v30 = vadd.f32 %v2468_v27, %v1352_v25  ;;  %v3538_v31 = vpop.f32.mrb[18].mxu0 }
 0x1a9   : > { %v1355_v32 = vpop.f32.mrb[19].mxu1  ;;  %2778 = vst.msk [vmem:[%s4284_s26 + $0x3c] sm:$0xf] %vm2762_vm2, %v3156_v26  ;;  %v2588_v33 = vadd.f32 %v3571_v8, %v4275_v10  ;;  %v3573_v34 = vadd.f32 %v3538_v31, %v3430_v28  ;;  %v2471_v35 = vpop.f32.mrb[19].mxu0 }
 0x1aa   : > { %2776 = vst.msk [vmem:[%s4284_s26 + $0x34] sm:$0xf] %vm2762_vm2, %v3154_v29  ;;  %v2586_v36 = vadd.f32 %v3572_v30, %v4275_v10  ;;  %v3574_v37 = vadd.f32 %v2471_v35, %v1355_v32 }
 0x1ab   : > { %v2620_v38 = vmax.f32 %v2588_v33, 0.0  ;;  %v2589_v39 = vadd.f32 %v3573_v34, %v4275_v10 }
 0x1ac   : > { %v2618_v40 = vmax.f32 %v2586_v36, 0.0  ;;  %v2587_v41 = vadd.f32 %v3574_v37, %v4275_v10 }
 0x1ad   : > { %v3159_v42 = vpack.c.bf16 %v2620_v38, %v2620_v38  ;;  %v2621_v43 = vmax.f32 %v2589_v39, 0.0 }
 0x1ae   : > { %v3433_v44 = vpop.f32.mrb[20].mxu1  ;;  %v3157_v45 = vpack.c.bf16 %v2618_v40, %v2618_v40  ;;  %v2619_v46 = vmax.f32 %v2587_v41, 0.0  ;;  %v3541_v47 = vpop.f32.mrb[20].mxu0 }
 0x1af   : > { %v1368_v48 = vpop.f32.mrb[21].mxu1  ;;  %2781 = vst.msk [vmem:[%s4284_s26 + $0x48] sm:$0xf] %vm2762_vm2, %v3159_v42  ;;  %v3160_v49 = vpack.c.bf16 %v2621_v43, %v2621_v43  ;;  %v3575_v50 = vadd.f32 %v3541_v47, %v3433_v44  ;;  %v2484_v51 = vpop.f32.mrb[21].mxu0 }
 0x1b0   : > { %v3434_v52 = vpop.f32.mrb[22].mxu1  ;;  %2779 = vst.msk [vmem:[%s4284_s26 + $0x40] sm:$0xf] %vm2762_vm2, %v3157_v45  ;;  %v3158_v53 = vpack.c.bf16 %v2619_v46, %v2619_v46  ;;  %v3576_v54 = vadd.f32 %v2484_v51, %v1368_v48  ;;  %v3542_v55 = vpop.f32.mrb[22].mxu0 }
 0x1b1   : > { %v1371_v56 = vpop.f32.mrb[23].mxu1  ;;  %2782 = vst.msk [vmem:[%s4284_s26 + $0x4c] sm:$0xf] %vm2762_vm2, %v3160_v49  ;;  %v2592_v57 = vadd.f32 %v3575_v50, %v4275_v10  ;;  %v3577_v58 = vadd.f32 %v3542_v55, %v3434_v52  ;;  %v2487_v59 = vpop.f32.mrb[23].mxu0 }
 0x1b2   : > { %2780 = vst.msk [vmem:[%s4284_s26 + $0x44] sm:$0xf] %vm2762_vm2, %v3158_v53  ;;  %v2590_v60 = vadd.f32 %v3576_v54, %v4275_v10  ;;  %v3578_v61 = vadd.f32 %v2487_v59, %v1371_v56 }
 0x1b3   : > { %v2624_v62 = vmax.f32 %v2592_v57, 0.0  ;;  %v2593_v63 = vadd.f32 %v3577_v58, %v4275_v10 }
 0x1b4   : > { %v2622_v0 = vmax.f32 %v2590_v60, 0.0  ;;  %v2591_v9 = vadd.f32 %v3578_v61, %v4275_v10 }
 0x1b5   : > { %v3163_v11 = vpack.c.bf16 %v2624_v62, %v2624_v62  ;;  %v2625_v12 = vmax.f32 %v2593_v63, 0.0 }
 0x1b6   : > { %v3437_v13 = vpop.f32.mrb[24].mxu1  ;;  %v3161_v2 = vpack.c.bf16 %v2622_v0, %v2622_v0  ;;  %v2623_v14 = vmax.f32 %v2591_v9, 0.0  ;;  %v3545_v15 = vpop.f32.mrb[24].mxu0 }
 0x1b7   : > { %v1384_v16 = vpop.f32.mrb[25].mxu1  ;;  %2785 = vst.msk [vmem:[%s4284_s26 + $0x58] sm:$0xf] %vm2762_vm2, %v3163_v11  ;;  %v3164_v17 = vpack.c.bf16 %v2625_v12, %v2625_v12  ;;  %v3579_v18 = vadd.f32 %v3545_v15, %v3437_v13  ;;  %v2500_v1 = vpop.f32.mrb[25].mxu0 }
 0x1b8   : > { %v3438_v4 = vpop.f32.mrb[26].mxu1  ;;  %2783 = vst.msk [vmem:[%s4284_s26 + $0x50] sm:$0xf] %vm2762_vm2, %v3161_v2  ;;  %v3162_v3 = vpack.c.bf16 %v2623_v14, %v2623_v14  ;;  %v3580_v19 = vadd.f32 %v2500_v1, %v1384_v16  ;;  %v3546_v5 = vpop.f32.mrb[26].mxu0 }
 0x1b9   : > { %v1387_v20 = vpop.f32.mrb[27].mxu1  ;;  %2786 = vst.msk [vmem:[%s4284_s26 + $0x5c] sm:$0xf] %vm2762_vm2, %v3164_v17  ;;  %v2596_v6 = vadd.f32 %v3579_v18, %v4275_v10  ;;  %v3581_v21 = vadd.f32 %v3546_v5, %v3438_v4  ;;  %v2503_v22 = vpop.f32.mrb[27].mxu0 }
 0x1ba   : > { %2784 = vst.msk [vmem:[%s4284_s26 + $0x54] sm:$0xf] %vm2762_vm2, %v3162_v3  ;;  %v2594_v7 = vadd.f32 %v3580_v19, %v4275_v10  ;;  %v3582_v23 = vadd.f32 %v2503_v22, %v1387_v20 }
 0x1bb   : > { %v2628_v24 = vmax.f32 %v2596_v6, 0.0  ;;  %v2597_v25 = vadd.f32 %v3581_v21, %v4275_v10 }
 0x1bc   : > { %v2626_v26 = vmax.f32 %v2594_v7, 0.0  ;;  %v2595_v8 = vadd.f32 %v3582_v23, %v4275_v10 }
 0x1bd   : > { %v3167_v27 = vpack.c.bf16 %v2628_v24, %v2628_v24  ;;  %v2629_v28 = vmax.f32 %v2597_v25, 0.0 }
 0x1be   : > { %v3441_v29 = vpop.f32.mrb[28].mxu1  ;;  %v3165_v30 = vpack.c.bf16 %v2626_v26, %v2626_v26  ;;  %v2627_v31 = vmax.f32 %v2595_v8, 0.0  ;;  %v3549_v32 = vpop.f32.mrb[28].mxu0 }
 0x1bf   : > { %v1400_v33 = vpop.f32.mrb[29].mxu1  ;;  %2789 = vst.msk [vmem:[%s4284_s26 + $0x68] sm:$0xf] %vm2762_vm2, %v3167_v27  ;;  %v3168_v34 = vpack.c.bf16 %v2629_v28, %v2629_v28  ;;  %v3583_v35 = vadd.f32 %v3549_v32, %v3441_v29  ;;  %v2516_v36 = vpop.f32.mrb[29].mxu0 }
 0x1c0   : > { %v3442_v37 = vpop.f32.mrb[30].mxu1  ;;  %2787 = vst.msk [vmem:[%s4284_s26 + $0x60] sm:$0xf] %vm2762_vm2, %v3165_v30  ;;  %v3166_v38 = vpack.c.bf16 %v2627_v31, %v2627_v31  ;;  %v3584_v39 = vadd.f32 %v2516_v36, %v1400_v33  ;;  %v3550_v40 = vpop.f32.mrb[30].mxu0 }
 0x1c1   : > { %v1403_v41 = vpop.f32.mrb[31].mxu1  ;;  %2790 = vst.msk [vmem:[%s4284_s26 + $0x6c] sm:$0xf] %vm2762_vm2, %v3168_v34  ;;  %v2600_v42 = vadd.f32 %v3583_v35, %v4275_v10  ;;  %v3585_v43 = vadd.f32 %v3550_v40, %v3442_v37  ;;  %v2519_v44 = vpop.f32.mrb[31].mxu0 }
 0x1c2   : > { %2788 = vst.msk [vmem:[%s4284_s26 + $0x64] sm:$0xf] %vm2762_vm2, %v3166_v38  ;;  %v2598_v45 = vadd.f32 %v3584_v39, %v4275_v10  ;;  %v3586_v46 = vadd.f32 %v2519_v44, %v1403_v41 }
 0x1c3   : > { %v2632_v47 = vmax.f32 %v2600_v42, 0.0  ;;  %v2601_v48 = vadd.f32 %v3585_v43, %v4275_v10 }
 0x1c4   : > { %v2630_v49 = vmax.f32 %v2598_v45, 0.0  ;;  %v2599_v50 = vadd.f32 %v3586_v46, %v4275_v10 }
 0x1c5   : > { %v3171_v51 = vpack.c.bf16 %v2632_v47, %v2632_v47  ;;  %v2633_v52 = vmax.f32 %v2601_v48, 0.0 }
 0x1c6   : > { %v3169_v53 = vpack.c.bf16 %v2630_v49, %v2630_v49  ;;  %v2631_v54 = vmax.f32 %v2599_v50, 0.0 }
 0x1c7   : > { %2793 = vst.msk [vmem:[%s4284_s26 + $0x78] sm:$0xf] %vm2762_vm2, %v3171_v51  ;;  %v3172_v55 = vpack.c.bf16 %v2633_v52, %v2633_v52 }
 0x1c8   : > { %2791 = vst.msk [vmem:[%s4284_s26 + $0x70] sm:$0xf] %vm2762_vm2, %v3169_v53  ;;  %v3170_v56 = vpack.c.bf16 %v2631_v54, %v2631_v54 }
 0x1c9   : > { %2794 = vst.msk [vmem:[%s4284_s26 + $0x7c] sm:$0xf] %vm2762_vm2, %v3172_v55 }
 0x1ca   : > { %2792 = vst.msk [vmem:[%s4284_s26 + $0x74] sm:$0xf] %vm2762_vm2, %v3170_v56 }
 0x1cb PF: > { %s13_s12 = sadd.s32 1, %s3881_s12  }
 0x1cc   : > { %p10_p4 = scmp.ge.s32.totalorder %s13_s12, 4  }
 0x1ce   :  { %12 = sbr.rel (!%p10_p4) target bundleno = 1 (0x1), region = 68 }

// kernel: _lambda_.7
= control target key start
LH: loop header
LB: loop body
LE: loop exit
PB: predicated region body
PF: predicated region fallthrough
CT: control target
= control target key end

     0   :  { %s1193_s12 = smov 0   ;;  %s1403_s0 = inlined_call_operand.vmem [shape: bf16[2,81,32], index: 0, kind: input, shape index: {}]   ;;  %s1404_s1 = inlined_call_operand.vmem [shape: bf16[4,32,16], index: 1, kind: input, shape index: {}]   ;;  %s1405_s2 = inlined_call_operand.vmem [shape: f32[1,16], index: 2, kind: input, shape index: {}]   ;;  %s1406_s3 = inlined_call_operand.vmem [shape: bf16[2,71,16], index: 3, kind: output, shape index: {}]  }
   0x1 LB: > { %s921_s13 = sadd.s32 4294967295, %s1169_s12   ;;  %p925_p0 = scmp.ge.s32.totalorder %s1169_s12, 1  ;;  %s1169_s12 = sphi %s1193_s12, %s13_s12  }
   0x2   : > { %p137_p1 = scmp.lt.s32.totalorder %s1169_s12, 3 }
   0x4   : > { %p138_p2 = pnand %p925_p0, %p137_p1 }
   0x5   : > { %v1140_v0 = vld [vmem:[%s1404_s1 + $0x10] sm:$0xff] (!%p138_p2)   ;;  %v1171_v1 = vmov (!%p138_p2), 0.0   ;;  %v1141_v2 = vld [vmem:[%s1404_s1] sm:$0xff] (!%p138_p2)   ;;  %v1142_v3 = vld [vmem:[%s1404_s1 + $0x18] sm:$0xff] (!%p138_p2)   ;;  %vm1172_vm0 = vmmov (!%p138_p2), 0   ;;  %p161_p3 = scmp.lt.s32.totalorder (!%p138_p2), %s921_s13, 1 }
   0x6   : > { %141 = sbr.rel (%p138_p2) target bundleno = 321 (0x141), region = 32  ;;  %1032 = vmatprep.subr.bf16.mxu0 (!%p138_p2), %v1171_v1  ;;  %1056 = vmatprep.subr.bf16.mxu1 (!%p138_p2), %v1171_v1  ;;  %v1143_v4 = vld [vmem:[%s1404_s1 + $0x8] sm:$0xff] (!%p138_p2)   ;;  %vm265_vm1 = vcmask (!%p138_p2), 261120   ;;  %v1147_v5 = vld [vmem:[%s1404_s1 + $0x30] sm:$0xff] (!%p138_p2)   ;;  %v1151_v12 = vld [vmem:[%s1404_s1 + $0x38] sm:$0xff] (!%p138_p2)   ;;  %vm671_vm3 = vcmask (!%p138_p2), 1046528  }
   0x7   : > { %1033 = vmatpush3.bf16.msra.mxu0 (!%p138_p2), %v1140_v0  ;;  %1060 = vmatprep.mubr.msk.bf16.mxu1 (!%p138_p2), %vm1172_vm0, %v1171_v1  ;;  %vm213_vm2 = vsmask.f32 (!%p138_p2), 7424  ;;  %v1146_v15 = vld [vmem:[%s1404_s1 + $0x20] sm:$0xff] (!%p138_p2)   ;;  %v1150_v20 = vld [vmem:[%s1404_s1 + $0x28] sm:$0xff] (!%p138_p2)   ;;  %vm851_vm4 = vcmask (!%p138_p2), 125952  }
   0x8   : > { %1057 = vmatpush3.bf16.msra.mxu1 (!%p138_p2), %v1141_v2  ;;  %1034 = vmatprep.subr.bf16.mxu0 (!%p138_p2), %v1171_v1  ;;  %vm861_vm5 = vsmask.f32 (!%p138_p2), 3328 }
   0x9   : > { %1058 = vmatprep.subr.bf16.mxu1 (!%p138_p2), %v1171_v1  ;;  %1036 = vmatprep.mubr.msk.bf16.mxu0 (!%p138_p2), %vm1172_vm0, %v1171_v1  ;;  %vm862_vm6 = vmand (!%p138_p2), %vm851_vm4, %vm861_vm5 }
   0xb   : > { %1035 = vmatpush3.bf16.msra.mxu0 (!%p138_p2), %v1142_v3 }
   0xc   : > { %1059 = vmatpush3.bf16.msra.mxu1 (!%p138_p2), %v1143_v4  ;;  %1080 = vmatprep.subr.bf16.mxu0 (!%p138_p2), %v1171_v1 }
   0xd   : > { %s1408_s13 = smov (!%p161_p3, %s921_s13), 1  ;;  %1104 = vmatprep.subr.bf16.mxu1 %v1171_v1 }
   0xe   : > { %s1128_s22 = smul.u32 44, %s1408_s13 }
   0xf   : > { %s1129_s9 = smul.u32 36, %s1408_s13 }
  0x10   : > { %s1228_s25 = scalar_lea.vmem %s1403_s0, %s1128_s22 }
  0x11   : > { %v1144_v6 = vld [vmem:[%s1228_s25] sm:$0xff]   ;;  %v1145_v7 = vld [vmem:[%s1228_s25 + $0x8] sm:$0xff]   ;;  %v1148_v11 = vld [vmem:[%s1228_s25 + $0x10] sm:$0xff]   ;;  %s1366_s14 = scalar_lea.vmem %s1406_s3, %s1129_s9 }
  0x12   : > { %1061 = vmatmul.mubr.msk.bf16.vlgmr.msra.gmra.mrb[0].mxu1 %vm265_vm1, %v1144_v6  ;;  %v215_v8 = vshrl.u32 %v1144_v6, 16  ;;  %v217_v9 = vshll.u32 %v1144_v6, 16  ;;  %v222_v10 = vshll.u32 %v1145_v7, 16  ;;  %v226_v17 = vshrl.u32 %v1145_v7, 16  ;;  %v1149_v23 = vld [vmem:[%s1228_s25 + $0x18] sm:$0xff]   ;;  %v1155_v45 = vld [vmem:[%s1228_s25 + $0x4] sm:$0xff]  }
  0x13   : > { %1105 = vmatpush3.bf16.msra.mxu1 %v1147_v5  ;;  %1064 = vmatprep.mubr.msk.bf16.mxu1 %vm1172_vm0, %v1171_v1  ;;  %v230_v18 = vshll.u32 %v1148_v11, 16  ;;  %v234_v24 = vshrl.u32 %v1148_v11, 16  ;;  %v238_v26 = vshll.u32 %v1149_v23, 16  ;;  %v1160_v27 = vld [vmem:[%s1228_s25 + $0x1c] sm:$0xff]   ;;  %v1263_v30 = vld [vmem:[%s1228_s25 + $0x24] ss:$0 sps:$4 sm:$0xff]  }
  0x14   : > { %v219_v13 = vrot.slane %v217_v9, 1  ;;  %1106 = vmatprep.subr.bf16.mxu1 %v1171_v1  ;;  %v224_v14 = vrot.slane %v222_v10, 1  ;;  %v508_v28 = vshll.u32 %v1160_v27, 16  ;;  %v512_v29 = vshrl.u32 %v1160_v27, 16  ;;  %v1152_v33 = vld [vmem:[%s1228_s25 + $0x20] ss:$0 sps:$4 sm:$0xff]  }
  0x15   : > { %v232_v22 = vrot.slane %v230_v18, 1  ;;  %v240_v32 = vrot.slane %v238_v26, 1  ;;  %v516_v35 = vshll.u32 %v1263_v30, 16  ;;  %v242_v39 = vshrl.u32 %v1149_v23, 16  ;;  %v1153_v46 = vld [vmem:[%s1228_s25 + $0x4] sm:$0xfe]  }
  0x16   : > { %v220_v16 = vor.u32 %v219_v13, %v215_v8  ;;  %v228_v21 = vor.u32 %v226_v17, %v224_v14  ;;  %v1268_v34 = vrot.slane %v508_v28, 1  ;;  %v246_v40 = vshll.u32 %v1152_v33, 16  ;;  %v1154_v47 = vld [vmem:[%s1228_s25 + $0xc] sm:$0xff]   ;;  %v1157_v58 = vld [vmem:[%s1228_s25 + $0x14] sm:$0xff]   ;;  %v1159_v4 = vld [vmem:[%s1228_s25 + $0x1c] sm:$0xff]  }
  0x17   : > { %1107 = vmatpush3.bf16.msra.mxu1 %v1151_v12  ;;  %v236_v31 = vor.u32 %v234_v24, %v232_v22  ;;  %v1275_v37 = vrot.slane %v516_v35, 1  ;;  %v244_v42 = vor.u32 %v242_v39, %v240_v32  ;;  %v250_v48 = vshrl.u32 %v1152_v33, 16  ;;  %v1156_v49 = vld [vmem:[%s1228_s25 + $0xc] sm:$0xff]   ;;  %v1158_v61 = vld [vmem:[%s1228_s25 + $0x14] sm:$0xff]  }
  0x18   : > { %v225_v19 = vsel %vm213_vm2, %v220_v16, %v224_v14  ;;  %v233_v25 = vsel %vm213_vm2, %v228_v21, %v232_v22  ;;  %v514_v36 = vor.u32 %v512_v29, %v1268_v34  ;;  %v248_v43 = vrot.slane %v246_v40, 1 }
  0x19   : > { %1037 = vmatmul.mubr.msk.bf16.vlgmr.msra.gmra.mrb[0].mxu0 %vm265_vm1, %v225_v19  ;;  %v241_v38 = vsel %vm213_vm2, %v236_v31, %v240_v32  ;;  %v487_v50 = vshll.u32 %v1155_v45, 16  ;;  %v672_v51 = vrot.slane %v1153_v46, 1  ;;  %v673_v52 = vrot.slane %v1154_v47, 1 }
  0x1a   : > { %1081 = vmatpush3.bf16.msra.mxu0 %v1146_v15  ;;  %1040 = vmatprep.mubr.msk.bf16.mxu0 %vm1172_vm0, %v1171_v1  ;;  %v1280_v41 = vsel %vm213_vm2, %v514_v36, %v1275_v37  ;;  %v249_v44 = vsel %vm213_vm2, %v244_v42, %v248_v43  ;;  %v252_v53 = vor.u32 %v250_v48, %v248_v43  ;;  %v485_v54 = vshrl.u32 %v1155_v45, 16 }
  0x1b   : > { %1065 = vmatmul.mubr.msk.bf16.gmra.mrb[4].mxu1 %vm265_vm1, %v1145_v7  ;;  %1082 = vmatprep.subr.bf16.mxu0 %v1171_v1  ;;  %v489_v55 = vrot.slane %v487_v50, 1  ;;  %v492_v56 = vshll.u32 %v1156_v49, 16  ;;  %v674_v57 = vsel %vm671_vm3, %v672_v51, %v673_v52  ;;  %v675_v62 = vrot.slane %v1157_v58, 1 }
  0x1c   : > { %1068 = vmatprep.mubr.msk.bf16.mxu1 %vm1172_vm0, %v1171_v1  ;;  %v496_v0 = vshrl.u32 %v1156_v49, 16  ;;  %v500_v2 = vshll.u32 %v1158_v61, 16  ;;  %v677_v7 = vrot.slane %v1159_v4, 1  ;;  %v504_v9 = vshrl.u32 %v1158_v61, 16 }
  0x1d   : > { %v490_v59 = vor.u32 %v489_v55, %v485_v54  ;;  %v494_v60 = vrot.slane %v492_v56, 1  ;;  %v676_v3 = vsel %vm671_vm3, %v673_v52, %v675_v62  ;;  %v520_v16 = vshrl.u32 %v1263_v30, 16 }
  0x1e   : > { %1083 = vmatpush3.bf16.msra.mxu0 %v1150_v20  ;;  %v502_v6 = vrot.slane %v500_v2, 1  ;;  %v678_v10 = vsel %vm671_vm3, %v675_v62, %v677_v7 }
  0x1f   : > { %v495_v63 = vsel %vm213_vm2, %v490_v59, %v494_v60  ;;  %v498_v5 = vor.u32 %v496_v0, %v494_v60  ;;  %v522_v17 = vor.u32 %v520_v16, %v1275_v37 }
  0x20   : > { %v506_v12 = vor.u32 %v504_v9, %v502_v6 }
  0x21   : > { %1041 = vmatmul.mubr.msk.bf16.gmra.mrb[4].mxu0 %vm265_vm1, %v233_v25  ;;  %v503_v8 = vsel %vm213_vm2, %v498_v5, %v502_v6 }
  0x22   : > { %1044 = vmatprep.mubr.msk.bf16.mxu0 %vm1172_vm0, %v1171_v1  ;;  %v511_v14 = vsel %vm213_vm2, %v506_v12, %v1268_v34 }
  0x23   : > { %1069 = vmatmul.mubr.msk.bf16.gmra.mrb[8].mxu1 %vm265_vm1, %v1148_v11  ;;  %v1161_v11 = vld [vmem:[%s1228_s25 + $0x24] sm:$0x1f]  }
  0x24   : > { %1072 = vmatprep.mubr.msk.bf16.mxu1 %vm1172_vm0, %v1171_v1  ;;  %v679_v13 = vrot.slane %v1161_v11, 1 }
  0x26   : > { %v680_v15 = vsel %vm671_vm3, %v677_v7, %v679_v13 }
  0x29   : > { %1045 = vmatmul.mubr.msk.bf16.gmra.mrb[8].mxu0 %vm265_vm1, %v241_v38 }
  0x2a   : > { %1048 = vmatprep.mubr.msk.bf16.mxu0 %vm1172_vm0, %v1171_v1 }
  0x2b   : > { %1073 = vmatmul.mubr.msk.bf16.gmra.mrb[12].mxu1 %vm265_vm1, %v1149_v23 }
  0x2c   : > { %1076 = vmatprep.mubr.msk.bf16.mxu1 %vm1172_vm0, %v1171_v1 }
  0x31   : > { %1049 = vmatmul.mubr.msk.bf16.gmra.mrb[12].mxu0 %vm265_vm1, %v249_v44 }
  0x32   : > { %1052 = vmatprep.mubr.msk.bf16.mxu0 %vm1172_vm0, %v1171_v1 }
  0x33   : > { %1077 = vmatmul.mubr.msk.bf16.gmra.mrb[16].mxu1 %vm265_vm1, %v1152_v33 }
  0x34   : > { %1108 = vmatprep.mubr.msk.bf16.mxu1 %vm1172_vm0, %v1171_v1 }
  0x39   : > { %1053 = vmatmul.mubr.msk.bf16.gmra.mrb[16].mxu0 %vm265_vm1, %v252_v53 }
  0x3a   : > { %1084 = vmatprep.mubr.msk.bf16.mxu0 %vm1172_vm0, %v1171_v1 }
  0x3b   : > { %1109 = vmatmul.mubr.msk.bf16.vlgmr.msra.gmra.mrb[20].mxu1 %vm265_vm1, %v674_v57 }
  0x3c   : > { %1112 = vmatprep.mubr.msk.bf16.mxu1 %vm1172_vm0, %v1171_v1 }
  0x41   : > { %1085 = vmatmul.mubr.msk.bf16.vlgmr.msra.gmra.mrb[20].mxu0 %vm265_vm1, %v495_v63 }
  0x42   : > { %1088 = vmatprep.mubr.msk.bf16.mxu0 %vm1172_vm0, %v1171_v1 }
  0x43   : > { %1113 = vmatmul.mubr.msk.bf16.gmra.mrb[24].mxu1 %vm265_vm1, %v676_v3 }
  0x44   : > { %1116 = vmatprep.mubr.msk.bf16.mxu1 %vm1172_vm0, %v1171_v1 }
  0x49   : > { %1089 = vmatmul.mubr.msk.bf16.gmra.mrb[24].mxu0 %vm265_vm1, %v503_v8 }
  0x4a   : > { %1092 = vmatprep.mubr.msk.bf16.mxu0 %vm1172_vm0, %v1171_v1 }
  0x4b   : > { %1117 = vmatmul.mubr.msk.bf16.gmra.mrb[28].mxu1 %vm265_vm1, %v678_v10  ;;  %v1358_v10 = vld [vmem:[%s1405_s2] ss:$0 sm:$0xff] }
  0x4c   : > { %1120 = vmatprep.mubr.msk.bf16.mxu1 %vm1172_vm0, %v1171_v1 }
  0x51   : > { %1093 = vmatmul.mubr.msk.bf16.gmra.mrb[28].mxu0 %vm265_vm1, %v511_v14 }
  0x52   : > { %1096 = vmatprep.mubr.msk.bf16.mxu0 %vm1172_vm0, %v1171_v1 }
  0x53   : > { %1121 = vmatmul.mubr.msk.bf16.gmra.mrb[32].mxu1 %vm265_vm1, %v680_v15 }
  0x54   : > { %1124 = vmatprep.mubr.msk.bf16.mxu1 %vm1172_vm0, %v1171_v1 }
  0x59   : > { %1097 = vmatmul.mubr.msk.bf16.gmra.mrb[32].mxu0 %vm265_vm1, %v1280_v41 }
  0x5a   : > { %1100 = vmatprep.mubr.msk.bf16.mxu0 %vm1172_vm0, %v1171_v1 }
  0x5b   : > { %1125 = vmatmul.mubr.msk.bf16.gmra.mrb[36].mxu1 %vm265_vm1, %v679_v13 }
  0x61   : > { %1101 = vmatmul.mubr.msk.bf16.gmra.mrb[36].mxu0 %vm265_vm1, %v522_v17 }
  0xe5   : > { %v409_v18 = vpop.f32.mrb[0].mxu1 }
  0xe6   : > { %v1062_v19 = vpop.f32.mrb[1].mxu1 }
  0xe7   : > { %v412_v20 = vpop.f32.mrb[2].mxu1 }
  0xe8   : > { %v1063_v21 = vpop.f32.mrb[3].mxu1 }
  0xec   : > { %v315_v22 = vpop.f32.mrb[0].mxu0 }
  0xed   : > { %v410_v23 = vadd.f32 %v409_v18, %v315_v22  ;;  %v1038_v24 = vpop.f32.mrb[1].mxu0 }
  0xee   : > { %v318_v25 = vpop.f32.mrb[2].mxu0  ;;  %v417_v26 = vpop.f32.mrb[4].mxu1 }
  0xef   : > { %v413_v27 = vadd.f32 %v412_v20, %v318_v25  ;;  %v1039_v28 = vpop.f32.mrb[3].mxu0  ;;  %v1066_v29 = vpop.f32.mrb[5].mxu1 }
  0xf0   : > { %v420_v30 = vpop.f32.mrb[6].mxu1 }
  0xf1   : > { %v1067_v1 = vpop.f32.mrb[7].mxu1 }
  0xf4   : > { %v323_v31 = vpop.f32.mrb[4].mxu0 }
  0xf5   : > { %v418_v32 = vadd.f32 %v417_v26, %v323_v31  ;;  %v1042_v33 = vpop.f32.mrb[5].mxu0 }
  0xf6   : > { %v326_v34 = vpop.f32.mrb[6].mxu0  ;;  %v425_v35 = vpop.f32.mrb[8].mxu1 }
  0xf7   : > { %v1343_v36 = vadd.f32 %v420_v30, %v326_v34  ;;  %v1043_v37 = vpop.f32.mrb[7].mxu0  ;;  %v1070_v38 = vpop.f32.mrb[9].mxu1 }
  0xf8   : > { %v428_v39 = vpop.f32.mrb[10].mxu1 }
  0xf9   : > { %v1071_v40 = vpop.f32.mrb[11].mxu1 }
  0xfc   : > { %v331_v41 = vpop.f32.mrb[8].mxu0 }
  0xfd   : > { %v1345_v42 = vadd.f32 %v425_v35, %v331_v41  ;;  %v1046_v43 = vpop.f32.mrb[9].mxu0 }
  0xfe   : > { %v334_v44 = vpop.f32.mrb[10].mxu0  ;;  %v433_v45 = vpop.f32.mrb[12].mxu1 }
  0xff   : > { %v1347_v46 = vadd.f32 %v428_v39, %v334_v44  ;;  %v1047_v47 = vpop.f32.mrb[11].mxu0  ;;  %v1074_v48 = vpop.f32.mrb[13].mxu1 }
 0x100   : > { %v436_v49 = vpop.f32.mrb[14].mxu1 }
 0x101   : > { %v1075_v50 = vpop.f32.mrb[15].mxu1 }
 0x104   : > { %v339_v51 = vpop.f32.mrb[12].mxu0 }
 0x105   : > { %v1349_v52 = vadd.f32 %v433_v45, %v339_v51  ;;  %v1050_v53 = vpop.f32.mrb[13].mxu0 }
 0x106   : > { %v342_v54 = vpop.f32.mrb[14].mxu0  ;;  %v441_v55 = vpop.f32.mrb[16].mxu1 }
 0x107   : > { %v1351_v56 = vadd.f32 %v436_v49, %v342_v54  ;;  %v1051_v57 = vpop.f32.mrb[15].mxu0  ;;  %v1078_v58 = vpop.f32.mrb[17].mxu1 }
 0x108   : > { %v444_v59 = vpop.f32.mrb[18].mxu1 }
 0x109   : > { %v1079_v60 = vpop.f32.mrb[19].mxu1 }
 0x10c   : > { %v347_v61 = vpop.f32.mrb[16].mxu0 }
 0x10d   : > { %v1353_v62 = vadd.f32 %v441_v55, %v347_v61  ;;  %v1054_v63 = vpop.f32.mrb[17].mxu0 }
 0x10e   : > { %v350_v0 = vpop.f32.mrb[18].mxu0  ;;  %v742_v2 = vpop.f32.mrb[20].mxu1 }
 0x10f   : > { %v1055_v3 = vpop.f32.mrb[19].mxu0  ;;  %v1110_v4 = vpop.f32.mrb[21].mxu1 }
 0x110   : > { %v745_v5 = vpop.f32.mrb[22].mxu1 }
 0x111   : > { %v1111_v6 = vpop.f32.mrb[23].mxu1 }
 0x114   : > { %v584_v7 = vpop.f32.mrb[20].mxu0 }
 0x115   : > { %v622_v8 = vadd.f32 %v584_v7, %v410_v23  ;;  %v1086_v9 = vpop.f32.mrb[21].mxu0 }
 0x116   : > { %v587_v11 = vpop.f32.mrb[22].mxu0  ;;  %v750_v12 = vpop.f32.mrb[24].mxu1 }
 0x117   : > { %v780_v13 = vadd.f32 %v742_v2, %v622_v8  ;;  %v623_v14 = vadd.f32 %v587_v11, %v413_v27  ;;  %v1087_v15 = vpop.f32.mrb[23].mxu0  ;;  %v1114_v16 = vpop.f32.mrb[25].mxu1 }
 0x118   : > { %v753_v17 = vpop.f32.mrb[26].mxu1 }
 0x119   : > { %v796_v18 = vadd.f32 %v1358_v10, %v780_v13  ;;  %v781_v19 = vadd.f32 %v745_v5, %v623_v14  ;;  %v1115_v20 = vpop.f32.mrb[27].mxu1 }
 0x11b   : > { %v805_v21 = vmax.f32 %v796_v18, 0.0  ;;  %v797_v22 = vadd.f32 %v1358_v10, %v781_v19 }
 0x11c   : > { %v592_v23 = vpop.f32.mrb[24].mxu0 }
 0x11d   : > { %v995_v24 = vpack.c.bf16 %v805_v21, %v805_v21  ;;  %v806_v25 = vmax.f32 %v797_v22, 0.0  ;;  %v624_v26 = vadd.f32 %v592_v23, %v418_v32  ;;  %v1090_v27 = vpop.f32.mrb[25].mxu0 }
 0x11e   : > { %v595_v28 = vpop.f32.mrb[26].mxu0  ;;  %v758_v29 = vpop.f32.mrb[28].mxu1 }
 0x11f   : > { %852 = vst.msk [vmem:[%s1366_s14] sm:$0xf] %vm851_vm4, %v995_v24  ;;  %v996_v30 = vpack.c.bf16 %v806_v25, %v806_v25  ;;  %v782_v1 = vadd.f32 %v750_v12, %v624_v26  ;;  %v625_v31 = vadd.f32 %v595_v28, %v1343_v36  ;;  %v1091_v33 = vpop.f32.mrb[27].mxu0  ;;  %v1118_v34 = vpop.f32.mrb[29].mxu1  ;;  %v863_v26 = vld [vmem:[%s1366_s14 + $0x20] sm:$0xf] }
 0x120   : > { %v761_v35 = vpop.f32.mrb[30].mxu1 }
 0x121   : > { %853 = vst.msk [vmem:[%s1366_s14 + $0x4] sm:$0xf] %vm851_vm4, %v996_v30  ;;  %v798_v37 = vadd.f32 %v1358_v10, %v782_v1  ;;  %v783_v38 = vadd.f32 %v753_v17, %v625_v31  ;;  %v1119_v39 = vpop.f32.mrb[31].mxu1 }
 0x123   : > { %v807_v32 = vmax.f32 %v798_v37, 0.0  ;;  %v799_v40 = vadd.f32 %v1358_v10, %v783_v38 }
 0x124   : > { %v600_v41 = vpop.f32.mrb[28].mxu0 }
 0x125   : > { %v997_v43 = vpack.c.bf16 %v807_v32, %v807_v32  ;;  %v808_v44 = vmax.f32 %v799_v40, 0.0  ;;  %v626_v45 = vadd.f32 %v600_v41, %v1345_v42  ;;  %v1094_v36 = vpop.f32.mrb[29].mxu0 }
 0x126   : > { %v603_v47 = vpop.f32.mrb[30].mxu0  ;;  %v766_v48 = vpop.f32.mrb[32].mxu1 }
 0x127   : > { %854 = vst.msk [vmem:[%s1366_s14 + $0x8] sm:$0xf] %vm851_vm4, %v997_v43  ;;  %v998_v49 = vpack.c.bf16 %v808_v44, %v808_v44  ;;  %v784_v50 = vadd.f32 %v758_v29, %v626_v45  ;;  %v627_v51 = vadd.f32 %v603_v47, %v1347_v46  ;;  %v1095_v53 = vpop.f32.mrb[31].mxu0  ;;  %v1122_v54 = vpop.f32.mrb[33].mxu1 }
 0x128   : > { %v769_v55 = vpop.f32.mrb[34].mxu1 }
 0x129   : > { %855 = vst.msk [vmem:[%s1366_s14 + $0xc] sm:$0xf] %vm851_vm4, %v998_v49  ;;  %v800_v57 = vadd.f32 %v1358_v10, %v784_v50  ;;  %v785_v58 = vadd.f32 %v761_v35, %v627_v51  ;;  %v1123_v59 = vpop.f32.mrb[35].mxu1 }
 0x12b   : > { %v809_v42 = vmax.f32 %v800_v57, 0.0  ;;  %v801_v60 = vadd.f32 %v1358_v10, %v785_v58 }
 0x12c   : > { %v608_v61 = vpop.f32.mrb[32].mxu0 }
 0x12d   : > { %v999_v63 = vpack.c.bf16 %v809_v42, %v809_v42  ;;  %v810_v0 = vmax.f32 %v801_v60, 0.0  ;;  %v628_v2 = vadd.f32 %v608_v61, %v1349_v52  ;;  %v1098_v46 = vpop.f32.mrb[33].mxu0 }
 0x12e   : > { %v611_v3 = vpop.f32.mrb[34].mxu0  ;;  %v774_v4 = vpop.f32.mrb[36].mxu1 }
 0x12f   : > { %856 = vst.msk [vmem:[%s1366_s14 + $0x10] sm:$0xf] %vm851_vm4, %v999_v63  ;;  %v1000_v5 = vpack.c.bf16 %v810_v0, %v810_v0  ;;  %v786_v6 = vadd.f32 %v766_v48, %v628_v2  ;;  %v629_v7 = vadd.f32 %v611_v3, %v1351_v56  ;;  %v1099_v8 = vpop.f32.mrb[35].mxu0  ;;  %v1126_v9 = vpop.f32.mrb[37].mxu1 }
 0x130   : > { %v777_v11 = vpop.f32.mrb[38].mxu1 }
 0x131   : > { %857 = vst.msk [vmem:[%s1366_s14 + $0x14] sm:$0xf] %vm851_vm4, %v1000_v5  ;;  %v802_v12 = vadd.f32 %v1358_v10, %v786_v6  ;;  %v787_v13 = vadd.f32 %v769_v55, %v629_v7  ;;  %v1127_v52 = vpop.f32.mrb[39].mxu1 }
 0x133   : > { %v811_v14 = vmax.f32 %v802_v12, 0.0  ;;  %v803_v15 = vadd.f32 %v1358_v10, %v787_v13 }
 0x134   : > { %v616_v16 = vpop.f32.mrb[36].mxu0 }
 0x135   : > { %v1001_v17 = vpack.c.bf16 %v811_v14, %v811_v14  ;;  %v812_v18 = vmax.f32 %v803_v15, 0.0  ;;  %v630_v56 = vadd.f32 %v616_v16, %v1353_v62  ;;  %v1102_v19 = vpop.f32.mrb[37].mxu0 }
 0x136   : > { %v619_v20 = vpop.f32.mrb[38].mxu0 }
 0x137   : > { %858 = vst.msk [vmem:[%s1366_s14 + $0x18] sm:$0xf] %vm851_vm4, %v1001_v17  ;;  %v1002_v21 = vpack.c.bf16 %v812_v18, %v812_v18  ;;  %v788_v22 = vadd.f32 %v774_v4, %v630_v56  ;;  %v1103_v23 = vpop.f32.mrb[39].mxu0 }
 0x139   : > { %859 = vst.msk [vmem:[%s1366_s14 + $0x1c] sm:$0xf] %vm851_vm4, %v1002_v21  ;;  %v804_v24 = vadd.f32 %v1358_v10, %v788_v22 }
 0x13b   : > { %v813_v25 = vmax.f32 %v804_v24, 0.0 }
 0x13d   : > { %v1003_v27 = vpack.c.bf16 %v813_v25, %v813_v25 }
 0x13f   : > { %v864_v28 = vsel %vm862_vm6, %v1003_v27, %v863_v26 }
 0x140   : > { %865 = vst [vmem:[%s1366_s14 + $0x20] sm:$0xf] %v864_v28 }
 0x141 PF: > { %s13_s12 = sadd.s32 1, %s1169_s12  }
 0x142   : > { %p10_p4 = scmp.ge.s32.totalorder %s13_s12, 4  }
 0x144   :  { %12 = sbr.rel (!%p10_p4) target bundleno = 1 (0x1), region = 65 }

// kernel: _lambda_.8
= control target key start
LH: loop header
LB: loop body
LE: loop exit
PB: predicated region body
PF: predicated region fallthrough
CT: control target
= control target key end

     0   :  { %s888_s12 = smov 0   ;;  %s979_s0 = inlined_call_operand.vmem [shape: bf16[2,25,64], index: 0, kind: input, shape index: {}]   ;;  %s980_s1 = inlined_call_operand.vmem [shape: bf16[4,64,32], index: 1, kind: input, shape index: {}]   ;;  %s981_s2 = inlined_call_operand.vmem [shape: f32[1,32], index: 2, kind: input, shape index: {}]   ;;  %s982_s3 = inlined_call_operand.vmem [shape: bf16[2,19,32], index: 3, kind: output, shape index: {}]  }
   0x1 LB: > { %s685_s13 = sadd.s32 4294967295, %s866_s12   ;;  %p689_p0 = scmp.ge.s32.totalorder %s866_s12, 1  ;;  %s866_s12 = sphi %s888_s12, %s13_s12  }
   0x2   : > { %p137_p1 = scmp.lt.s32.totalorder %s866_s12, 3 }
   0x4   : > { %p138_p2 = pnand %p689_p0, %p137_p1 }
   0x5   : > { %v838_v0 = vld [vmem:[%s980_s1 + $0x20] sm:$0xff] (!%p138_p2)   ;;  %p161_p3 = scmp.lt.s32.totalorder (!%p138_p2), %s685_s13, 1  ;;  %v840_v2 = vld [vmem:[%s980_s1 + $0x28] sm:$0xff] (!%p138_p2)   ;;  %v842_v4 = vld [vmem:[%s980_s1 + $0x30] sm:$0xff] (!%p138_p2)   ;;  %vm240_vm0 = vcmask (!%p138_p2), 523264   ;;  %vm510_vm2 = vcmask (!%p138_p2), 1044480  }
   0x6   : > { %141 = sbr.rel (%p138_p2) target bundleno = 269 (0x10d), region = 32  ;;  %v839_v1 = vld [vmem:[%s980_s1] sm:$0xff] (!%p138_p2)   ;;  %781 = vmatprep.subr.bf16.mxu0 (!%p138_p2), %v838_v0  ;;  %v841_v3 = vld [vmem:[%s980_s1 + $0x8] sm:$0xff] (!%p138_p2)   ;;  %v843_v5 = vld [vmem:[%s980_s1 + $0x10] sm:$0xff] (!%p138_p2)   ;;  %vm200_vm1 = vsmask.f32 (!%p138_p2), 7424 }
   0x7   : > { %793 = vmatprep.subr.bf16.mxu1 (!%p138_p2), %v839_v1  ;;  %782 = vmatpush3.bf16.msra.mxu0 (!%p138_p2), %v838_v0  ;;  %v844_v6 = vld [vmem:[%s980_s1 + $0x38] sm:$0xff] (!%p138_p2)   ;;  %v848_v16 = vld [vmem:[%s980_s1 + $0x40] sm:$0xff] (!%p138_p2)   ;;  %v850_v22 = vld [vmem:[%s980_s1 + $0x48] sm:$0xff] (!%p138_p2)   ;;  %vm388_vm3 = vsmask.f32 (!%p138_p2), 5376  ;;  %vm624_vm4 = vcmask (!%p138_p2), 254976  }
   0x8   : > { %794 = vmatpush3.bf16.msra.mxu1 (!%p138_p2), %v839_v1  ;;  %783 = vmatprep.subr.bf16.mxu0 (!%p138_p2), %v840_v2  ;;  %v845_v9 = vld [vmem:[%s980_s1 + $0x18] sm:$0xff] (!%p138_p2)   ;;  %v849_v19 = vld [vmem:[%s980_s1 + $0x60] sm:$0xff] (!%p138_p2)   ;;  %v851_v24 = vld [vmem:[%s980_s1 + $0x68] sm:$0xff] (!%p138_p2)   ;;  %vm625_vm5 = vsmask.f32 (!%p138_p2), 1280  ;;  %vm621_vm7 = vcmask (!%p138_p2), 257024  }
   0x9   : > { %795 = vmatprep.subr.bf16.mxu1 (!%p138_p2), %v841_v3  ;;  %v852_v26 = vld [vmem:[%s980_s1 + $0x50] sm:$0xff] (!%p138_p2)   ;;  %v854_v42 = vld [vmem:[%s980_s1 + $0x58] sm:$0xff] (!%p138_p2)   ;;  %v747_v0 = vld [vmem:[%s981_s2] ss:$0 sm:$0xff] (!%p138_p2) }
   0xa   : > { %v853_v27 = vld [vmem:[%s980_s1 + $0x70] sm:$0xff] (!%p138_p2)   ;;  %v855_v43 = vld [vmem:[%s980_s1 + $0x78] sm:$0xff] (!%p138_p2)   ;;  %vm626_vm6 = vmand (!%p138_p2), %vm624_vm4, %vm625_vm5 }
   0xb   : > { %784 = vmatpush3.bf16.msra.mxu0 (!%p138_p2), %v840_v2 }
   0xc   : > { %796 = vmatpush3.bf16.msra.mxu1 (!%p138_p2), %v841_v3  ;;  %785 = vmatprep.subr.bf16.mxu0 (!%p138_p2), %v842_v4 }
   0xd   : > { %s984_s13 = smov (!%p161_p3, %s685_s13), 1  ;;  %797 = vmatprep.subr.bf16.mxu1 %v843_v5 }
   0xe   : > { %s753_s24 = sshll.u32 %s984_s13, 4  ;;  %s829_s25 = smul.u32 12, %s984_s13 }
   0xf   : > { %s920_s29 = scalar_lea.vmem %s979_s0, %s753_s24  ;;  %786 = vmatpush3.bf16.msra.mxu0 %v842_v4 }
  0x10   : > { %v172_v7 = vld [vmem:[%s920_s29] sm:$0xf]  ;;  %v173_v8 = vld [vmem:[%s920_s29 + $0x4] sm:$0xf]  ;;  %798 = vmatpush3.bf16.msra.mxu1 %v843_v5  ;;  %787 = vmatprep.subr.bf16.mxu0 %v844_v6  ;;  %v857_v29 = vld [vmem:[%s920_s29 + $0x8] ss:$0 sps:$4 sm:$0xff]   ;;  %s170_s30 = scalar_lea.vmem %s982_s3, %s829_s25 }
  0x11   : > { %v701_v10 = vcombine.low %v172_v7, %v173_v8  ;;  %v847_v11 = vld [vmem:[%s920_s29 + $0x8] ss:$0 sps:$4 sm:$0x33]   ;;  %799 = vmatprep.subr.bf16.mxu1 %v845_v9  ;;  %v371_v25 = vld [vmem:[%s920_s29] sm:$0xc]  ;;  %v398_v32 = vshrl.u32 %v857_v29, 16 }
  0x12   : > { %v209_v14 = vshll.u32 %v847_v11, 16  ;;  %v213_v15 = vshrl.u32 %v847_v11, 16  ;;  %v723_v28 = vcombine.low %v371_v25, %v173_v8  ;;  %v401_v33 = vshll.u32 %v857_v29, 16  ;;  %v858_v34 = vld [vmem:[%s920_s29] sm:$0xf8]  }
  0x13   : > { %v202_v12 = vshrl.u32 %v701_v10, 16  ;;  %v204_v13 = vshll.u32 %v701_v10, 16  ;;  %801 = vmatprep.mubr.msk.bf16.mxu1 %vm240_vm0, %v701_v10  ;;  %788 = vmatpush3.bf16.msra.mxu0 %v844_v6  ;;  %v859_v35 = vld [vmem:[%s920_s29 + $0x8] sm:$0x1f]   ;;  %v400_v38 = vrot.slane %v398_v32, 2  ;;  %v511_v40 = vrot.slane %v858_v34, 3 }
  0x14   : > { %v211_v18 = vrot.slane %v209_v14, 1  ;;  %800 = vmatpush3.bf16.msra.mxu1 %v845_v9  ;;  %805 = vmatprep.subr.bf16.mxu0 %v848_v16  ;;  %v390_v30 = vshrl.u32 %v723_v28, 16  ;;  %v393_v31 = vshll.u32 %v723_v28, 16  ;;  %v403_v39 = vrot.slane %v401_v33, 3 }
  0x15   : > { %v206_v17 = vrot.slane %v204_v13, 1  ;;  %817 = vmatprep.subr.bf16.mxu1 %v849_v19  ;;  %v512_v41 = vrot.slane %v859_v35, 3  ;;  %v627_v13 = vld [vmem:[%s170_s30 + $0x8] sm:$0x3] }
  0x16   : > { %v215_v21 = vor.u32 %v213_v15, %v211_v18  ;;  %v392_v36 = vrot.slane %v390_v30, 2  ;;  %v395_v37 = vrot.slane %v393_v31, 3  ;;  %v404_v45 = vor.u32 %v403_v39, %v400_v38 }
  0x17   : > { %v207_v20 = vor.u32 %v206_v17, %v202_v12  ;;  %802 = vmatmul.mubr.msk.bf16.vlgmr.msra.gmra.mrb[0].mxu1 %vm240_vm0, %v847_v11  ;;  %v513_v46 = vsel %vm510_vm2, %v511_v40, %v512_v41 }
  0x18   : > { %818 = vmatpush3.bf16.msra.mxu1 %v849_v19  ;;  %v396_v44 = vor.u32 %v395_v37, %v392_v36  ;;  %825 = vmatprep.mubr.msk.bf16.mxu1 %vm240_vm0, %v513_v46 }
  0x19   : > { %v212_v23 = vsel %vm200_vm1, %v207_v20, %v211_v18  ;;  %819 = vmatprep.subr.bf16.mxu1 %v851_v24 }
  0x1a   : > { %789 = vmatprep.mubr.msk.bf16.mxu0 %vm240_vm0, %v212_v23  ;;  %v405_v47 = vsel %vm388_vm3, %v396_v44, %v404_v45 }
  0x1b   : > { %790 = vmatmul.mubr.msk.bf16.vlgmr.msra.gmra.mrb[0].mxu0 %vm240_vm0, %v215_v21 }
  0x1c   : > { %806 = vmatpush3.bf16.msra.mxu0 %v848_v16  ;;  %820 = vmatpush3.bf16.msra.mxu1 %v851_v24 }
  0x1d   : > { %807 = vmatprep.subr.bf16.mxu0 %v850_v22  ;;  %821 = vmatprep.subr.bf16.mxu1 %v853_v27 }
  0x1e   : > { %813 = vmatprep.mubr.msk.bf16.mxu0 %vm240_vm0, %v405_v47 }
  0x20   : > { %808 = vmatpush3.bf16.msra.mxu0 %v850_v22  ;;  %822 = vmatpush3.bf16.msra.mxu1 %v853_v27 }
  0x21   : > { %809 = vmatprep.subr.bf16.mxu0 %v852_v26  ;;  %823 = vmatprep.subr.bf16.mxu1 %v855_v43 }
  0x24   : > { %810 = vmatpush3.bf16.msra.mxu0 %v852_v26  ;;  %824 = vmatpush3.bf16.msra.mxu1 %v855_v43 }
  0x25   : > { %811 = vmatprep.subr.bf16.mxu0 %v854_v42 }
  0x27   : > { %826 = vmatmul.mubr.msk.bf16.vlgmr.msra.gmra.mrb[4].mxu1 %vm240_vm0, %v512_v41 }
  0x28   : > { %812 = vmatpush3.bf16.msra.mxu0 %v854_v42 }
  0x2b   : > { %814 = vmatmul.mubr.msk.bf16.vlgmr.msra.gmra.mrb[4].mxu0 %vm240_vm0, %v404_v45 }
  0xea   : > { %v803_v49 = vpop.f32.mrb[0].mxu1 }
  0xeb   : > { %v357_v52 = vpop.f32.mrb[1].mxu1 }
  0xec   : > { %v804_v55 = vpop.f32.mrb[2].mxu1 }
  0xed   : > { %v360_v57 = vpop.f32.mrb[3].mxu1 }
  0xee   : > { %v791_v48 = vpop.f32.mrb[0].mxu0 }
  0xef   : > { %v366_v50 = vadd.f32 %v803_v49, %v791_v48  ;;  %v281_v51 = vpop.f32.mrb[1].mxu0 }
  0xf0   : > { %v358_v53 = vadd.f32 %v357_v52, %v281_v51  ;;  %v792_v54 = vpop.f32.mrb[2].mxu0 }
  0xf1   : > { %v284_v56 = vpop.f32.mrb[3].mxu0 }
  0xf2   : > { %v361_v58 = vadd.f32 %v360_v57, %v284_v56 }
  0xfa   : > { %v827_v60 = vpop.f32.mrb[4].mxu1 }
  0xfb   : > { %v578_v63 = vpop.f32.mrb[5].mxu1 }
  0xfc   : > { %v828_v3 = vpop.f32.mrb[6].mxu1 }
  0xfd   : > { %v581_v6 = vpop.f32.mrb[7].mxu1 }
  0xfe   : > { %v815_v59 = vpop.f32.mrb[4].mxu0 }
  0xff   : > { %v486_v61 = vadd.f32 %v815_v59, %v366_v50  ;;  %v470_v62 = vpop.f32.mrb[5].mxu0 }
 0x100   : > { %v484_v1 = vadd.f32 %v470_v62, %v358_v53  ;;  %v816_v2 = vpop.f32.mrb[6].mxu0 }
 0x101   : > { %v594_v4 = vadd.f32 %v827_v60, %v486_v61  ;;  %v473_v5 = vpop.f32.mrb[7].mxu0 }
 0x102   : > { %v592_v7 = vadd.f32 %v578_v63, %v484_v1  ;;  %v485_v8 = vadd.f32 %v473_v5, %v361_v58 }
 0x103   : > { %v604_v9 = vadd.f32 %v747_v0, %v594_v4 }
 0x104   : > { %v602_v10 = vadd.f32 %v747_v0, %v592_v7  ;;  %v593_v11 = vadd.f32 %v581_v6, %v485_v8 }
 0x105   : > { %v607_v12 = vmax.f32 %v604_v9, 0.0 }
 0x106   : > { %v605_v14 = vmax.f32 %v602_v10, 0.0  ;;  %v603_v15 = vadd.f32 %v747_v0, %v593_v11 }
 0x107   : > { %v756_v16 = vpack.c.bf16 %v607_v12, %v607_v12 }
 0x108   : > { %v754_v17 = vpack.c.bf16 %v605_v14, %v605_v14  ;;  %v606_v18 = vmax.f32 %v603_v15, 0.0 }
 0x109   : > { %v628_v19 = vsel %vm626_vm6, %v756_v16, %v627_v13 }
 0x10a   : > { %629 = vst [vmem:[%s170_s30 + $0x8] sm:$0x3] %v628_v19  ;;  %622 = vst.msk [vmem:[%s170_s30] sm:$0xf] %vm621_vm7, %v754_v17  ;;  %v755_v20 = vpack.c.bf16 %v606_v18, %v606_v18 }
 0x10c   : > { %623 = vst.msk [vmem:[%s170_s30 + $0x4] sm:$0xf] %vm621_vm7, %v755_v20 }
 0x10d PF: > { %s13_s12 = sadd.s32 1, %s866_s12  }
 0x10e   : > { %p10_p4 = scmp.ge.s32.totalorder %s13_s12, 4  }
 0x110   :  { %12 = sbr.rel (!%p10_p4) target bundleno = 1 (0x1), region = 65 }

// kernel: _lambda_.9
= control target key start
LH: loop header
LB: loop body
LE: loop exit
PB: predicated region body
PF: predicated region fallthrough
CT: control target
= control target key end

     0   :  { %s980_s12 = smov 0   ;;  %s1145_s0 = inlined_call_operand.vmem [shape: bf16[2,9,128], index: 0, kind: input, shape index: {}]   ;;  %s1146_s1 = inlined_call_operand.vmem [shape: bf16[4,128,32], index: 1, kind: input, shape index: {}]   ;;  %s1147_s2 = inlined_call_operand.vmem [shape: f32[1,32], index: 2, kind: input, shape index: {}]   ;;  %s1148_s3 = inlined_call_operand.vmem [shape: bf16[2,5,32], index: 3, kind: output, shape index: {}]  }
   0x1 LB: > { %s694_s13 = sadd.s32 4294967295, %s956_s12   ;;  %p698_p0 = scmp.ge.s32.totalorder %s956_s12, 1  ;;  %s956_s12 = sphi %s980_s12, %s13_s12  }
   0x2   : > { %p137_p1 = scmp.lt.s32.totalorder %s956_s12, 3 }
   0x4   : > { %p138_p2 = pnand %p698_p0, %p137_p1 }
   0x5   : > { %v915_v0 = vld [vmem:[%s1146_s1 + $0x40] sm:$0xff] (!%p138_p2)   ;;  %v958_v1 = vmov (!%p138_p2), 0.0   ;;  %v917_v3 = vld [vmem:[%s1146_s1 + $0x48] sm:$0xff] (!%p138_p2)   ;;  %vm959_vm0 = vmmov (!%p138_p2), 0   ;;  %p160_p3 = scmp.lt.s32.totalorder (!%p138_p2), %s694_s13, 1  ;;  %v919_v5 = vld [vmem:[%s1146_s1 + $0x50] sm:$0xff] (!%p138_p2)  }
   0x6   : > { %141 = sbr.rel (%p138_p2) target bundleno = 294 (0x126), region = 32  ;;  %825 = vmatprep.subr.bf16.mxu0 (!%p138_p2), %v958_v1  ;;  %845 = vmatprep.subr.bf16.mxu1 (!%p138_p2), %v958_v1  ;;  %v916_v2 = vld [vmem:[%s1146_s1] sm:$0xff] (!%p138_p2)   ;;  %v918_v4 = vld [vmem:[%s1146_s1 + $0x8] sm:$0xff] (!%p138_p2)   ;;  %v920_v6 = vld [vmem:[%s1146_s1 + $0x10] sm:$0xff] (!%p138_p2)   ;;  %vm635_vm1 = vcmask (!%p138_p2), 256000  }
   0x7   : > { %826 = vmatpush3.bf16.msra.mxu0 (!%p138_p2), %v915_v0  ;;  %841 = vmatprep.mubr.msk.bf16.mxu0 (!%p138_p2), %vm959_vm0, %v958_v1  ;;  %v921_v7 = vld [vmem:[%s1146_s1 + $0x58] sm:$0xff] (!%p138_p2)   ;;  %v923_v9 = vld [vmem:[%s1146_s1 + $0x60] sm:$0xff] (!%p138_p2)   ;;  %v925_v13 = vld [vmem:[%s1146_s1 + $0x68] sm:$0xff] (!%p138_p2)   ;;  %vm636_vm2 = vsmask.f32 (!%p138_p2), 2304 }
   0x8   : > { %846 = vmatpush3.bf16.msra.mxu1 (!%p138_p2), %v916_v2  ;;  %827 = vmatprep.subr.bf16.mxu0 (!%p138_p2), %v958_v1  ;;  %v922_v8 = vld [vmem:[%s1146_s1 + $0x18] sm:$0xff] (!%p138_p2)   ;;  %v924_v10 = vld [vmem:[%s1146_s1 + $0x20] sm:$0xff] (!%p138_p2)   ;;  %v926_v14 = vld [vmem:[%s1146_s1 + $0x28] sm:$0xff] (!%p138_p2)  }
   0x9   : > { %847 = vmatprep.subr.bf16.mxu1 (!%p138_p2), %v958_v1  ;;  %861 = vmatprep.mubr.msk.bf16.mxu1 (!%p138_p2), %vm959_vm0, %v958_v1  ;;  %v927_v16 = vld [vmem:[%s1146_s1 + $0x70] sm:$0xff] (!%p138_p2)   ;;  %v929_v20 = vld [vmem:[%s1146_s1 + $0x78] sm:$0xff] (!%p138_p2)   ;;  %v932_v23 = vld [vmem:[%s1146_s1 + $0x80] sm:$0xff] (!%p138_p2)  }
   0xa   : > { %v928_v17 = vld [vmem:[%s1146_s1 + $0x30] sm:$0xff] (!%p138_p2)   ;;  %v930_v21 = vld [vmem:[%s1146_s1 + $0x38] sm:$0xff] (!%p138_p2)   ;;  %v933_v24 = vld [vmem:[%s1146_s1 + $0xc0] sm:$0xff] (!%p138_p2)  }
   0xb   : > { %828 = vmatpush3.bf16.msra.mxu0 (!%p138_p2), %v917_v3  ;;  %v934_v25 = vld [vmem:[%s1146_s1 + $0x88] sm:$0xff] (!%p138_p2)   ;;  %v936_v27 = vld [vmem:[%s1146_s1 + $0x90] sm:$0xff] (!%p138_p2)   ;;  %v938_v29 = vld [vmem:[%s1146_s1 + $0x98] sm:$0xff] (!%p138_p2)  }
   0xc   : > { %848 = vmatpush3.bf16.msra.mxu1 (!%p138_p2), %v918_v4  ;;  %829 = vmatprep.subr.bf16.mxu0 (!%p138_p2), %v958_v1  ;;  %v935_v26 = vld [vmem:[%s1146_s1 + $0xc8] sm:$0xff] (!%p138_p2)   ;;  %v937_v28 = vld [vmem:[%s1146_s1 + $0xd0] sm:$0xff] (!%p138_p2)   ;;  %v939_v30 = vld [vmem:[%s1146_s1 + $0xd8] sm:$0xff] (!%p138_p2)  }
   0xd   : > { %s1150_s13 = smov (!%p160_p3, %s694_s13), 1  ;;  %849 = vmatprep.subr.bf16.mxu1 %v958_v1  ;;  %v940_v31 = vld [vmem:[%s1146_s1 + $0xa0] sm:$0xff]   ;;  %v942_v34 = vld [vmem:[%s1146_s1 + $0xa8] sm:$0xff]   ;;  %v944_v38 = vld [vmem:[%s1146_s1 + $0xb0] sm:$0xff]  }
   0xe   : > { %s788_s28 = sshll.u32 %s1150_s13, 3  ;;  %v941_v32 = vld [vmem:[%s1146_s1 + $0xe0] sm:$0xff]   ;;  %v943_v35 = vld [vmem:[%s1146_s1 + $0xe8] sm:$0xff]   ;;  %v945_v39 = vld [vmem:[%s1146_s1 + $0xf0] sm:$0xff]  }
   0xf   : > { %830 = vmatpush3.bf16.msra.mxu0 %v919_v5  ;;  %s1030_s6 = scalar_lea.vmem %s1145_s0, %s788_s28  ;;  %v946_v42 = vld [vmem:[%s1146_s1 + $0xb8] sm:$0xff]   ;;  %v785_v60 = vld [vmem:[%s1147_s2] ss:$0 sm:$0xff]  ;;  %vm637_vm3 = vmand %vm635_vm1, %vm636_vm2 }
  0x10   : > { %850 = vmatpush3.bf16.msra.mxu1 %v920_v6  ;;  %831 = vmatprep.subr.bf16.mxu0 %v958_v1  ;;  %v170_v11 = vld [vmem:[%s1030_s6] sm:$0x7]  ;;  %v947_v44 = vld [vmem:[%s1146_s1 + $0xf8] sm:$0xff]  }
  0x11   : > { %851 = vmatprep.subr.bf16.mxu1 %v958_v1  ;;  %v718_v12 = vcombine.low %v170_v11, %v170_v11  ;;  %v948_v33 = vld [vmem:[%s1030_s6] ss:$0 sps:$4 sm:$0xee]   ;;  %v949_v43 = vld [vmem:[%s1030_s6] sm:$0x1c]   ;;  %s701_s6 = sshll.u32 %s1150_s13, 2 }
  0x12   : > { %v413_v36 = vshrl.u32 %v948_v33, 16  ;;  %v416_v37 = vshll.u32 %v948_v33, 16  ;;  %v534_v46 = vrot.slane %v949_v43, 2  ;;  %s168_s11 = scalar_lea.vmem %s1148_s3, %s701_s6 }
  0x13   : > { %832 = vmatpush3.bf16.msra.mxu0 %v921_v7  ;;  %v210_v15 = vshll.u32 %v718_v12, 16  ;;  %v208_v18 = vshrl.u32 %v718_v12, 16  ;;  %v638_v5 = vld [vmem:[%s168_s11] sm:$0x7] }
  0x14   : > { %852 = vmatpush3.bf16.msra.mxu1 %v922_v8  ;;  %833 = vmatprep.subr.bf16.mxu0 %v958_v1  ;;  %v415_v40 = vrot.slane %v413_v36, 1  ;;  %v418_v41 = vrot.slane %v416_v37, 2 }
  0x15   : > { %853 = vmatprep.subr.bf16.mxu1 %v958_v1  ;;  %v212_v19 = vrot.slane %v210_v15, 1 }
  0x16   : > { %v419_v45 = vor.u32 %v418_v41, %v415_v40 }
  0x17   : > { %834 = vmatpush3.bf16.msra.mxu0 %v923_v9  ;;  %v213_v22 = vor.u32 %v212_v19, %v208_v18 }
  0x18   : > { %854 = vmatpush3.bf16.msra.mxu1 %v924_v10  ;;  %835 = vmatprep.subr.bf16.mxu0 %v958_v1 }
  0x19   : > { %855 = vmatprep.subr.bf16.mxu1 %v958_v1 }
  0x1b   : > { %836 = vmatpush3.bf16.msra.mxu0 %v925_v13 }
  0x1c   : > { %856 = vmatpush3.bf16.msra.mxu1 %v926_v14  ;;  %837 = vmatprep.subr.bf16.mxu0 %v958_v1 }
  0x1d   : > { %857 = vmatprep.subr.bf16.mxu1 %v958_v1 }
  0x1f   : > { %838 = vmatpush3.bf16.msra.mxu0 %v927_v16 }
  0x20   : > { %858 = vmatpush3.bf16.msra.mxu1 %v928_v17  ;;  %839 = vmatprep.subr.bf16.mxu0 %v958_v1 }
  0x21   : > { %859 = vmatprep.subr.bf16.mxu1 %v958_v1 }
  0x23   : > { %840 = vmatpush3.bf16.msra.mxu0 %v929_v20 }
  0x24   : > { %860 = vmatpush3.bf16.msra.mxu1 %v930_v21  ;;  %865 = vmatprep.subr.bf16.mxu0 %v958_v1 }
  0x25   : > { %885 = vmatprep.subr.bf16.mxu1 %v958_v1 }
  0x26   : > { %842 = vmatmul.mubr.bf16.vlgmr.msra.gmra.mrb[0].mxu0 %v213_v22 }
  0x27   : > { %862 = vmatmul.mubr.bf16.vlgmr.msra.gmra.mrb[0].mxu1 %v170_v11  ;;  %866 = vmatpush3.bf16.msra.mxu0 %v932_v23 }
  0x28   : > { %886 = vmatpush3.bf16.msra.mxu1 %v933_v24  ;;  %867 = vmatprep.subr.bf16.mxu0 %v958_v1 }
  0x29   : > { %887 = vmatprep.subr.bf16.mxu1 %v958_v1  ;;  %881 = vmatprep.mubr.msk.bf16.mxu0 %vm959_vm0, %v958_v1 }
  0x2a   : > { %901 = vmatprep.mubr.msk.bf16.mxu1 %vm959_vm0, %v958_v1 }
  0x2b   : > { %868 = vmatpush3.bf16.msra.mxu0 %v934_v25 }
  0x2c   : > { %888 = vmatpush3.bf16.msra.mxu1 %v935_v26  ;;  %869 = vmatprep.subr.bf16.mxu0 %v958_v1 }
  0x2d   : > { %889 = vmatprep.subr.bf16.mxu1 %v958_v1 }
  0x2f   : > { %870 = vmatpush3.bf16.msra.mxu0 %v936_v27 }
  0x30   : > { %890 = vmatpush3.bf16.msra.mxu1 %v937_v28  ;;  %871 = vmatprep.subr.bf16.mxu0 %v958_v1 }
  0x31   : > { %891 = vmatprep.subr.bf16.mxu1 %v958_v1 }
  0x33   : > { %872 = vmatpush3.bf16.msra.mxu0 %v938_v29 }
  0x34   : > { %892 = vmatpush3.bf16.msra.mxu1 %v939_v30  ;;  %873 = vmatprep.subr.bf16.mxu0 %v958_v1 }
  0x35   : > { %893 = vmatprep.subr.bf16.mxu1 %v958_v1 }
  0x37   : > { %874 = vmatpush3.bf16.msra.mxu0 %v940_v31 }
  0x38   : > { %894 = vmatpush3.bf16.msra.mxu1 %v941_v32  ;;  %875 = vmatprep.subr.bf16.mxu0 %v958_v1 }
  0x39   : > { %895 = vmatprep.subr.bf16.mxu1 %v958_v1 }
  0x3b   : > { %876 = vmatpush3.bf16.msra.mxu0 %v942_v34 }
  0x3c   : > { %896 = vmatpush3.bf16.msra.mxu1 %v943_v35  ;;  %877 = vmatprep.subr.bf16.mxu0 %v958_v1 }
  0x3d   : > { %897 = vmatprep.subr.bf16.mxu1 %v958_v1 }
  0x3f   : > { %878 = vmatpush3.bf16.msra.mxu0 %v944_v38 }
  0x40   : > { %898 = vmatpush3.bf16.msra.mxu1 %v945_v39  ;;  %879 = vmatprep.subr.bf16.mxu0 %v958_v1 }
  0x41   : > { %899 = vmatprep.subr.bf16.mxu1 %v958_v1 }
  0x43   : > { %880 = vmatpush3.bf16.msra.mxu0 %v946_v42 }
  0x44   : > { %900 = vmatpush3.bf16.msra.mxu1 %v947_v44 }
  0x46   : > { %882 = vmatmul.mubr.bf16.vlgmr.msra.gmra.mrb[4].mxu0 %v419_v45 }
  0x47   : > { %902 = vmatmul.mubr.bf16.vlgmr.msra.gmra.mrb[4].mxu1 %v534_v46 }
  0xf9   : > { %v297_v47 = vpop.f32.mrb[0].mxu0 }
  0xfa   : > { %v385_v48 = vpop.f32.mrb[0].mxu1  ;;  %v843_v49 = vpop.f32.mrb[1].mxu0 }
  0xfb   : > { %v386_v50 = vadd.f32 %v385_v48, %v297_v47  ;;  %v863_v51 = vpop.f32.mrb[1].mxu1  ;;  %v300_v52 = vpop.f32.mrb[2].mxu0 }
  0xfc   : > { %v388_v53 = vpop.f32.mrb[2].mxu1  ;;  %v844_v54 = vpop.f32.mrb[3].mxu0 }
  0xfd   : > { %v864_v55 = vpop.f32.mrb[3].mxu1 }
 0x119   : > { %v503_v56 = vpop.f32.mrb[4].mxu0 }
 0x11a   : > { %v509_v57 = vadd.f32 %v503_v56, %v386_v50  ;;  %v618_v58 = vpop.f32.mrb[4].mxu1  ;;  %v883_v59 = vpop.f32.mrb[5].mxu0 }
 0x11b   : > { %v903_v61 = vpop.f32.mrb[5].mxu1  ;;  %v506_v62 = vpop.f32.mrb[6].mxu0 }
 0x11c   : > { %v624_v63 = vadd.f32 %v618_v58, %v509_v57  ;;  %v621_v0 = vpop.f32.mrb[6].mxu1  ;;  %v884_v1 = vpop.f32.mrb[7].mxu0 }
 0x11d   : > { %v904_v2 = vpop.f32.mrb[7].mxu1 }
 0x11e   : > { %v632_v3 = vadd.f32 %v785_v60, %v624_v63 }
 0x120   : > { %v633_v4 = vmax.f32 %v632_v3, 0.0 }
 0x122   : > { %v634_v6 = vpack.c.bf16 %v633_v4, %v633_v4 }
 0x124   : > { %v639_v7 = vsel %vm637_vm3, %v634_v6, %v638_v5 }
 0x125   : > { %640 = vst [vmem:[%s168_s11] sm:$0x7] %v639_v7 }
 0x126 PF: > { %s13_s12 = sadd.s32 1, %s956_s12  }
 0x127   : > { %p10_p4 = scmp.ge.s32.totalorder %s13_s12, 4  }
 0x129   :  { %12 = sbr.rel (!%p10_p4) target bundleno = 1 (0x1), region = 65 }

// kernel: _lambda_.11
= control target key start
LH: loop header
LB: loop body
LE: loop exit
PB: predicated region body
PF: predicated region fallthrough
CT: control target
= control target key end

     0   :  { %v163_v1 = vmov 0.0   ;;  %vm164_vm0 = vmmov 0   ;;  %s213_s0 = inlined_call_operand.vmem [shape: bf16[2,1,32], index: 0, kind: input, shape index: {}]   ;;  %s214_s1 = inlined_call_operand.vmem [shape: bf16[32,8], index: 1, kind: input, shape index: {}]   ;;  %s215_s2 = inlined_call_operand.vmem [shape: f32[1,8], index: 2, kind: input, shape index: {}]   ;;  %s216_s3 = inlined_call_operand.hbm [shape: f32[2,8], index: 3, kind: output, shape index: {}]  }
   0x1   :  { %v135_v0 = vld [vmem:[%s214_s1] sm:$0xff]   ;;  %124 = vmatprep.subr.bf16.mxu0 %v163_v1  ;;  %v136_v2 = vld [vmem:[%s214_s1 + $0x8] sm:$0xff]   ;;  %128 = vmatprep.mubr.msk.bf16.mxu0 %vm164_vm0, %v163_v1 }
   0x2   :  { %125 = vmatpush3.bf16.msra.mxu0 %v135_v0  ;;  %v137_v3 = vld [vmem:[%s213_s0] ss:$0 sps:$4 sm:$0x11]   ;;  %v138_v4 = vld [vmem:[%s213_s0 + $0x1] ss:$0 sps:$4 sm:$0x11]  }
   0x3   :  { %126 = vmatprep.subr.bf16.mxu0 %v163_v1 }
   0x4   :  { %8 = vsyncpa [#allocation3], 0  ;;  %v37_v5 = vunpack.c.l.b16 %v137_v3  ;;  %v38_v6 = vunpack.c.l.b16 %v138_v4  ;;  %vm40_vm1 = vcmask 1041409   ;;  %vm55_vm2 = vcmask 261120   ;;  %v117_v10 = vld [vmem:[%s215_s2] ss:$0 sm:$0xff] }
   0x5   :  { %s165_s21 = smov [#allocation2]   ;;  %vm99_vm3 = vcmask 58368  }
   0x6   :  { %127 = vmatpush3.bf16.msra.mxu0 %v136_v2  ;;  %v39_v7 = vrot.slane %v38_v6, 7  ;;  %s107_s22 = sshll.u32 %s165_s21, 4  ;;  %s108_s22 = int_to_ptr.vmem [resolvable:$true] %s107_s22 }
   0x7   :  { %s139_s0 = scalar_lea.vmem %s108_s22, 32  ;;  %p144_p1 = scmp.lt.s32.totalorder %s108_s22, %s108_s22 }
   0x8   :  { %v41_v8 = vsel %vm40_vm1, %v39_v7, %v37_v5  ;;  %p140_p0 = scmp.ne.s32.totalorder %s108_s22, %s139_s0  ;;  %p145_p2 = scmp.lt.s32.totalorder %s139_s0, %s139_s0 }
   0x9   :  { %v42_v9 = vpack.c.b16 %v41_v8, %v41_v8 }
   0xa   :  { %p146_p3 = por %p145_p2, %p144_p1 }
   0xb   :  { %129 = vmatmul.mubr.msk.bf16.vlgmr.msra.gmra.mrb[0].mxu0 %vm55_vm2, %v42_v9 }
   0xc   :  { %p147_p4 = pnand %p146_p3, %p140_p0 }
  0xde   :  { %v93_v11 = vpop.f32.mrb[0].mxu0 }
  0xdf   :  { %v94_v12 = vadd.f32 %v117_v10, %v93_v11  ;;  %v130_v13 = vpop.f32.mrb[1].mxu0 }
  0xe0   :  { %v96_v14 = vpop.f32.mrb[2].mxu0 }
  0xe1   :  { %v131_v15 = vpop.f32.mrb[3].mxu0  ;;  %100 = vst.msk [vmem:[#allocation2] sm:$0x3] %vm99_vm3, %v94_v12 }
  0xe2   :  { %150 = shalt.err (!%p147_p4)
}
  0xe3   :  { %s151_s2 = scalar_lea.hbm %s216_s3, 32 }
  0xe4   :  { %p152_p5 = scmp.ne.s32.totalorder %s216_s3, %s151_s2  ;;  %p155_p6 = scmp.lt.u32.totalorder %s151_s2, %s216_s3 }
  0xe6   :  { %p157_p7 = pnand %p155_p6, %p152_p5 }
  0xe8   :  { %160 = shalt.err (!%p157_p7)
}
  0xe9   :  { %110 = dma.vmem_to_hbm [thread:$0]  %s108_s22, 32, %s216_s3, [#allocation3]  }
  0xea   :  { %161 = dma.done.wait [#allocation3], 32  }
  0xeb   :  { %162 = vsyncadd [#allocation3], 4294967264 }
  0xec   :  { %114 = vsyncpa [#allocation3], 1 }

// kernel: _lambda_.10
= control target key start
LH: loop header
LB: loop body
LE: loop exit
PB: predicated region body
PF: predicated region fallthrough
CT: control target
= control target key end

     0   :  { %s961_s12 = smov 0   ;;  %s1129_s0 = inlined_call_operand.vmem [shape: bf16[2,4,128], index: 0, kind: input, shape index: {}]   ;;  %s1130_s1 = inlined_call_operand.vmem [shape: bf16[4,128,32], index: 1, kind: input, shape index: {}]   ;;  %s1131_s2 = inlined_call_operand.vmem [shape: f32[1,32], index: 2, kind: input, shape index: {}]   ;;  %s1132_s3 = inlined_call_operand.vmem [shape: bf16[2,1,32], index: 3, kind: output, shape index: {}]  }
   0x1 LB: > { %s681_s13 = sadd.s32 4294967295, %s936_s12   ;;  %p685_p0 = scmp.ge.s32.totalorder %s936_s12, 1  ;;  %s936_s12 = sphi %s961_s12, %s13_s12  }
   0x2   : > { %p136_p1 = scmp.lt.s32.totalorder %s936_s12, 3 }
   0x4   : > { %p137_p2 = pnand %p685_p0, %p136_p1 }
   0x5   : > { %v898_v0 = vld [vmem:[%s1130_s1 + $0x40] sm:$0xff] (!%p137_p2)   ;;  %v938_v1 = vmov (!%p137_p2), 0.0   ;;  %v900_v3 = vld [vmem:[%s1130_s1 + $0x48] sm:$0xff] (!%p137_p2)   ;;  %vm939_vm0 = vmmov (!%p137_p2), 0   ;;  %v902_v5 = vld [vmem:[%s1130_s1 + $0x50] sm:$0xff] (!%p137_p2)   ;;  %p157_p3 = scmp.lt.s32.totalorder (!%p137_p2), %s681_s13, 1  ;;  %v203_v9 = vlaneseq (!%p137_p2) }
   0x6   : > { %140 = sbr.rel (%p137_p2) target bundleno = 294 (0x126), region = 32  ;;  %807 = vmatprep.subr.bf16.mxu0 (!%p137_p2), %v938_v1  ;;  %827 = vmatprep.subr.bf16.mxu1 (!%p137_p2), %v938_v1  ;;  %v899_v2 = vld [vmem:[%s1130_s1] sm:$0xff] (!%p137_p2)   ;;  %v901_v4 = vld [vmem:[%s1130_s1 + $0x8] sm:$0xff] (!%p137_p2)   ;;  %v903_v6 = vld [vmem:[%s1130_s1 + $0x10] sm:$0xff] (!%p137_p2)   ;;  %v940_v12 = vmov (!%p137_p2), 1983009808  }
   0x7   : > { %808 = vmatpush3.bf16.msra.mxu0 (!%p137_p2), %v898_v0  ;;  %823 = vmatprep.mubr.msk.bf16.mxu0 (!%p137_p2), %vm939_vm0, %v938_v1  ;;  %v904_v7 = vld [vmem:[%s1130_s1 + $0x58] sm:$0xff] (!%p137_p2)   ;;  %v906_v10 = vld [vmem:[%s1130_s1 + $0x60] sm:$0xff] (!%p137_p2)   ;;  %v201_v13 = vunpack.c.l.s4 (!%p137_p2), %v940_v12  ;;  %v204_v14 = vshrl.u32 (!%p137_p2), %v203_v9, 7  ;;  %v908_v15 = vld [vmem:[%s1130_s1 + $0x68] sm:$0xff] (!%p137_p2)   ;;  %vm628_vm1 = vcmask (!%p137_p2), 253952  }
   0x8   : > { %828 = vmatpush3.bf16.msra.mxu1 (!%p137_p2), %v899_v2  ;;  %809 = vmatprep.subr.bf16.mxu0 (!%p137_p2), %v938_v1  ;;  %v905_v8 = vld [vmem:[%s1130_s1 + $0x18] sm:$0xff] (!%p137_p2)   ;;  %v907_v11 = vld [vmem:[%s1130_s1 + $0x20] sm:$0xff] (!%p137_p2)   ;;  %v909_v16 = vld [vmem:[%s1130_s1 + $0x28] sm:$0xff] (!%p137_p2)   ;;  %vm629_vm2 = vsmask.f32 (!%p137_p2), 256 }
   0x9   : > { %829 = vmatprep.subr.bf16.mxu1 (!%p137_p2), %v938_v1  ;;  %843 = vmatprep.mubr.msk.bf16.mxu1 (!%p137_p2), %vm939_vm0, %v938_v1  ;;  %v202_v17 = vunpack.c.0.s8 (!%p137_p2), %v201_v13  ;;  %v910_v18 = vld [vmem:[%s1130_s1 + $0x70] sm:$0xff] (!%p137_p2)   ;;  %v912_v23 = vld [vmem:[%s1130_s1 + $0x78] sm:$0xff] (!%p137_p2)   ;;  %v914_v26 = vld [vmem:[%s1130_s1 + $0x80] sm:$0xff] (!%p137_p2)  }
   0xa   : > { %v911_v21 = vld [vmem:[%s1130_s1 + $0x30] sm:$0xff] (!%p137_p2)   ;;  %v913_v24 = vld [vmem:[%s1130_s1 + $0x38] sm:$0xff] (!%p137_p2)   ;;  %v915_v27 = vld [vmem:[%s1130_s1 + $0xc0] sm:$0xff] (!%p137_p2)  }
   0xb   : > { %810 = vmatpush3.bf16.msra.mxu0 (!%p137_p2), %v900_v3  ;;  %v205_v19 = vsub.s32 (!%p137_p2), %v202_v17, %v204_v14  ;;  %v916_v28 = vld [vmem:[%s1130_s1 + $0x88] sm:$0xff] (!%p137_p2)   ;;  %v918_v30 = vld [vmem:[%s1130_s1 + $0x90] sm:$0xff] (!%p137_p2)   ;;  %v920_v32 = vld [vmem:[%s1130_s1 + $0x98] sm:$0xff] (!%p137_p2)  }
   0xc   : > { %830 = vmatpush3.bf16.msra.mxu1 (!%p137_p2), %v901_v4  ;;  %811 = vmatprep.subr.bf16.mxu0 (!%p137_p2), %v938_v1  ;;  %v917_v29 = vld [vmem:[%s1130_s1 + $0xc8] sm:$0xff] (!%p137_p2)   ;;  %v919_v31 = vld [vmem:[%s1130_s1 + $0xd0] sm:$0xff] (!%p137_p2)   ;;  %v921_v33 = vld [vmem:[%s1130_s1 + $0xd8] sm:$0xff] (!%p137_p2)  }
   0xd   : > { %831 = vmatprep.subr.bf16.mxu1 %v938_v1  ;;  %s1134_s13 = smov (!%p157_p3, %s681_s13), 1  ;;  %v922_v34 = vld [vmem:[%s1130_s1 + $0xa0] sm:$0xff]   ;;  %v924_v36 = vld [vmem:[%s1130_s1 + $0xa8] sm:$0xff]   ;;  %v926_v38 = vld [vmem:[%s1130_s1 + $0xb0] sm:$0xff]  }
   0xe   : > { %s686_s7 = sshll.u32 %s1134_s13, 1  ;;  %v923_v35 = vld [vmem:[%s1130_s1 + $0xe0] sm:$0xff]   ;;  %v925_v37 = vld [vmem:[%s1130_s1 + $0xe8] sm:$0xff]   ;;  %v927_v39 = vld [vmem:[%s1130_s1 + $0xf0] sm:$0xff]   ;;  %s163_s9 = scalar_lea.vmem %s1132_s3, %s1134_s13 }
   0xf   : > { %812 = vmatpush3.bf16.msra.mxu0 %v902_v5  ;;  %s1030_s16 = scalar_lea.vmem %s1129_s0, %s686_s7  ;;  %v928_v41 = vld [vmem:[%s1130_s1 + $0xb8] sm:$0xff]   ;;  %v624_v59 = vld [vmem:[%s1131_s2] sm:$0x1]  ;;  %vm630_vm3 = vmand %vm628_vm1, %vm629_vm2 }
  0x10   : > { %832 = vmatpush3.bf16.msra.mxu1 %v903_v6  ;;  %813 = vmatprep.subr.bf16.mxu0 %v938_v1  ;;  %v165_v20 = vld [vmem:[%s1030_s16] sm:$0x1]  ;;  %v735_v40 = vld.sshfl [vmem:[%s1030_s16] sm:$0x2 pattern:$0x76325410] }
  0x11   : > { %833 = vmatprep.subr.bf16.mxu1 %v938_v1  ;;  %v206_v22 = vrot.slane %v165_v20, %v205_v19  ;;  %v531_v42 = vshrl.u32 %v735_v40, 16  ;;  %v929_v43 = vld [vmem:[%s1130_s1 + $0xf8] sm:$0xff]   ;;  %v413_v44 = vrot.slane %v735_v40, 1  ;;  %v631_v4 = vld [vmem:[%s163_s9] sm:$0x1] }
  0x13   : > { %814 = vmatpush3.bf16.msra.mxu0 %v904_v7  ;;  %v208_v25 = vshrl.u32 %v206_v22, 16  ;;  %v533_v45 = vrot.slane %v531_v42, 1 }
  0x14   : > { %834 = vmatpush3.bf16.msra.mxu1 %v905_v8  ;;  %815 = vmatprep.subr.bf16.mxu0 %v938_v1 }
  0x15   : > { %835 = vmatprep.subr.bf16.mxu1 %v938_v1 }
  0x17   : > { %816 = vmatpush3.bf16.msra.mxu0 %v906_v10 }
  0x18   : > { %836 = vmatpush3.bf16.msra.mxu1 %v907_v11  ;;  %817 = vmatprep.subr.bf16.mxu0 %v938_v1 }
  0x19   : > { %837 = vmatprep.subr.bf16.mxu1 %v938_v1 }
  0x1b   : > { %818 = vmatpush3.bf16.msra.mxu0 %v908_v15 }
  0x1c   : > { %838 = vmatpush3.bf16.msra.mxu1 %v909_v16  ;;  %819 = vmatprep.subr.bf16.mxu0 %v938_v1 }
  0x1d   : > { %839 = vmatprep.subr.bf16.mxu1 %v938_v1 }
  0x1f   : > { %820 = vmatpush3.bf16.msra.mxu0 %v910_v18 }
  0x20   : > { %840 = vmatpush3.bf16.msra.mxu1 %v911_v21  ;;  %821 = vmatprep.subr.bf16.mxu0 %v938_v1 }
  0x21   : > { %841 = vmatprep.subr.bf16.mxu1 %v938_v1 }
  0x23   : > { %822 = vmatpush3.bf16.msra.mxu0 %v912_v23 }
  0x24   : > { %842 = vmatpush3.bf16.msra.mxu1 %v913_v24  ;;  %847 = vmatprep.subr.bf16.mxu0 %v938_v1 }
  0x25   : > { %867 = vmatprep.subr.bf16.mxu1 %v938_v1 }
  0x26   : > { %824 = vmatmul.mubr.bf16.vlgmr.msra.gmra.mrb[0].mxu0 %v208_v25 }
  0x27   : > { %844 = vmatmul.mubr.bf16.vlgmr.msra.gmra.mrb[0].mxu1 %v165_v20  ;;  %848 = vmatpush3.bf16.msra.mxu0 %v914_v26 }
  0x28   : > { %868 = vmatpush3.bf16.msra.mxu1 %v915_v27  ;;  %849 = vmatprep.subr.bf16.mxu0 %v938_v1 }
  0x29   : > { %869 = vmatprep.subr.bf16.mxu1 %v938_v1  ;;  %863 = vmatprep.mubr.msk.bf16.mxu0 %vm939_vm0, %v938_v1 }
  0x2a   : > { %883 = vmatprep.mubr.msk.bf16.mxu1 %vm939_vm0, %v938_v1 }
  0x2b   : > { %850 = vmatpush3.bf16.msra.mxu0 %v916_v28 }
  0x2c   : > { %870 = vmatpush3.bf16.msra.mxu1 %v917_v29  ;;  %851 = vmatprep.subr.bf16.mxu0 %v938_v1 }
  0x2d   : > { %871 = vmatprep.subr.bf16.mxu1 %v938_v1 }
  0x2f   : > { %852 = vmatpush3.bf16.msra.mxu0 %v918_v30 }
  0x30   : > { %872 = vmatpush3.bf16.msra.mxu1 %v919_v31  ;;  %853 = vmatprep.subr.bf16.mxu0 %v938_v1 }
  0x31   : > { %873 = vmatprep.subr.bf16.mxu1 %v938_v1 }
  0x33   : > { %854 = vmatpush3.bf16.msra.mxu0 %v920_v32 }
  0x34   : > { %874 = vmatpush3.bf16.msra.mxu1 %v921_v33  ;;  %855 = vmatprep.subr.bf16.mxu0 %v938_v1 }
  0x35   : > { %875 = vmatprep.subr.bf16.mxu1 %v938_v1 }
  0x37   : > { %856 = vmatpush3.bf16.msra.mxu0 %v922_v34 }
  0x38   : > { %876 = vmatpush3.bf16.msra.mxu1 %v923_v35  ;;  %857 = vmatprep.subr.bf16.mxu0 %v938_v1 }
  0x39   : > { %877 = vmatprep.subr.bf16.mxu1 %v938_v1 }
  0x3b   : > { %858 = vmatpush3.bf16.msra.mxu0 %v924_v36 }
  0x3c   : > { %878 = vmatpush3.bf16.msra.mxu1 %v925_v37  ;;  %859 = vmatprep.subr.bf16.mxu0 %v938_v1 }
  0x3d   : > { %879 = vmatprep.subr.bf16.mxu1 %v938_v1 }
  0x3f   : > { %860 = vmatpush3.bf16.msra.mxu0 %v926_v38 }
  0x40   : > { %880 = vmatpush3.bf16.msra.mxu1 %v927_v39  ;;  %861 = vmatprep.subr.bf16.mxu0 %v938_v1 }
  0x41   : > { %881 = vmatprep.subr.bf16.mxu1 %v938_v1 }
  0x43   : > { %862 = vmatpush3.bf16.msra.mxu0 %v928_v41 }
  0x44   : > { %882 = vmatpush3.bf16.msra.mxu1 %v929_v43 }
  0x46   : > { %864 = vmatmul.mubr.bf16.vlgmr.msra.gmra.mrb[4].mxu0 %v413_v44 }
  0x47   : > { %884 = vmatmul.mubr.bf16.vlgmr.msra.gmra.mrb[4].mxu1 %v533_v45 }
  0xf9   : > { %v293_v46 = vpop.f32.mrb[0].mxu0 }
  0xfa   : > { %v381_v47 = vpop.f32.mrb[0].mxu1  ;;  %v825_v48 = vpop.f32.mrb[1].mxu0 }
  0xfb   : > { %v382_v49 = vadd.f32 %v381_v47, %v293_v46  ;;  %v845_v50 = vpop.f32.mrb[1].mxu1  ;;  %v296_v51 = vpop.f32.mrb[2].mxu0 }
  0xfc   : > { %v384_v52 = vpop.f32.mrb[2].mxu1  ;;  %v826_v53 = vpop.f32.mrb[3].mxu0 }
  0xfd   : > { %v846_v54 = vpop.f32.mrb[3].mxu1 }
 0x119   : > { %v497_v55 = vpop.f32.mrb[4].mxu0 }
 0x11a   : > { %v503_v56 = vadd.f32 %v497_v55, %v382_v49  ;;  %v617_v57 = vpop.f32.mrb[4].mxu1  ;;  %v865_v58 = vpop.f32.mrb[5].mxu0 }
 0x11b   : > { %v885_v60 = vpop.f32.mrb[5].mxu1  ;;  %v500_v61 = vpop.f32.mrb[6].mxu0 }
 0x11c   : > { %v623_v62 = vadd.f32 %v617_v57, %v503_v56  ;;  %v620_v63 = vpop.f32.mrb[6].mxu1  ;;  %v866_v0 = vpop.f32.mrb[7].mxu0 }
 0x11d   : > { %v886_v1 = vpop.f32.mrb[7].mxu1 }
 0x11e   : > { %v625_v2 = vadd.f32 %v624_v59, %v623_v62 }
 0x120   : > { %v626_v3 = vmax.f32 %v625_v2, 0.0 }
 0x122   : > { %v627_v5 = vpack.c.bf16 %v626_v3, %v626_v3 }
 0x124   : > { %v632_v6 = vsel %vm630_vm3, %v627_v5, %v631_v4 }
 0x125   : > { %633 = vst [vmem:[%s163_s9] sm:$0x1] %v632_v6 }
 0x126 PF: > { %s13_s12 = sadd.s32 1, %s936_s12  }
 0x127   : > { %p10_p4 = scmp.ge.s32.totalorder %s13_s12, 4  }
 0x129   :  { %12 = sbr.rel (!%p10_p4) target bundleno = 1 (0x1), region = 65 }

</bundles_post_ra>
